<compile_context>
chip_gen: v5e
topology: v5e:2x2
jax: 0.10.0
libtpu: 0.0.40
codegen_flags: <defaults>
</compile_context>

<pallas_src>
import functools

import jax
import jax.numpy as jnp
from jax import lax
from jax.experimental import pallas as pl
from jax.experimental.pallas import tpu as pltpu

EPS = 1e-6


def encoder_block_kernel(
    x_ref,
    wq_ref, bq_ref, wkv_ref, bkv_ref, wo_ref, bo_ref,
    ln1_a_ref, ln1_b_ref,
    w1_ref, b1_ref, w2_ref, b2_ref,
    ln2_a_ref, ln2_b_ref,
    out_ref,
    kv_scratch,
    *, num_heads, q_tile, compute_dtype,
):
    f32 = jnp.float32
    cdt = compute_dtype

    qi = pl.program_id(1)
    S = x_ref.shape[1]
    D = x_ref.shape[2]
    TQ = q_tile
    d_k = D // num_heads

    ln1_a, ln1_b = ln1_a_ref[0], ln1_b_ref[0]

    def layer_norm(v, alpha, bias):
        mean = jnp.mean(v, axis=-1, keepdims=True)
        # torch.std default is unbiased (divide by N-1); eps added to std.
        var = jnp.sum((v - mean) ** 2, axis=-1, keepdims=True) / (D - 1)
        std = jnp.sqrt(var)
        return alpha * (v - mean) / (std + EPS) + bias

    # ---- once per batch element: LN1(full x) + fused K/V projection --------
    @pl.when(qi == 0)
    def _():
        x_full = x_ref[0]                                           # (S, D)
        n1_full = layer_norm(x_full, ln1_a, ln1_b)
        kv = jnp.dot(n1_full.astype(cdt), wkv_ref[...],
                     preferred_element_type=f32) + bkv_ref[0]       # (S, 2D)
        kv_scratch[...] = kv.astype(cdt)

    # ---- query tile: residual connection 0 = x + SelfAttn(LN1(x)) ----------
    row0 = pl.multiple_of(qi * TQ, TQ)
    x_q = x_ref[0, pl.ds(row0, TQ), :]                              # (TQ, D)
    n1_q = layer_norm(x_q, ln1_a, ln1_b)

    scale = 1.0 / jnp.sqrt(jnp.float32(d_k))                        # fold into q
    q = (jnp.dot(n1_q.astype(cdt), wq_ref[...],
                 preferred_element_type=f32) + bq_ref[0]) * scale
    q = q.astype(cdt)                                               # (TQ, D)

    kv_all = kv_scratch[...]                                        # (S, 2D) cdt
    k = kv_all[:, :D]
    v = kv_all[:, D:]
    wo_t = wo_ref[...]                                              # (D, D) (K,N)

    attn_out = jnp.zeros((TQ, D), f32)
    for h in range(num_heads):                                      # static loop
        sl = slice(h * d_k, (h + 1) * d_k)
        qh, kh, vh = q[:, sl], k[:, sl], v[:, sl]
        # q @ k^T as an NT dot_general (no materialized transpose)
        s = lax.dot_general(qh, kh, (((1,), (1,)), ((), ())),
                            preferred_element_type=f32)             # (TQ, S)
        m = jnp.max(s, axis=-1, keepdims=True)
        p = jnp.exp(s - m)
        l = jnp.sum(p, axis=-1, keepdims=True)
        # unnormalized p @ v, then rescale the small (TQ, d_k) result
        o = jnp.dot(p.astype(cdt), vh, preferred_element_type=f32)
        o = o * pl.reciprocal(l, approx=True)
        # fused output projection: accumulate o_h @ Wo[h*d_k:(h+1)*d_k, :]
        attn_out = attn_out + jnp.dot(o.astype(cdt), wo_t[sl, :],
                                      preferred_element_type=f32)
    attn_out = attn_out + bo_ref[0]

    x1 = x_q + attn_out                                             # dropout == id

    # ---- residual connection 1: x1 + FFN(LN2(x1)) ---------------------------
    n2 = layer_norm(x1, ln2_a_ref[0], ln2_b_ref[0])
    h1 = jnp.dot(n2.astype(cdt), w1_ref[...],
                 preferred_element_type=f32) + b1_ref[0]            # (TQ, d_ff)
    h1 = jnp.maximum(h1, 0.0)                                       # relu
    ff = jnp.dot(h1.astype(cdt), w2_ref[...],
                 preferred_element_type=f32) + b2_ref[0]            # (TQ, D)

    out_ref[0] = (x1 + ff).astype(out_ref.dtype)


def encoder_block(x, params, num_heads, src_mask=None, *,
                  q_tile=256, compute_dtype=jnp.float32):
    """x: (B, S, d_model) float32. src_mask is ignored (see header note)."""
    del src_mask  # reference discards the masked_fill result -> mask is a no-op
    x = x.astype(jnp.float32)
    B, S, D = x.shape
    assert D % num_heads == 0

    tq = min(q_tile, S)
    if S % tq != 0:       # keep grid exact; fall back to one tile per batch
        tq = S
    n_q = S // tq

    f32 = jnp.float32
    cdt = compute_dtype
    p = params
    # Host-side prep: pre-transpose into (K, N) contraction layout, fuse K/V,
    # cast matmul weights to the compute dtype; biases / LN params stay f32.
    prepped = [
        ("wq",   p["wq"].T.astype(cdt)),                                        # (D, D)
        ("bq",   p["bq"].reshape(1, -1).astype(f32)),
        ("wkv",  jnp.concatenate([p["wk"].T, p["wv"].T], axis=1).astype(cdt)),  # (D, 2D)
        ("bkv",  jnp.concatenate([p["bk"], p["bv"]]).reshape(1, -1).astype(f32)),
        ("wo",   p["wo"].T.astype(cdt)),                                        # (D, D)
        ("bo",   p["bo"].reshape(1, -1).astype(f32)),
        ("ln1a", p["ln1_a"].reshape(1, -1).astype(f32)),
        ("ln1b", p["ln1_b"].reshape(1, -1).astype(f32)),
        ("w1",   p["w1"].T.astype(cdt)),                                        # (D, d_ff)
        ("b1",   p["b1"].reshape(1, -1).astype(f32)),
        ("w2",   p["w2"].T.astype(cdt)),                                        # (d_ff, D)
        ("b2",   p["b2"].reshape(1, -1).astype(f32)),
        ("ln2a", p["ln2_a"].reshape(1, -1).astype(f32)),
        ("ln2b", p["ln2_b"].reshape(1, -1).astype(f32)),
    ]
    args = [w for _, w in prepped]

    in_specs = [
        # full sequence: block index constant across q-tiles, fetched once per
        # batch element; the query tile is sliced in-kernel with pl.ds.
        pl.BlockSpec((1, S, D), lambda b, qi: (b, 0, 0)),
    ]
    for _, w in prepped:
        in_specs.append(
            pl.BlockSpec(w.shape, lambda b, qi, _nd=w.ndim: (0,) * _nd))

    kernel = functools.partial(encoder_block_kernel,
                               num_heads=num_heads, q_tile=tq,
                               compute_dtype=cdt)
    return pl.pallas_call(
        kernel,
        out_shape=jax.ShapeDtypeStruct((B, S, D), jnp.float32),
        grid_spec=pltpu.PrefetchScalarGridSpec(
            num_scalar_prefetch=0,
            grid=(B, n_q),
            in_specs=in_specs,
            out_specs=pl.BlockSpec((1, tq, D), lambda b, qi: (b, qi, 0)),
            scratch_shapes=[pltpu.VMEM((S, 2 * D), cdt)],   # K/V cache per batch
        ),
        compiler_params=pltpu.CompilerParams(
            dimension_semantics=("parallel", "arbitrary"),
            vmem_limit_bytes=64 * 1024 * 1024,
        ),
    )(x, *args)


# ---------------------------- reference (pure JAX) ---------------------------
def encoder_block_ref(x, params, num_heads):
    D = x.shape[-1]
    d_k = D // num_heads

    def ln(v, a, b):
        mean = jnp.mean(v, -1, keepdims=True)
        var = jnp.sum((v - mean) ** 2, -1, keepdims=True) / (D - 1)
        return a * (v - mean) / (jnp.sqrt(var) + EPS) + b

    n1 = ln(x, params["ln1_a"], params["ln1_b"])
    q = n1 @ params["wq"].T + params["bq"]
    k = n1 @ params["wk"].T + params["bk"]
    v = n1 @ params["wv"].T + params["bv"]
    B, S, _ = x.shape
    rs = lambda t: t.reshape(B, S, num_heads, d_k).transpose(0, 2, 1, 3)
    q, k, v = rs(q), rs(k), rs(v)
    s = jnp.einsum("bhqd,bhkd->bhqk", q, k) / jnp.sqrt(jnp.float32(d_k))
    pr = jax.nn.softmax(s, axis=-1)
    o = jnp.einsum("bhqk,bhkd->bhqd", pr, v).transpose(0, 2, 1, 3).reshape(B, S, D)
    x1 = x + (o @ params["wo"].T + params["bo"])
    n2 = ln(x1, params["ln2_a"], params["ln2_b"])
    ff = jnp.maximum(n2 @ params["w1"].T + params["b1"], 0.0) @ params["w2"].T + params["b2"]
    return x1 + ff


def make_params(key, d_model, d_ff):
    keys = jax.random.split(key, 12)
    nrm = lambda k, shp: (jax.random.normal(k, shp, jnp.float32) * 0.1)
    return {
        "wq": nrm(keys[0], (d_model, d_model)), "bq": nrm(keys[1], (d_model,)),
        "wk": nrm(keys[2], (d_model, d_model)), "bk": nrm(keys[3], (d_model,)),
        "wv": nrm(keys[4], (d_model, d_model)), "bv": nrm(keys[5], (d_model,)),
        "wo": nrm(keys[6], (d_model, d_model)), "bo": nrm(keys[7], (d_model,)),
        "ln1_a": jnp.ones((d_model,), jnp.float32),
        "ln1_b": jnp.zeros((d_model,), jnp.float32),
        "w1": nrm(keys[8], (d_ff, d_model)), "b1": nrm(keys[9], (d_ff,)),
        "w2": nrm(keys[10], (d_model, d_ff)), "b2": nrm(keys[11], (d_model,)),
        "ln2_a": jnp.ones((d_model,), jnp.float32),
        "ln2_b": jnp.zeros((d_model,), jnp.float32),
    }


if __name__ == "__main__":
    # Small but lane/sublane-aligned shapes (D, d_ff multiples of 128; S mult. 8);
    # q_tile=64 exercises the (B, S//tq) grid (2x2 = 4 steps) and the K/V cache.
    B, S, D, H, D_FF = 2, 128, 128, 4, 256
    key = jax.random.PRNGKey(0)
    kx, kp = jax.random.split(key)
    x = jax.random.normal(kx, (B, S, D), jnp.float32)
    src_mask = jnp.ones((B, 1, S, S), jnp.float32)   # no effect (see header)
    params = make_params(kp, D, D_FF)

    ref = encoder_block_ref(x, params, num_heads=H)

    # f32 compute path (faithful numerics; tolerance covers the approx reciprocal
    # used for the deferred softmax normalization).
    out_f32 = encoder_block(x, params, num_heads=H, src_mask=src_mask,
                            q_tile=64, compute_dtype=jnp.float32)
    out_f32 = jax.block_until_ready(out_f32)
    assert out_f32.shape == (B, S, D)
    assert jnp.allclose(out_f32, ref, rtol=1e-2, atol=1e-2), "f32 mismatch vs JAX reference"

    # bf16-matmul fast path (MXU-native, f32 accumulation) -- looser tolerance.
    out_bf16 = encoder_block(x, params, num_heads=H, src_mask=src_mask,
                             q_tile=64, compute_dtype=jnp.bfloat16)
    out_bf16 = jax.block_until_ready(out_bf16)
    assert jnp.allclose(out_bf16, ref, rtol=1e-1, atol=1e-1), "bf16 mismatch vs JAX reference"

    print("KERNEL_OK")
</pallas_src>

<mosaic_0001>
module attributes {stable_mosaic.version = 11 : i64} {
  func.func @encoder_block_kernel(%arg0: i32, %arg1: i32, %arg2: memref<1x128x128xf32, #tpu.memory_space<vmem>>, %arg3: memref<128x128xf32, #tpu.memory_space<vmem>>, %arg4: memref<1x128xf32, #tpu.memory_space<vmem>>, %arg5: memref<128x256xf32, #tpu.memory_space<vmem>>, %arg6: memref<1x256xf32, #tpu.memory_space<vmem>>, %arg7: memref<128x128xf32, #tpu.memory_space<vmem>>, %arg8: memref<1x128xf32, #tpu.memory_space<vmem>>, %arg9: memref<1x128xf32, #tpu.memory_space<vmem>>, %arg10: memref<1x128xf32, #tpu.memory_space<vmem>>, %arg11: memref<128x256xf32, #tpu.memory_space<vmem>>, %arg12: memref<1x256xf32, #tpu.memory_space<vmem>>, %arg13: memref<256x128xf32, #tpu.memory_space<vmem>>, %arg14: memref<1x128xf32, #tpu.memory_space<vmem>>, %arg15: memref<1x128xf32, #tpu.memory_space<vmem>>, %arg16: memref<1x128xf32, #tpu.memory_space<vmem>>, %arg17: memref<1x64x128xf32, #tpu.memory_space<vmem>>, %arg18: memref<128x256xf32, #tpu.memory_space<vmem>>) attributes {dimension_semantics = [#tpu.dimension_semantics<parallel>, #tpu.dimension_semantics<arbitrary>], iteration_bounds = array<i64: 2, 2>, scalar_prefetch = 0 : i64, scratch_operands = 1 : i64, tpu.core_type = #tpu.core_type<tc>, window_params = [{transform_indices = @transform_0, window_bounds = array<i64: 1, 128, 128>}, {pipeline_mode = #tpu.pipeline_mode<synchronous>, transform_indices = @transform_1, window_bounds = array<i64: 128, 128>}, {pipeline_mode = #tpu.pipeline_mode<synchronous>, transform_indices = @transform_2, window_bounds = array<i64: 1, 128>}, {pipeline_mode = #tpu.pipeline_mode<synchronous>, transform_indices = @transform_3, window_bounds = array<i64: 128, 256>}, {pipeline_mode = #tpu.pipeline_mode<synchronous>, transform_indices = @transform_4, window_bounds = array<i64: 1, 256>}, {pipeline_mode = #tpu.pipeline_mode<synchronous>, transform_indices = @transform_5, window_bounds = array<i64: 128, 128>}, {pipeline_mode = #tpu.pipeline_mode<synchronous>, transform_indices = @transform_6, window_bounds = array<i64: 1, 128>}, {pipeline_mode = #tpu.pipeline_mode<synchronous>, transform_indices = @transform_7, window_bounds = array<i64: 1, 128>}, {pipeline_mode = #tpu.pipeline_mode<synchronous>, transform_indices = @transform_8, window_bounds = array<i64: 1, 128>}, {pipeline_mode = #tpu.pipeline_mode<synchronous>, transform_indices = @transform_9, window_bounds = array<i64: 128, 256>}, {pipeline_mode = #tpu.pipeline_mode<synchronous>, transform_indices = @transform_10, window_bounds = array<i64: 1, 256>}, {pipeline_mode = #tpu.pipeline_mode<synchronous>, transform_indices = @transform_11, window_bounds = array<i64: 256, 128>}, {pipeline_mode = #tpu.pipeline_mode<synchronous>, transform_indices = @transform_12, window_bounds = array<i64: 1, 128>}, {pipeline_mode = #tpu.pipeline_mode<synchronous>, transform_indices = @transform_13, window_bounds = array<i64: 1, 128>}, {pipeline_mode = #tpu.pipeline_mode<synchronous>, transform_indices = @transform_14, window_bounds = array<i64: 1, 128>}, {transform_indices = @transform_15, window_bounds = array<i64: 1, 64, 128>}]} {
    %c0 = arith.constant 0 : index
    %c0_0 = arith.constant 0 : index
    %0 = vector.load %arg9[%c0, %c0_0] : memref<1x128xf32, #tpu.memory_space<vmem>>, vector<1x128xf32>
    %1 = vector.shape_cast %0 : vector<1x128xf32> to vector<128xf32>
    %c0_1 = arith.constant 0 : index
    %c0_2 = arith.constant 0 : index
    %2 = vector.load %arg10[%c0_1, %c0_2] : memref<1x128xf32, #tpu.memory_space<vmem>>, vector<1x128xf32>
    %3 = vector.shape_cast %2 : vector<1x128xf32> to vector<128xf32>
    %c0_i32 = arith.constant 0 : i32
    %4 = arith.cmpi eq, %arg1, %c0_i32 : i32
    %5 = arith.extui %4 : i1 to i32
    %c0_i32_3 = arith.constant 0 : i32
    %6 = arith.cmpi ne, %5, %c0_i32_3 : i32
    scf.if %6 {
      %c0_67 = arith.constant 0 : index
      %c0_68 = arith.constant 0 : index
      %c0_69 = arith.constant 0 : index
      %178 = vector.load %arg2[%c0_67, %c0_68, %c0_69] : memref<1x128x128xf32, #tpu.memory_space<vmem>>, vector<1x128x128xf32>
      %179 = vector.shape_cast %178 : vector<1x128x128xf32> to vector<128x128xf32>
      %cst_70 = arith.constant dense<0.000000e+00> : vector<128xf32>
      %180 = vector.multi_reduction <add>, %179, %cst_70 [1] : vector<128x128xf32> to vector<128xf32>
      %181 = vector.shape_cast %180 : vector<128xf32> to vector<128x1xf32>
      %cst_71 = arith.constant 1.280000e+02 : f32
      %182 = vector.broadcast %cst_71 : f32 to vector<128x1xf32>
      %183 = arith.divf %181, %182 : vector<128x1xf32>
      %184 = vector.broadcast %183 : vector<128x1xf32> to vector<128x128xf32>
      %185 = arith.subf %179, %184 : vector<128x128xf32>
      %186 = arith.mulf %185, %185 : vector<128x128xf32>
      %cst_72 = arith.constant dense<0.000000e+00> : vector<128xf32>
      %187 = vector.multi_reduction <add>, %186, %cst_72 [1] : vector<128x128xf32> to vector<128xf32>
      %188 = vector.shape_cast %187 : vector<128xf32> to vector<128x1xf32>
      %cst_73 = arith.constant 1.270000e+02 : f32
      %189 = vector.broadcast %cst_73 : f32 to vector<128x1xf32>
      %190 = arith.divf %188, %189 : vector<128x1xf32>
      %191 = math.sqrt %190 : vector<128x1xf32>
      %192 = vector.broadcast %183 : vector<128x1xf32> to vector<128x128xf32>
      %193 = arith.subf %179, %192 : vector<128x128xf32>
      %194 = vector.shape_cast %1 : vector<128xf32> to vector<1x128xf32>
      %195 = vector.broadcast %194 : vector<1x128xf32> to vector<128x128xf32>
      %196 = arith.mulf %195, %193 : vector<128x128xf32>
      %cst_74 = arith.constant 9.99999997E-7 : f32
      %197 = vector.broadcast %cst_74 : f32 to vector<128x1xf32>
      %198 = arith.addf %191, %197 : vector<128x1xf32>
      %199 = vector.broadcast %198 : vector<128x1xf32> to vector<128x128xf32>
      %200 = arith.divf %196, %199 : vector<128x128xf32>
      %201 = vector.shape_cast %3 : vector<128xf32> to vector<1x128xf32>
      %202 = vector.broadcast %201 : vector<1x128xf32> to vector<128x128xf32>
      %203 = arith.addf %200, %202 : vector<128x128xf32>
      %c0_75 = arith.constant 0 : index
      %c0_76 = arith.constant 0 : index
      %204 = vector.load %arg5[%c0_75, %c0_76] : memref<128x256xf32, #tpu.memory_space<vmem>>, vector<128x256xf32>
      %cst_77 = arith.constant dense<0.000000e+00> : vector<128x256xf32>
      %205 = tpu.matmul %203, %204, %cst_77 {dimension_numbers = #tpu.dot_dimension_numbers<[1], [0], [0], [1], [0, 0, 1, 1], [], []>} : vector<128x128xf32>, vector<128x256xf32>, vector<128x256xf32> -> vector<128x256xf32>
      %c0_78 = arith.constant 0 : index
      %c0_79 = arith.constant 0 : index
      %206 = vector.load %arg6[%c0_78, %c0_79] : memref<1x256xf32, #tpu.memory_space<vmem>>, vector<1x256xf32>
      %207 = vector.shape_cast %206 : vector<1x256xf32> to vector<256xf32>
      %208 = vector.shape_cast %207 : vector<256xf32> to vector<1x256xf32>
      %209 = vector.broadcast %208 : vector<1x256xf32> to vector<128x256xf32>
      %210 = arith.addf %205, %209 : vector<128x256xf32>
      %c0_80 = arith.constant 0 : index
      %c0_81 = arith.constant 0 : index
      %211 = vector.load %arg18[%c0_80, %c0_81] : memref<128x256xf32, #tpu.memory_space<vmem>>, vector<128x256xf32>
      tpu.vector_store %arg18[%c0_80, %c0_81], %210 {strides = array<i32>} : memref<128x256xf32, #tpu.memory_space<vmem>>, vector<128x256xf32>,
    } else {
    }
    %c64_i32 = arith.constant 64 : i32
    %7 = arith.muli %arg1, %c64_i32 : i32
    %8 = tpu.assume_multiple %7, 64 : i32
    %c0_4 = arith.constant 0 : index
    %9 = arith.index_cast %8 : i32 to index
    %c0_5 = arith.constant 0 : index
    %10 = vector.load %arg2[%c0_4, %9, %c0_5] : memref<1x128x128xf32, #tpu.memory_space<vmem>>, vector<1x64x128xf32>
    %11 = vector.shape_cast %10 : vector<1x64x128xf32> to vector<64x128xf32>
    %cst = arith.constant dense<0.000000e+00> : vector<64xf32>
    %12 = vector.multi_reduction <add>, %11, %cst [1] : vector<64x128xf32> to vector<64xf32>
    %13 = vector.shape_cast %12 : vector<64xf32> to vector<64x1xf32>
    %cst_6 = arith.constant 1.280000e+02 : f32
    %14 = vector.broadcast %cst_6 : f32 to vector<64x1xf32>
    %15 = arith.divf %13, %14 : vector<64x1xf32>
    %16 = vector.broadcast %15 : vector<64x1xf32> to vector<64x128xf32>
    %17 = arith.subf %11, %16 : vector<64x128xf32>
    %18 = arith.mulf %17, %17 : vector<64x128xf32>
    %cst_7 = arith.constant dense<0.000000e+00> : vector<64xf32>
    %19 = vector.multi_reduction <add>, %18, %cst_7 [1] : vector<64x128xf32> to vector<64xf32>
    %20 = vector.shape_cast %19 : vector<64xf32> to vector<64x1xf32>
    %cst_8 = arith.constant 1.270000e+02 : f32
    %21 = vector.broadcast %cst_8 : f32 to vector<64x1xf32>
    %22 = arith.divf %20, %21 : vector<64x1xf32>
    %23 = math.sqrt %22 : vector<64x1xf32>
    %24 = vector.broadcast %15 : vector<64x1xf32> to vector<64x128xf32>
    %25 = arith.subf %11, %24 : vector<64x128xf32>
    %26 = vector.shape_cast %1 : vector<128xf32> to vector<1x128xf32>
    %27 = vector.broadcast %26 : vector<1x128xf32> to vector<64x128xf32>
    %28 = arith.mulf %27, %25 : vector<64x128xf32>
    %cst_9 = arith.constant 9.99999997E-7 : f32
    %29 = vector.broadcast %cst_9 : f32 to vector<64x1xf32>
    %30 = arith.addf %23, %29 : vector<64x1xf32>
    %31 = vector.broadcast %30 : vector<64x1xf32> to vector<64x128xf32>
    %32 = arith.divf %28, %31 : vector<64x128xf32>
    %33 = vector.shape_cast %3 : vector<128xf32> to vector<1x128xf32>
    %34 = vector.broadcast %33 : vector<1x128xf32> to vector<64x128xf32>
    %35 = arith.addf %32, %34 : vector<64x128xf32>
    %cst_10 = arith.constant 3.200000e+01 : f32
    %36 = math.sqrt %cst_10 : f32
    %cst_11 = arith.constant 1.000000e+00 : f32
    %37 = arith.divf %cst_11, %36 : f32
    %c0_12 = arith.constant 0 : index
    %c0_13 = arith.constant 0 : index
    %38 = vector.load %arg3[%c0_12, %c0_13] : memref<128x128xf32, #tpu.memory_space<vmem>>, vector<128x128xf32>
    %cst_14 = arith.constant dense<0.000000e+00> : vector<64x128xf32>
    %39 = tpu.matmul %35, %38, %cst_14 {dimension_numbers = #tpu.dot_dimension_numbers<[1], [0], [0], [1], [0, 0, 1, 1], [], []>} : vector<64x128xf32>, vector<128x128xf32>, vector<64x128xf32> -> vector<64x128xf32>
    %c0_15 = arith.constant 0 : index
    %c0_16 = arith.constant 0 : index
    %40 = vector.load %arg4[%c0_15, %c0_16] : memref<1x128xf32, #tpu.memory_space<vmem>>, vector<1x128xf32>
    %41 = vector.shape_cast %40 : vector<1x128xf32> to vector<128xf32>
    %42 = vector.shape_cast %41 : vector<128xf32> to vector<1x128xf32>
    %43 = vector.broadcast %42 : vector<1x128xf32> to vector<64x128xf32>
    %44 = arith.addf %39, %43 : vector<64x128xf32>
    %45 = vector.broadcast %37 : f32 to vector<64x128xf32>
    %46 = arith.mulf %44, %45 : vector<64x128xf32>
    %c0_17 = arith.constant 0 : index
    %c0_18 = arith.constant 0 : index
    %47 = vector.load %arg18[%c0_17, %c0_18] : memref<128x256xf32, #tpu.memory_space<vmem>>, vector<128x256xf32>
    %48 = vector.extract_strided_slice %47 {offsets = [0, 0], sizes = [128, 128], strides = [1, 1]} : vector<128x256xf32> to vector<128x128xf32>
    %49 = vector.extract_strided_slice %47 {offsets = [0, 128], sizes = [128, 128], strides = [1, 1]} : vector<128x256xf32> to vector<128x128xf32>
    %c0_19 = arith.constant 0 : index
    %c0_20 = arith.constant 0 : index
    %50 = vector.load %arg7[%c0_19, %c0_20] : memref<128x128xf32, #tpu.memory_space<vmem>>, vector<128x128xf32>
    %cst_21 = arith.constant 0.000000e+00 : f32
    %51 = vector.broadcast %cst_21 : f32 to vector<64x128xf32>
    %52 = vector.extract_strided_slice %46 {offsets = [0, 0], sizes = [64, 32], strides = [1, 1]} : vector<64x128xf32> to vector<64x32xf32>
    %53 = vector.extract_strided_slice %48 {offsets = [0, 0], sizes = [128, 32], strides = [1, 1]} : vector<128x128xf32> to vector<128x32xf32>
    %54 = vector.extract_strided_slice %49 {offsets = [0, 0], sizes = [128, 32], strides = [1, 1]} : vector<128x128xf32> to vector<128x32xf32>
    %cst_22 = arith.constant dense<0.000000e+00> : vector<64x128xf32>
    %55 = tpu.matmul %52, %53, %cst_22 {dimension_numbers = #tpu.dot_dimension_numbers<[1], [1], [0], [0], [0, 0, 1, 0], [], []>} : vector<64x32xf32>, vector<128x32xf32>, vector<64x128xf32> -> vector<64x128xf32>
    %cst_23 = arith.constant dense<0xFF800000> : vector<64xf32>
    %56 = vector.multi_reduction <maximumf>, %55, %cst_23 [1] : vector<64x128xf32> to vector<64xf32>
    %57 = vector.shape_cast %56 : vector<64xf32> to vector<64x1xf32>
    %58 = vector.broadcast %57 : vector<64x1xf32> to vector<64x128xf32>
    %59 = arith.subf %55, %58 : vector<64x128xf32>
    %60 = math.exp %59 : vector<64x128xf32>
    %cst_24 = arith.constant dense<0.000000e+00> : vector<64xf32>
    %61 = vector.multi_reduction <add>, %60, %cst_24 [1] : vector<64x128xf32> to vector<64xf32>
    %62 = vector.shape_cast %61 : vector<64xf32> to vector<64x1xf32>
    %cst_25 = arith.constant dense<0.000000e+00> : vector<64x32xf32>
    %63 = tpu.matmul %60, %54, %cst_25 {dimension_numbers = #tpu.dot_dimension_numbers<[1], [0], [0], [1], [0, 0, 1, 1], [], []>} : vector<64x128xf32>, vector<128x32xf32>, vector<64x32xf32> -> vector<64x32xf32>
    %64 = tpu.reciprocal %62 {approx = true} : vector<64x1xf32> -> vector<64x1xf32>
    %65 = vector.broadcast %64 : vector<64x1xf32> to vector<64x32xf32>
    %66 = arith.mulf %63, %65 : vector<64x32xf32>
    %67 = vector.extract_strided_slice %50 {offsets = [0, 0], sizes = [32, 128], strides = [1, 1]} : vector<128x128xf32> to vector<32x128xf32>
    %cst_26 = arith.constant dense<0.000000e+00> : vector<64x128xf32>
    %68 = tpu.matmul %66, %67, %cst_26 {dimension_numbers = #tpu.dot_dimension_numbers<[1], [0], [0], [1], [0, 0, 1, 1], [], []>} : vector<64x32xf32>, vector<32x128xf32>, vector<64x128xf32> -> vector<64x128xf32>
    %69 = arith.addf %51, %68 : vector<64x128xf32>
    %70 = vector.extract_strided_slice %46 {offsets = [0, 32], sizes = [64, 32], strides = [1, 1]} : vector<64x128xf32> to vector<64x32xf32>
    %71 = vector.extract_strided_slice %48 {offsets = [0, 32], sizes = [128, 32], strides = [1, 1]} : vector<128x128xf32> to vector<128x32xf32>
    %72 = vector.extract_strided_slice %49 {offsets = [0, 32], sizes = [128, 32], strides = [1, 1]} : vector<128x128xf32> to vector<128x32xf32>
    %cst_27 = arith.constant dense<0.000000e+00> : vector<64x128xf32>
    %73 = tpu.matmul %70, %71, %cst_27 {dimension_numbers = #tpu.dot_dimension_numbers<[1], [1], [0], [0], [0, 0, 1, 0], [], []>} : vector<64x32xf32>, vector<128x32xf32>, vector<64x128xf32> -> vector<64x128xf32>
    %cst_28 = arith.constant dense<0xFF800000> : vector<64xf32>
    %74 = vector.multi_reduction <maximumf>, %73, %cst_28 [1] : vector<64x128xf32> to vector<64xf32>
    %75 = vector.shape_cast %74 : vector<64xf32> to vector<64x1xf32>
    %76 = vector.broadcast %75 : vector<64x1xf32> to vector<64x128xf32>
    %77 = arith.subf %73, %76 : vector<64x128xf32>
    %78 = math.exp %77 : vector<64x128xf32>
    %cst_29 = arith.constant dense<0.000000e+00> : vector<64xf32>
    %79 = vector.multi_reduction <add>, %78, %cst_29 [1] : vector<64x128xf32> to vector<64xf32>
    %80 = vector.shape_cast %79 : vector<64xf32> to vector<64x1xf32>
    %cst_30 = arith.constant dense<0.000000e+00> : vector<64x32xf32>
    %81 = tpu.matmul %78, %72, %cst_30 {dimension_numbers = #tpu.dot_dimension_numbers<[1], [0], [0], [1], [0, 0, 1, 1], [], []>} : vector<64x128xf32>, vector<128x32xf32>, vector<64x32xf32> -> vector<64x32xf32>
    %82 = tpu.reciprocal %80 {approx = true} : vector<64x1xf32> -> vector<64x1xf32>
    %83 = vector.broadcast %82 : vector<64x1xf32> to vector<64x32xf32>
    %84 = arith.mulf %81, %83 : vector<64x32xf32>
    %85 = vector.extract_strided_slice %50 {offsets = [32, 0], sizes = [32, 128], strides = [1, 1]} : vector<128x128xf32> to vector<32x128xf32>
    %cst_31 = arith.constant dense<0.000000e+00> : vector<64x128xf32>
    %86 = tpu.matmul %84, %85, %cst_31 {dimension_numbers = #tpu.dot_dimension_numbers<[1], [0], [0], [1], [0, 0, 1, 1], [], []>} : vector<64x32xf32>, vector<32x128xf32>, vector<64x128xf32> -> vector<64x128xf32>
    %87 = arith.addf %69, %86 : vector<64x128xf32>
    %88 = vector.extract_strided_slice %46 {offsets = [0, 64], sizes = [64, 32], strides = [1, 1]} : vector<64x128xf32> to vector<64x32xf32>
    %89 = vector.extract_strided_slice %48 {offsets = [0, 64], sizes = [128, 32], strides = [1, 1]} : vector<128x128xf32> to vector<128x32xf32>
    %90 = vector.extract_strided_slice %49 {offsets = [0, 64], sizes = [128, 32], strides = [1, 1]} : vector<128x128xf32> to vector<128x32xf32>
    %cst_32 = arith.constant dense<0.000000e+00> : vector<64x128xf32>
    %91 = tpu.matmul %88, %89, %cst_32 {dimension_numbers = #tpu.dot_dimension_numbers<[1], [1], [0], [0], [0, 0, 1, 0], [], []>} : vector<64x32xf32>, vector<128x32xf32>, vector<64x128xf32> -> vector<64x128xf32>
    %cst_33 = arith.constant dense<0xFF800000> : vector<64xf32>
    %92 = vector.multi_reduction <maximumf>, %91, %cst_33 [1] : vector<64x128xf32> to vector<64xf32>
    %93 = vector.shape_cast %92 : vector<64xf32> to vector<64x1xf32>
    %94 = vector.broadcast %93 : vector<64x1xf32> to vector<64x128xf32>
    %95 = arith.subf %91, %94 : vector<64x128xf32>
    %96 = math.exp %95 : vector<64x128xf32>
    %cst_34 = arith.constant dense<0.000000e+00> : vector<64xf32>
    %97 = vector.multi_reduction <add>, %96, %cst_34 [1] : vector<64x128xf32> to vector<64xf32>
    %98 = vector.shape_cast %97 : vector<64xf32> to vector<64x1xf32>
    %cst_35 = arith.constant dense<0.000000e+00> : vector<64x32xf32>
    %99 = tpu.matmul %96, %90, %cst_35 {dimension_numbers = #tpu.dot_dimension_numbers<[1], [0], [0], [1], [0, 0, 1, 1], [], []>} : vector<64x128xf32>, vector<128x32xf32>, vector<64x32xf32> -> vector<64x32xf32>
    %100 = tpu.reciprocal %98 {approx = true} : vector<64x1xf32> -> vector<64x1xf32>
    %101 = vector.broadcast %100 : vector<64x1xf32> to vector<64x32xf32>
    %102 = arith.mulf %99, %101 : vector<64x32xf32>
    %103 = vector.extract_strided_slice %50 {offsets = [64, 0], sizes = [32, 128], strides = [1, 1]} : vector<128x128xf32> to vector<32x128xf32>
    %cst_36 = arith.constant dense<0.000000e+00> : vector<64x128xf32>
    %104 = tpu.matmul %102, %103, %cst_36 {dimension_numbers = #tpu.dot_dimension_numbers<[1], [0], [0], [1], [0, 0, 1, 1], [], []>} : vector<64x32xf32>, vector<32x128xf32>, vector<64x128xf32> -> vector<64x128xf32>
    %105 = arith.addf %87, %104 : vector<64x128xf32>
    %106 = vector.extract_strided_slice %46 {offsets = [0, 96], sizes = [64, 32], strides = [1, 1]} : vector<64x128xf32> to vector<64x32xf32>
    %107 = vector.extract_strided_slice %48 {offsets = [0, 96], sizes = [128, 32], strides = [1, 1]} : vector<128x128xf32> to vector<128x32xf32>
    %108 = vector.extract_strided_slice %49 {offsets = [0, 96], sizes = [128, 32], strides = [1, 1]} : vector<128x128xf32> to vector<128x32xf32>
    %cst_37 = arith.constant dense<0.000000e+00> : vector<64x128xf32>
    %109 = tpu.matmul %106, %107, %cst_37 {dimension_numbers = #tpu.dot_dimension_numbers<[1], [1], [0], [0], [0, 0, 1, 0], [], []>} : vector<64x32xf32>, vector<128x32xf32>, vector<64x128xf32> -> vector<64x128xf32>
    %cst_38 = arith.constant dense<0xFF800000> : vector<64xf32>
    %110 = vector.multi_reduction <maximumf>, %109, %cst_38 [1] : vector<64x128xf32> to vector<64xf32>
    %111 = vector.shape_cast %110 : vector<64xf32> to vector<64x1xf32>
    %112 = vector.broadcast %111 : vector<64x1xf32> to vector<64x128xf32>
    %113 = arith.subf %109, %112 : vector<64x128xf32>
    %114 = math.exp %113 : vector<64x128xf32>
    %cst_39 = arith.constant dense<0.000000e+00> : vector<64xf32>
    %115 = vector.multi_reduction <add>, %114, %cst_39 [1] : vector<64x128xf32> to vector<64xf32>
    %116 = vector.shape_cast %115 : vector<64xf32> to vector<64x1xf32>
    %cst_40 = arith.constant dense<0.000000e+00> : vector<64x32xf32>
    %117 = tpu.matmul %114, %108, %cst_40 {dimension_numbers = #tpu.dot_dimension_numbers<[1], [0], [0], [1], [0, 0, 1, 1], [], []>} : vector<64x128xf32>, vector<128x32xf32>, vector<64x32xf32> -> vector<64x32xf32>
    %118 = tpu.reciprocal %116 {approx = true} : vector<64x1xf32> -> vector<64x1xf32>
    %119 = vector.broadcast %118 : vector<64x1xf32> to vector<64x32xf32>
    %120 = arith.mulf %117, %119 : vector<64x32xf32>
    %121 = vector.extract_strided_slice %50 {offsets = [96, 0], sizes = [32, 128], strides = [1, 1]} : vector<128x128xf32> to vector<32x128xf32>
    %cst_41 = arith.constant dense<0.000000e+00> : vector<64x128xf32>
    %122 = tpu.matmul %120, %121, %cst_41 {dimension_numbers = #tpu.dot_dimension_numbers<[1], [0], [0], [1], [0, 0, 1, 1], [], []>} : vector<64x32xf32>, vector<32x128xf32>, vector<64x128xf32> -> vector<64x128xf32>
    %123 = arith.addf %105, %122 : vector<64x128xf32>
    %c0_42 = arith.constant 0 : index
    %c0_43 = arith.constant 0 : index
    %124 = vector.load %arg8[%c0_42, %c0_43] : memref<1x128xf32, #tpu.memory_space<vmem>>, vector<1x128xf32>
    %125 = vector.shape_cast %124 : vector<1x128xf32> to vector<128xf32>
    %126 = vector.shape_cast %125 : vector<128xf32> to vector<1x128xf32>
    %127 = vector.broadcast %126 : vector<1x128xf32> to vector<64x128xf32>
    %128 = arith.addf %123, %127 : vector<64x128xf32>
    %129 = arith.addf %11, %128 : vector<64x128xf32>
    %c0_44 = arith.constant 0 : index
    %c0_45 = arith.constant 0 : index
    %130 = vector.load %arg15[%c0_44, %c0_45] : memref<1x128xf32, #tpu.memory_space<vmem>>, vector<1x128xf32>
    %131 = vector.shape_cast %130 : vector<1x128xf32> to vector<128xf32>
    %c0_46 = arith.constant 0 : index
    %c0_47 = arith.constant 0 : index
    %132 = vector.load %arg16[%c0_46, %c0_47] : memref<1x128xf32, #tpu.memory_space<vmem>>, vector<1x128xf32>
    %133 = vector.shape_cast %132 : vector<1x128xf32> to vector<128xf32>
    %cst_48 = arith.constant dense<0.000000e+00> : vector<64xf32>
    %134 = vector.multi_reduction <add>, %129, %cst_48 [1] : vector<64x128xf32> to vector<64xf32>
    %135 = vector.shape_cast %134 : vector<64xf32> to vector<64x1xf32>
    %cst_49 = arith.constant 1.280000e+02 : f32
    %136 = vector.broadcast %cst_49 : f32 to vector<64x1xf32>
    %137 = arith.divf %135, %136 : vector<64x1xf32>
    %138 = vector.broadcast %137 : vector<64x1xf32> to vector<64x128xf32>
    %139 = arith.subf %129, %138 : vector<64x128xf32>
    %140 = arith.mulf %139, %139 : vector<64x128xf32>
    %cst_50 = arith.constant dense<0.000000e+00> : vector<64xf32>
    %141 = vector.multi_reduction <add>, %140, %cst_50 [1] : vector<64x128xf32> to vector<64xf32>
    %142 = vector.shape_cast %141 : vector<64xf32> to vector<64x1xf32>
    %cst_51 = arith.constant 1.270000e+02 : f32
    %143 = vector.broadcast %cst_51 : f32 to vector<64x1xf32>
    %144 = arith.divf %142, %143 : vector<64x1xf32>
    %145 = math.sqrt %144 : vector<64x1xf32>
    %146 = vector.broadcast %137 : vector<64x1xf32> to vector<64x128xf32>
    %147 = arith.subf %129, %146 : vector<64x128xf32>
    %148 = vector.shape_cast %131 : vector<128xf32> to vector<1x128xf32>
    %149 = vector.broadcast %148 : vector<1x128xf32> to vector<64x128xf32>
    %150 = arith.mulf %149, %147 : vector<64x128xf32>
    %cst_52 = arith.constant 9.99999997E-7 : f32
    %151 = vector.broadcast %cst_52 : f32 to vector<64x1xf32>
    %152 = arith.addf %145, %151 : vector<64x1xf32>
    %153 = vector.broadcast %152 : vector<64x1xf32> to vector<64x128xf32>
    %154 = arith.divf %150, %153 : vector<64x128xf32>
    %155 = vector.shape_cast %133 : vector<128xf32> to vector<1x128xf32>
    %156 = vector.broadcast %155 : vector<1x128xf32> to vector<64x128xf32>
    %157 = arith.addf %154, %156 : vector<64x128xf32>
    %c0_53 = arith.constant 0 : index
    %c0_54 = arith.constant 0 : index
    %158 = vector.load %arg11[%c0_53, %c0_54] : memref<128x256xf32, #tpu.memory_space<vmem>>, vector<128x256xf32>
    %cst_55 = arith.constant dense<0.000000e+00> : vector<64x256xf32>
    %159 = tpu.matmul %157, %158, %cst_55 {dimension_numbers = #tpu.dot_dimension_numbers<[1], [0], [0], [1], [0, 0, 1, 1], [], []>} : vector<64x128xf32>, vector<128x256xf32>, vector<64x256xf32> -> vector<64x256xf32>
    %c0_56 = arith.constant 0 : index
    %c0_57 = arith.constant 0 : index
    %160 = vector.load %arg12[%c0_56, %c0_57] : memref<1x256xf32, #tpu.memory_space<vmem>>, vector<1x256xf32>
    %161 = vector.shape_cast %160 : vector<1x256xf32> to vector<256xf32>
    %162 = vector.shape_cast %161 : vector<256xf32> to vector<1x256xf32>
    %163 = vector.broadcast %162 : vector<1x256xf32> to vector<64x256xf32>
    %164 = arith.addf %159, %163 : vector<64x256xf32>
    %cst_58 = arith.constant 0.000000e+00 : f32
    %165 = vector.broadcast %cst_58 : f32 to vector<64x256xf32>
    %166 = arith.maximumf %164, %165 : vector<64x256xf32>
    %c0_59 = arith.constant 0 : index
    %c0_60 = arith.constant 0 : index
    %167 = vector.load %arg13[%c0_59, %c0_60] : memref<256x128xf32, #tpu.memory_space<vmem>>, vector<256x128xf32>
    %cst_61 = arith.constant dense<0.000000e+00> : vector<64x128xf32>
    %168 = tpu.matmul %166, %167, %cst_61 {dimension_numbers = #tpu.dot_dimension_numbers<[1], [0], [0], [1], [0, 0, 1, 1], [], []>} : vector<64x256xf32>, vector<256x128xf32>, vector<64x128xf32> -> vector<64x128xf32>
    %c0_62 = arith.constant 0 : index
    %c0_63 = arith.constant 0 : index
    %169 = vector.load %arg14[%c0_62, %c0_63] : memref<1x128xf32, #tpu.memory_space<vmem>>, vector<1x128xf32>
    %170 = vector.shape_cast %169 : vector<1x128xf32> to vector<128xf32>
    %171 = vector.shape_cast %170 : vector<128xf32> to vector<1x128xf32>
    %172 = vector.broadcast %171 : vector<1x128xf32> to vector<64x128xf32>
    %173 = arith.addf %168, %172 : vector<64x128xf32>
    %174 = arith.addf %129, %173 : vector<64x128xf32>
    %c0_64 = arith.constant 0 : index
    %c0_65 = arith.constant 0 : index
    %c0_66 = arith.constant 0 : index
    %175 = vector.load %arg17[%c0_64, %c0_65, %c0_66] : memref<1x64x128xf32, #tpu.memory_space<vmem>>, vector<1x64x128xf32>
    %176 = vector.shape_cast %175 : vector<1x64x128xf32> to vector<64x128xf32>
    %177 = vector.shape_cast %174 : vector<64x128xf32> to vector<1x64x128xf32>
    tpu.vector_store %arg17[%c0_64, %c0_65, %c0_66], %177 {strides = array<i32>} : memref<1x64x128xf32, #tpu.memory_space<vmem>>, vector<1x64x128xf32>,
    return
  }
  func.func @transform_0(%arg0: i32, %arg1: i32) -> (i32, i32, i32) {
    %c0_i32 = arith.constant 0 : i32
    %c0_i32_0 = arith.constant 0 : i32
    %c0_i32_1 = arith.constant 0 : i32
    return %arg0, %c0_i32, %c0_i32_0 : i32, i32, i32
  }
  func.func @transform_1(%arg0: i32, %arg1: i32) -> (i32, i32) {
    %c0_i32 = arith.constant 0 : i32
    %c0_i32_0 = arith.constant 0 : i32
    %c0_i32_1 = arith.constant 0 : i32
    return %c0_i32, %c0_i32_0 : i32, i32
  }
  func.func @transform_2(%arg0: i32, %arg1: i32) -> (i32, i32) {
    %c0_i32 = arith.constant 0 : i32
    %c0_i32_0 = arith.constant 0 : i32
    %c0_i32_1 = arith.constant 0 : i32
    return %c0_i32, %c0_i32_0 : i32, i32
  }
  func.func @transform_3(%arg0: i32, %arg1: i32) -> (i32, i32) {
    %c0_i32 = arith.constant 0 : i32
    %c0_i32_0 = arith.constant 0 : i32
    %c0_i32_1 = arith.constant 0 : i32
    return %c0_i32, %c0_i32_0 : i32, i32
  }
  func.func @transform_4(%arg0: i32, %arg1: i32) -> (i32, i32) {
    %c0_i32 = arith.constant 0 : i32
    %c0_i32_0 = arith.constant 0 : i32
    %c0_i32_1 = arith.constant 0 : i32
    return %c0_i32, %c0_i32_0 : i32, i32
  }
  func.func @transform_5(%arg0: i32, %arg1: i32) -> (i32, i32) {
    %c0_i32 = arith.constant 0 : i32
    %c0_i32_0 = arith.constant 0 : i32
    %c0_i32_1 = arith.constant 0 : i32
    return %c0_i32, %c0_i32_0 : i32, i32
  }
  func.func @transform_6(%arg0: i32, %arg1: i32) -> (i32, i32) {
    %c0_i32 = arith.constant 0 : i32
    %c0_i32_0 = arith.constant 0 : i32
    %c0_i32_1 = arith.constant 0 : i32
    return %c0_i32, %c0_i32_0 : i32, i32
  }
  func.func @transform_7(%arg0: i32, %arg1: i32) -> (i32, i32) {
    %c0_i32 = arith.constant 0 : i32
    %c0_i32_0 = arith.constant 0 : i32
    %c0_i32_1 = arith.constant 0 : i32
    return %c0_i32, %c0_i32_0 : i32, i32
  }
  func.func @transform_8(%arg0: i32, %arg1: i32) -> (i32, i32) {
    %c0_i32 = arith.constant 0 : i32
    %c0_i32_0 = arith.constant 0 : i32
    %c0_i32_1 = arith.constant 0 : i32
    return %c0_i32, %c0_i32_0 : i32, i32
  }
  func.func @transform_9(%arg0: i32, %arg1: i32) -> (i32, i32) {
    %c0_i32 = arith.constant 0 : i32
    %c0_i32_0 = arith.constant 0 : i32
    %c0_i32_1 = arith.constant 0 : i32
    return %c0_i32, %c0_i32_0 : i32, i32
  }
  func.func @transform_10(%arg0: i32, %arg1: i32) -> (i32, i32) {
    %c0_i32 = arith.constant 0 : i32
    %c0_i32_0 = arith.constant 0 : i32
    %c0_i32_1 = arith.constant 0 : i32
    return %c0_i32, %c0_i32_0 : i32, i32
  }
  func.func @transform_11(%arg0: i32, %arg1: i32) -> (i32, i32) {
    %c0_i32 = arith.constant 0 : i32
    %c0_i32_0 = arith.constant 0 : i32
    %c0_i32_1 = arith.constant 0 : i32
    return %c0_i32, %c0_i32_0 : i32, i32
  }
  func.func @transform_12(%arg0: i32, %arg1: i32) -> (i32, i32) {
    %c0_i32 = arith.constant 0 : i32
    %c0_i32_0 = arith.constant 0 : i32
    %c0_i32_1 = arith.constant 0 : i32
    return %c0_i32, %c0_i32_0 : i32, i32
  }
  func.func @transform_13(%arg0: i32, %arg1: i32) -> (i32, i32) {
    %c0_i32 = arith.constant 0 : i32
    %c0_i32_0 = arith.constant 0 : i32
    %c0_i32_1 = arith.constant 0 : i32
    return %c0_i32, %c0_i32_0 : i32, i32
  }
  func.func @transform_14(%arg0: i32, %arg1: i32) -> (i32, i32) {
    %c0_i32 = arith.constant 0 : i32
    %c0_i32_0 = arith.constant 0 : i32
    %c0_i32_1 = arith.constant 0 : i32
    return %c0_i32, %c0_i32_0 : i32, i32
  }
  func.func @transform_15(%arg0: i32, %arg1: i32) -> (i32, i32, i32) {
    %c0_i32 = arith.constant 0 : i32
    %c0_i32_0 = arith.constant 0 : i32
    return %arg0, %arg1, %c0_i32 : i32, i32, i32
  }
}

</mosaic_0001>

<bundles_post_ra>
// kernel: tpu_custom_call.1
= control target key start
LH: loop header
LB: loop body
LE: loop exit
PB: predicated region body
PF: predicated region fallthrough
CT: control target
= control target key end

     0   :  { %s7421_s0 = inlined_call_operand.hbm [shape: f32[2,128,128], index: 0, kind: input, shape index: {}]   ;;  %s7422_s1 = inlined_call_operand.hbm [shape: f32[128,128], index: 1, kind: input, shape index: {}]   ;;  %s7423_s2 = inlined_call_operand.hbm [shape: f32[1,128], index: 2, kind: input, shape index: {}]   ;;  %s7424_s3 = inlined_call_operand.hbm [shape: f32[128,256], index: 3, kind: input, shape index: {}]   ;;  %s7425_s4 = inlined_call_operand.vmem [shape: f32[1,256], index: 4, kind: input, shape index: {}]   ;;  %s7426_s5 = inlined_call_operand.hbm [shape: f32[128,128], index: 5, kind: input, shape index: {}]   ;;  %s7427_s6 = inlined_call_operand.vmem [shape: f32[1,128], index: 6, kind: input, shape index: {}]   ;;  %s7428_s7 = inlined_call_operand.vmem [shape: f32[1,128], index: 7, kind: input, shape index: {}]   ;;  %s7429_s8 = inlined_call_operand.vmem [shape: f32[1,128], index: 8, kind: input, shape index: {}]   ;;  %s7430_s9 = inlined_call_operand.hbm [shape: f32[128,256], index: 9, kind: input, shape index: {}]   ;;  %s7431_s10 = inlined_call_operand.vmem [shape: f32[1,256], index: 10, kind: input, shape index: {}]   ;;  %s7432_s11 = inlined_call_operand.hbm [shape: f32[256,128], index: 11, kind: input, shape index: {}]   ;;  %s7433_s12 = inlined_call_operand.vmem [shape: f32[1,128], index: 12, kind: input, shape index: {}]   ;;  %s7434_s13 = inlined_call_operand.vmem [shape: f32[1,128], index: 13, kind: input, shape index: {}]   ;;  %s7435_s14 = inlined_call_operand.vmem [shape: f32[1,128], index: 14, kind: input, shape index: {}]   ;;  %s7436_s15 = inlined_call_operand.hbm [shape: f32[2,128,128], index: 15, kind: output, shape index: {}]  }
   0x1   :  { %7447 = sst [smem:[#allocation26_spill]] %s7421_s0 }
   0x2   :  { %7448 = sst [smem:[#allocation27_spill]] %s7422_s1 }
   0x3   :  { %7449 = sst [smem:[#allocation28_spill]] %s7423_s2 }
   0x4   :  { %7450 = sst [smem:[#allocation29_spill]] %s7424_s3 }
   0x5   :  { %7451 = sst [smem:[#allocation30_spill]] %s7425_s4 }
   0x6   :  { %7452 = sst [smem:[#allocation31_spill]] %s7426_s5 }
   0x7   :  { %7453 = sst [smem:[#allocation32_spill]] %s7427_s6 }
   0x8   :  { %7454 = sst [smem:[#allocation33_spill]] %s7428_s7 }
   0x9   :  { %7455 = sst [smem:[#allocation34_spill]] %s7429_s8 }
   0xa   :  { %7456 = sst [smem:[#allocation35_spill]] %s7430_s9 }
   0xb   :  { %7457 = sst [smem:[#allocation36_spill]] %s7431_s10 }
   0xc   :  { %7458 = sst [smem:[#allocation37_spill]] %s7432_s11 }
   0xd   :  { %7459 = sst [smem:[#allocation38_spill]] %s7433_s12 }
   0xe   :  { %7460 = sst [smem:[#allocation39_spill]] %s7434_s13 }
   0xf   :  { %7461 = sst [smem:[#allocation40_spill]] %s7435_s14 }
  0x10   :  { %7462 = sst [smem:[#allocation41_spill]] %s7436_s15 }
  0x11   :  { %20 = vsyncpa [#allocation4], 0 }
  0x12   :  { %22 = vsyncpa [#allocation4 + $0x1], 0 }
  0x13   :  { %23 = vsyncpa [#allocation7], 0 }
  0x14   :  { %24 = vsyncpa [#allocation10], 0 }
  0x15   :  { %25 = vsyncpa [#allocation13], 0 }
  0x16   :  { %26 = vsyncpa [#allocation5], 0 }
  0x17   :  { %28 = vsyncpa [#allocation5 + $0x1], 0  ;;  %s5332_s18 = smov 0   ;;  %s5334_s19 = smov 0  }
  0x18   :  { %s5336_s20 = smov 0   ;;  %s5338_s21 = smov 0  }
  0x19   :  { %s5340_s22 = smov 0   ;;  %s5342_s23 = smov 0  }
  0x1a   :  { %s5344_s24 = smov 0   ;;  %s5346_s25 = smov 0  }
  0x1b   :  { %s5348_s26 = smov 0   ;;  %s5350_s27 = smov 0  }
  0x1c   :  { %s5352_s28 = smov 0  }
  0x1d LB: > { %7463 = sst [smem:[#allocation21_spill]] %s5215_s24  ;;  %s7438_s29 = sadd.s32 4294967295, %s5231_s28   ;;  %s5231_s28 = sphi %s5352_s28, %s34_s28   ;;  %s5227_s27 = sphi %s5350_s27, %s7553_s27   ;;  %s5223_s26 = sphi %s5348_s26, %s7552_s26   ;;  %s5219_s25 = sphi %s5346_s25, %s7551_s25   ;;  %s5215_s24 = sphi %s5344_s24, %s7550_s24   ;;  %s5211_s23 = sphi %s5342_s23, %s7549_s23   ;;  %s5207_s22 = sphi %s5340_s22, %s7548_s22   ;;  %s5203_s21 = sphi %s5338_s21, %s7547_s21   ;;  %s5199_s20 = sphi %s5336_s20, %s7546_s20   ;;  %s5195_s19 = sphi %s5334_s19, %s7545_s19   ;;  %s5191_s18 = sphi %s5332_s18, %s7544_s18  }
  0x1e   : > { %7464 = sst [smem:[#allocation22_spill]] %s5219_s25  ;;  %p4109_p0 = scmp.ge.s32.totalorder %s5231_s28, 1 }
  0x1f   : > { %p5391_p1 = scmp.eq.s32.totalorder %s7438_s29, 0  ;;  %p399_p2 = scmp.lt.s32.totalorder %s5231_s28, 5 }
  0x20   : > { %s7466_s1 = sld [smem:[#allocation27_spill]]  ;;  %s5233_s12 = smov [#allocation6]  }
  0x21   : > { %s7465_s30 = scalar_select %p5391_p1, 1, 0 }
  0x22   : > { %p5399_p3 = pnand %p4109_p0, %p399_p2  ;;  %s412_s10 = sshll.u32 %s5233_s12, 4  ;;  %s413_s10 = int_to_ptr.vmem [resolvable:$true] %s412_s10 }
  0x23   : > { %s7470_s3 = sld [smem:[#allocation29_spill]]  ;;  %s5234_s17 = smov [#allocation9]  }
  0x24   : > { %s7467_s25 = scalar_select %p5399_p3, 1, 0 }
  0x25   : > { %p4342_p4 = pneg %p5399_p3  ;;  %s7443_s6 = smov 128  }
  0x26   : > { %s410_s15 = sshll.u32 %s7466_s1, 4  ;;  %7468 = sst [smem:[#allocation23_spill]] %s7467_s25  ;;  %s411_s15 = int_to_ptr.hbm [resolvable:$true] %s410_s15 }
  0x27   : > { %p5407_p5 = pnand %p4342_p4, %p5391_p1  ;;  %s438_s1 = sshll.u32 %s5234_s17, 4  ;;  %s439_s1 = int_to_ptr.vmem [resolvable:$true] %s438_s1 }
  0x28   : > { %s7444_s12 = smov 8   ;;  %s7471_s9 = sld [smem:[#allocation35_spill]] }
  0x29   : > { %s436_s16 = sshll.u32 %s7470_s3, 4  ;;  %s5237_s13 = smov 256   ;;  %s437_s16 = int_to_ptr.hbm [resolvable:$true] %s436_s16 }
  0x2a   : > { %4345 = dma.hbm_to_vmem [thread:$0]  (!%p5407_p5), %s411_s15, 2048, %s413_s10, [#allocation7], %s7443_s6, %s7443_s6, %s7444_s12  }
  0x2b   : > { %s5238_s14 = smov 16   ;;  %s5239_s17 = smov [#allocation12]  }
  0x2c   : > { %4351 = dma.hbm_to_vmem [thread:$0]  (!%p5407_p5), %s437_s16, 4096, %s439_s1, [#allocation10], %s5237_s13, %s5237_s13, %s5238_s14  }
  0x2d   : > { %s478_s3 = sshll.u32 %s5239_s17, 4  ;;  %s7472_s2 = sld [smem:[#allocation28_spill]]  ;;  %s479_s3 = int_to_ptr.vmem [resolvable:$true] %s478_s3 }
  0x2e   : > { %s476_s8 = sshll.u32 %s7471_s9, 4  ;;  %s7473_s5 = sld [smem:[#allocation31_spill]]  ;;  %s477_s8 = int_to_ptr.hbm [resolvable:$true] %s476_s8 }
  0x2f   : > { %4357 = dma.hbm_to_vmem [thread:$0]  (!%p5407_p5), %s477_s8, 4096, %s479_s3, [#allocation13], %s5237_s13, %s5237_s13, %s5238_s14  }
  0x30   : > { %s5240_s24 = smov [#allocation8]   ;;  %s5241_s7 = smov [#allocation11]  }
  0x31   : > { %s427_s1 = sshll.u32 %s5240_s24, 4  ;;  %s455_s25 = sshll.u32 %s5241_s7, 4  ;;  %s428_s1 = int_to_ptr.vmem [resolvable:$true] %s427_s1  ;;  %s456_s25 = int_to_ptr.vmem [resolvable:$true] %s455_s25 }
  0x32   : > { %s7474_s11 = sld [smem:[#allocation37_spill]]  ;;  %s7475_s13 = sadd.s32 4294967295, %s5231_s28  }
  0x33   : > { %s425_s0 = sshll.u32 %s7472_s2, 4  ;;  %p5439_p6 = scmp.eq.s32.totalorder %s7475_s13, 3  ;;  %s426_s0 = int_to_ptr.hbm [resolvable:$true] %s425_s0 }
  0x34   : > { %s453_s15 = sshll.u32 %s7473_s5, 4  ;;  %s4108_s4 = sadd.s32 4294967294, %s5231_s28   ;;  %s454_s15 = int_to_ptr.hbm [resolvable:$true] %s453_s15 }
  0x35   : > { %4348 = dma.hbm_to_vmem [thread:$0]  (!%p5407_p5), %s426_s0, 16, %s428_s1, [#allocation7]  }
  0x36   : > { %4354 = dma.hbm_to_vmem [thread:$0]  (!%p5407_p5), %s454_s15, 2048, %s456_s25, [#allocation10], %s7443_s6, %s7443_s6, %s7444_s12  }
  0x37   : > { %s5242_s0 = smov [#allocation14]   ;;  %s43_s10 = sadd.s32 1, %s5223_s26 }
  0x38   : > { %s493_s16 = sshll.u32 %s7474_s11, 4  ;;  %s495_s17 = sshll.u32 %s5242_s0, 4  ;;  %s494_s16 = int_to_ptr.hbm [resolvable:$true] %s493_s16  ;;  %s496_s17 = int_to_ptr.vmem [resolvable:$true] %s495_s17 }
  0x39   : > { %4360 = dma.hbm_to_vmem [thread:$0]  (!%p5407_p5), %s494_s16, 4096, %s496_s17, [#allocation13], %s7443_s6, %s7443_s6, %s7444_s12  }
  0x3a   : > { %p44_p7 = scmp.ge.s32.totalorder %s43_s10, 2  ;;  %s46_s15 = sadd.s32 1, %s5227_s27 }
  0x3b   : > { %s53_s24 = sadd.s32 1, %s5211_s23  ;;  %p60_p8 = scmp.ne.s32.totalorder %s5211_s23, %s5207_s22 }
  0x3c   : > { %s7555_s10 = smov (%p44_p7, %s43_s10), 0  ;;  %s7557_s15 = smov (!%p44_p7, %s46_s15), %s5227_s27 }
  0x3d   : > { %p61_p9 = scmp.eq.s32.totalorder %s5231_s28, 0  ;;  %p66_p10 = scmp.ne.s32.totalorder %s5207_s22, %s5203_s21 }
  0x3e   : > { %p48_p11 = scmp.ge.s32.totalorder %s7557_s15, 2  ;;  %s371_s29 = ssub.s32 %s5223_s26, %s7555_s10 }
  0x3f   : > { %p5469_p12 = por %p5391_p1, %p66_p10  ;;  %s375_s7 = sadd.s32 1, %s5199_s20 }
  0x40   : > { %s7559_s15 = smov (%p48_p11, %s7557_s15), 0  ;;  %p385_p13 = scmp.ne.s32.totalorder %s5199_s20, %s5195_s19 }
  0x41   : > { %7478 = sst [smem:[#allocation24_spill]] %s7559_s15  ;;  %p391_p0 = scmp.ne.s32.totalorder %s5195_s19, %s5191_s18 }
  0x42   : > { %s50_s21 = ssub.s32 %s5227_s27, %s7559_s15  ;;  %p392_p2 = scmp.eq.s32.totalorder %s4108_s4, 3 }
  0x43   : > { %p51_p4 = scmp.eq.s32.totalorder %s50_s21, 0  ;;  %s372_s25 = sor.u32 %s371_s29, %s50_s21 }
  0x44   : > { %p373_p5 = scmp.eq.s32.totalorder %s372_s25, 0  ;;  %p5484_p7 = por %p5439_p6, %p385_p13 }
  0x45   : > { %s5489_s8 = scalar_select %p51_p4, %s5211_s23, %s53_s24  }
  0x46   : > { %s5492_s16 = scalar_select %p373_p5, %s5199_s20, %s375_s7  }
  0x47   : > { %p62_p10 = por %p61_p9, %p60_p8  ;;  %p5499_p11 = por %p392_p2, %p391_p0 }
  0x48   : > { %s518_s0 = sand.u32 1, %s5211_s23   ;;  %s4265_s17 = sshll.u32 %s5227_s27, 7 }
  0x49   : > { %p4375_p1 = scmp.lt.s32.totalorder %s5231_s28, 4  ;;  %s4117_s4 = sshll.u32 %s518_s0, 7 }
  0x4a   : > { %s7481_s21 = sld [smem:[#allocation26_spill]]  ;;  %s522_s24 = scalar_lea.vmem [#allocation3], %s4117_s4 }
  0x4b   : > { %s530_s12 = sshll.u32 %s522_s24, 4  ;;  %p4362_p6 = pnand %p4375_p1, %p62_p10  ;;  %s531_s12 = int_to_ptr.vmem [resolvable:$true] %s530_s12 }
  0x4c   : > { %s519_s7 = scalar_lea.sflag [#allocation4], %s518_s0  ;;  %s7482_s2 = smov 8  }
  0x4d   : > { %s7483_s5 = smov 128  }
  0x4e   : > { %542 = sbr.rel (%p5399_p3) target bundleno = 2852 (0xb24), region = 80 }
  0x50   : > { %s527_s25 = scalar_lea.hbm %s7481_s21, %s4265_s17 }
  0x51   : > { %s528_s6 = sshll.u32 %s527_s25, 4  ;;  %s529_s6 = int_to_ptr.hbm [resolvable:$true] %s528_s6 }
  0x52   : > { %4364 = dma.hbm_to_vmem [thread:$0]  (!%p4362_p6), %s529_s6, 2048, %s531_s12, %s519_s7, %s7483_s5, %s7483_s5, %s7482_s2  }
  0x53   : > { %s544_s11 = sand.u32 1, %s5207_s22  }
  0x54   : > { %s4121_s15 = sshll.u32 %s544_s11, 7  ;;  %s545_s14 = scalar_lea.sflag [#allocation4], %s544_s11 }
  0x55   : > { %s5515_s17 = scalar_lea.vmem [#allocation3], %s4121_s15 }
  0x56   : > { %5170 = dma.done.wait (%p5469_p12), %s545_s14, 2048  }
  0x57   : > { %5172 = vsyncadd (%p5469_p12), %s545_s14, 4294965248  ;;  %p7485_p1 = scmp.ne.s32.totalorder %s7465_s30, 0 }
  0x59   : > { %5174 = dma.done.wait (%p7485_p1), [#allocation7], 2064  }
  0x5a   : > { %5176 = vsyncadd (%p7485_p1), [#allocation7], 4294965232 }
  0x5b   : > { %5178 = dma.done.wait (%p7485_p1), [#allocation10], 6144  }
  0x5c   : > { %5180 = vsyncadd (%p7485_p1), [#allocation10], 4294961152 }
  0x5d   : > { %5182 = dma.done.wait (%p7485_p1), [#allocation13], 8192  }
  0x5e   : > { %5184 = vsyncadd (%p7485_p1), [#allocation13], 4294959104  ;;  %s623_s2 = sand.u32 1, %s5195_s19   ;;  %s7486_s11 = sld [smem:[#allocation33_spill]] }
  0x5f   : > { %s4128_s5 = sshll.u32 %s623_s2, 6  ;;  %s7487_s1 = sld [smem:[#allocation34_spill]] }
  0x60   : > { %s5546_s0 = scalar_lea.vmem [#allocation15], %s4128_s5  ;;  %s7489_s4 = sld [smem:[#allocation21_spill]] }
  0x64   : > { %v5539_v0 = vld [vmem:[%s7486_s11] sm:$0x1] }
  0x65   : > { %v5544_v1 = vld [vmem:[%s7487_s1] sm:$0x1] }
  0x66   : > { %7488 = vst [vmem:[#allocation25_spill] sm:$0xff] %v5544_v1  ;;  %p4129_p3 = scmp.ne.s32.totalorder %s7489_s4, 0 }
  0x67   : > { %s7523_s21 = sld [smem:[#allocation30_spill]] (!%p4129_p3) }
  0x68   : > { %632 = sbr.rel (%p4129_p3) target bundleno = 670 (0x29e), region = 112 }
  0x6d   : > { %v642_v2 = vld [vmem:[%s5515_s17 + $0x48] sm:$0xff]  ;;  %v641_v3 = vld [vmem:[%s5515_s17 + $0x40] sm:$0xff]  ;;  %v5552_v4 = vld [vmem:[%s5515_s17 + $0x50] sm:$0xff]  ;;  %v5243_v15 = vmov 128.0  }
  0x6e   : > { %667 = vadd.xlane.f32.xlu1 %v642_v2  ;;  %665 = vadd.xlane.f32.xlu0 %v641_v3  ;;  %v634_v5 = vld [vmem:[%s5515_s17 + $0x8] sm:$0xff]  ;;  %v633_v6 = vld [vmem:[%s5515_s17] sm:$0xff]  ;;  %v5558_v7 = vld [vmem:[%s5515_s17 + $0x10] sm:$0xff]  ;;  %4490 = vrcp.f32 %v5243_v15 }
  0x6f   : > { %669 = vadd.xlane.f32.xlu2 %v5552_v4  ;;  %v5562_v8 = vld [vmem:[%s5515_s17 + $0x18] sm:$0xff]  ;;  %v5566_v10 = vld [vmem:[%s5515_s17 + $0x60] sm:$0xff]  ;;  %v5571_v11 = vld [vmem:[%s5515_s17 + $0x68] sm:$0xff] }
  0x70   : > { %v644_v9 = vld [vmem:[%s5515_s17 + $0x58] sm:$0xff]  ;;  %v637_v12 = vld [vmem:[%s5515_s17 + $0x20] sm:$0xff]  ;;  %v5575_v13 = vld [vmem:[%s5515_s17 + $0x28] sm:$0xff] }
  0x71   : > { %v5580_v14 = vld [vmem:[%s5515_s17 + $0x70] sm:$0xff]  ;;  %v5600_v36 = vld [vmem:[%s5515_s17 + $0x38] sm:$0xff] }
  0x72   : > { %v5603_v37 = vld [vmem:[%s5515_s17 + $0x30] sm:$0xff]  ;;  %v5619_v48 = vld [vmem:[%s5515_s17 + $0x78] sm:$0xff] }
  0x74   : > { %v4491_v16 = vpop.eup %4490 }
  0x75   : > { %v682_v17 = vmul.f32 128.0, %v4491_v16  ;;  %vm686_vm0 = vweird.f32 %v4491_v16 }
  0x76   : > { %651 = vadd.xlane.f32.xlu1 %v634_v5  ;;  %649 = vadd.xlane.f32.xlu0 %v633_v6 }
  0x77   : > { %653 = vadd.xlane.f32.xlu2 %v5558_v7  ;;  %v683_v18 = vsub.f32 1.0, %v682_v17  ;;  %v5244_v17 = vmov 127.0  }
  0x78   : > { %4492 = vrcp.f32 %v5244_v17 }
  0x79   : > { %v684_v19 = vmul.f32 %v4491_v16, %v683_v18 }
  0x7b   : > { %v685_v20 = vadd.f32 %v4491_v16, %v684_v19 }
  0x7d   : > { %v5583_v21 = vsel %vm686_vm0, %v4491_v16, %v685_v20  ;;  %v1307_v20 = vld [vmem:[#allocation9 + $0xf0] sm:$0xff] }
  0x7e   : > { %655 = vadd.xlane.f32.xlu1 %v5562_v8  ;;  %671 = vadd.xlane.f32.xlu0 %v644_v9  ;;  %v4493_v18 = vpop.eup %4492 }
  0x7f   : > { %673 = vadd.xlane.f32.xlu2 %v5566_v10  ;;  %v769_v19 = vmul.f32 127.0, %v4493_v18  ;;  %4266 = vmatpush.msra.mxu2 %v1307_v20  ;;  %vm773_vm1 = vweird.f32 %v4493_v18 }
  0x80   : > { %1315 = vmatpush.msra.mxu0 %v1307_v20 }
  0x86   : > { %675 = vadd.xlane.f32.xlu1 %v5571_v11  ;;  %657 = vadd.xlane.f32.xlu0 %v637_v12 }
  0x87   : > { %659 = vadd.xlane.f32.xlu2 %v5575_v13 }
  0x8e   : > { %677 = vadd.xlane.f32.xlu1 %v5580_v14 }
  0xe1   : > { %v668_v22 = vpop.xlane.xlu1 %667  ;;  %v666_v23 = vpop.xlane.xlu0 %665 }
  0xe2   : > { %v697_v24 = vmul.f32 %v5583_v21, %v668_v22  ;;  %v696_v25 = vmul.f32 %v5583_v21, %v666_v23  ;;  %v670_v26 = vpop.xlane.xlu2 %669  ;;  %v1308_v22 = vld [vmem:[#allocation9 + $0xf8] sm:$0xff]  ;;  %v1306_v23 = vld [vmem:[#allocation9 + $0xe8] sm:$0xff] }
  0xe3   : > { %v698_v47 = vmul.f32 %v5583_v21, %v670_v26  ;;  %4282 = vmatpush.msra.mxu3 %v1308_v22  ;;  %1380 = vmatpush.msra.mxu1 %v1308_v22  ;;  %v1281_v22 = vld [vmem:[#allocation9 + $0x20] sm:$0xff] }
  0xe4   : > { %v5587_v27 = vsub.f32 %v642_v2, %v697_v24  ;;  %v5589_v28 = vsub.f32 %v641_v3, %v696_v25  ;;  %v1303_v24 = vld [vmem:[#allocation9 + $0xd0] sm:$0xff]  ;;  %v1304_v25 = vld [vmem:[#allocation9 + $0xd8] sm:$0xff] }
  0xe5   : > { %v5627_v52 = vsub.f32 %v5552_v4, %v698_v47  ;;  %4283 = vmatpush.msra.mxu3 %v1306_v23  ;;  %1381 = vmatpush.msra.mxu1 %v1306_v23 }
  0xe6   : > { %v729_v29 = vmul.f32 %v5587_v27, %v5587_v27  ;;  %v728_v30 = vmul.f32 %v5589_v28, %v5589_v28 }
  0xe7   : > { %v730_v60 = vmul.f32 %v5627_v52, %v5627_v52  ;;  %4284 = vmatpush.msra.mxu3 %v1304_v25  ;;  %1382 = vmatpush.msra.mxu1 %v1304_v25  ;;  %v1279_v25 = vld [vmem:[#allocation9 + $0x10] sm:$0xff] }
  0xe8   : > { %754 = vadd.xlane.f32.xlu1 %v729_v29  ;;  %752 = vadd.xlane.f32.xlu0 %v728_v30  ;;  %v1301_v29 = vld [vmem:[#allocation9 + $0xc0] sm:$0xff]  ;;  %v1302_v30 = vld [vmem:[#allocation9 + $0xc8] sm:$0xff] }
  0xe9   : > { %v652_v31 = vpop.xlane.xlu1 %651  ;;  %v650_v32 = vpop.xlane.xlu0 %649  ;;  %4285 = vmatpush.msra.mxu3 %v1302_v30  ;;  %1383 = vmatpush.msra.mxu1 %v1302_v30  ;;  %v1277_v30 = vld [vmem:[#allocation9] sm:$0xff] }
  0xea   : > { %v688_v33 = vmul.f32 %v5583_v21, %v650_v32  ;;  %v689_v34 = vmul.f32 %v5583_v21, %v652_v31  ;;  %v654_v38 = vpop.xlane.xlu2 %653  ;;  %v1299_v31 = vld [vmem:[#allocation9 + $0xb0] sm:$0xff]  ;;  %v1300_v32 = vld [vmem:[#allocation9 + $0xb8] sm:$0xff] }
  0xeb   : > { %v690_v46 = vmul.f32 %v5583_v21, %v654_v38  ;;  %4286 = vmatpush.msra.mxu3 %v1300_v32  ;;  %1384 = vmatpush.msra.mxu1 %v1300_v32  ;;  %v1298_v38 = vld [vmem:[#allocation9 + $0xa8] sm:$0xff] }
  0xec   : > { %v5597_v35 = vsub.f32 %v633_v6, %v688_v33  ;;  %v5607_v40 = vsub.f32 %v634_v5, %v689_v34  ;;  %v1297_v34 = vld [vmem:[#allocation9 + $0xa0] sm:$0xff] }
  0xed   : > { %v5624_v51 = vsub.f32 %v5558_v7, %v690_v46  ;;  %4287 = vmatpush.msra.mxu3 %v1298_v38  ;;  %1385 = vmatpush.msra.mxu1 %v1298_v38 }
  0xee   : > { %v720_v39 = vmul.f32 %v5597_v35, %v5597_v35  ;;  %v721_v45 = vmul.f32 %v5607_v40, %v5607_v40 }
  0xef   : > { %v722_v57 = vmul.f32 %v5624_v51, %v5624_v51 }
  0xf0   : > { %663 = vadd.xlane.f32.xlu1 %v5600_v36  ;;  %661 = vadd.xlane.f32.xlu0 %v5603_v37 }
  0xf1   : > { %736 = vadd.xlane.f32.xlu2 %v720_v39  ;;  %v656_v41 = vpop.xlane.xlu1 %655  ;;  %v672_v42 = vpop.xlane.xlu0 %671  ;;  %v1295_v39 = vld [vmem:[#allocation9 + $0x90] sm:$0xff] }
  0xf2   : > { %v699_v43 = vmul.f32 %v5583_v21, %v672_v42  ;;  %v674_v50 = vpop.xlane.xlu2 %673  ;;  %v691_v59 = vmul.f32 %v5583_v21, %v656_v41  ;;  %v1296_v41 = vld [vmem:[#allocation9 + $0x98] sm:$0xff] }
  0xf3   : > { %v700_v58 = vmul.f32 %v5583_v21, %v674_v50  ;;  %4288 = vmatpush.msra.mxu3 %v1296_v41  ;;  %1386 = vmatpush.msra.mxu1 %v1296_v41 }
  0xf4   : > { %v5612_v44 = vsub.f32 %v644_v9, %v699_v43  ;;  %v5645_v63 = vsub.f32 %v5562_v8, %v691_v59  ;;  %v1293_v43 = vld [vmem:[#allocation9 + $0x80] sm:$0xff]  ;;  %v1288_v59 = vld [vmem:[#allocation9 + $0x58] sm:$0xff] }
  0xf5   : > { %v5642_v62 = vsub.f32 %v5566_v10, %v700_v58  ;;  %v1287_v58 = vld [vmem:[#allocation9 + $0x50] sm:$0xff] }
  0xf6   : > { %v731_v49 = vmul.f32 %v5612_v44, %v5612_v44  ;;  %v723_v10 = vmul.f32 %v5645_v63, %v5645_v63 }
  0xf7   : > { %v732_v6 = vmul.f32 %v5642_v62, %v5642_v62 }
  0xf8   : > { %738 = vadd.xlane.f32.xlu0 %v721_v45  ;;  %758 = vadd.xlane.f32.xlu1 %v731_v49  ;;  %v1294_v45 = vld [vmem:[#allocation9 + $0x88] sm:$0xff] }
  0xf9   : > { %679 = vadd.xlane.f32.xlu2 %v5619_v48  ;;  %v676_v53 = vpop.xlane.xlu1 %675  ;;  %v658_v54 = vpop.xlane.xlu0 %657  ;;  %4289 = vmatpush.msra.mxu3 %v1294_v45 }
  0xfa   : > { %v692_v55 = vmul.f32 %v5583_v21, %v658_v54  ;;  %v660_v3 = vpop.xlane.xlu2 %659  ;;  %v701_v9 = vmul.f32 %v5583_v21, %v676_v53  ;;  %v1291_v53 = vld [vmem:[#allocation9 + $0x70] sm:$0xff]  ;;  %v1292_v54 = vld [vmem:[#allocation9 + $0x78] sm:$0xff]  ;;  %1387 = vmatpush.msra.mxu1 %v1294_v45 }
  0xfb   : > { %v693_v7 = vmul.f32 %v5583_v21, %v660_v3  ;;  %4290 = vmatpush.msra.mxu3 %v1292_v54 }
  0xfc   : > { %v5631_v56 = vsub.f32 %v637_v12, %v692_v55  ;;  %v1289_v55 = vld [vmem:[#allocation9 + $0x60] sm:$0xff]  ;;  %1388 = vmatpush.msra.mxu1 %v1292_v54 }
  0xfd   : > { %v5660_v12 = vsub.f32 %v5575_v13, %v693_v7  ;;  %v770_v13 = vsub.f32 1.0, %v769_v19 }
  0xfe   : > { %v724_v61 = vmul.f32 %v5631_v56, %v5631_v56 }
  0xff   : > { %v725_v15 = vmul.f32 %v5660_v12, %v5660_v12  ;;  %v771_v26 = vmul.f32 %v4493_v18, %v770_v13  ;;  %v1282_v13 = vld [vmem:[#allocation9 + $0x28] sm:$0xff] }
 0x100   : > { %740 = vadd.xlane.f32.xlu0 %v722_v57  ;;  %744 = vadd.xlane.f32.xlu1 %v724_v61  ;;  %v1290_v57 = vld [vmem:[#allocation9 + $0x68] sm:$0xff] }
 0x101   : > { %756 = vadd.xlane.f32.xlu2 %v730_v60  ;;  %v678_v2 = vpop.xlane.xlu1 %677  ;;  %v772_v33 = vadd.f32 %v4493_v18, %v771_v26  ;;  %4291 = vmatpush.msra.mxu3 %v1290_v57  ;;  %v1285_v60 = vld [vmem:[#allocation9 + $0x40] sm:$0xff]  ;;  %v1286_v61 = vld [vmem:[#allocation9 + $0x48] sm:$0xff]  ;;  %v1280_v26 = vld [vmem:[#allocation9 + $0x18] sm:$0xff] }
 0x102   : > { %v702_v4 = vmul.f32 %v5583_v21, %v678_v2  ;;  %1389 = vmatpush.msra.mxu1 %v1290_v57 }
 0x103   : > { %v5669_v42 = vsel %vm773_vm1, %v4493_v18, %v772_v33  ;;  %4292 = vmatpush.msra.mxu3 %v1288_v59 }
 0x104   : > { %v5649_v5 = vsub.f32 %v5580_v14, %v702_v4  ;;  %v5663_v14 = vsub.f32 %v5571_v11, %v701_v9  ;;  %v1305_v11 = vld [vmem:[#allocation9 + $0xe0] sm:$0xff]  ;;  %1390 = vmatpush.msra.mxu1 %v1288_v59 }
 0x105   : > { %4267 = vmatpush.msra.mxu2 %v1305_v11  ;;  %1316 = vmatpush.msra.mxu0 %v1305_v11 }
 0x106   : > { %v734_v8 = vmul.f32 %v5649_v5, %v5649_v5  ;;  %v733_v16 = vmul.f32 %v5663_v14, %v5663_v14  ;;  %4293 = vmatpush.msra.mxu3 %v1286_v61  ;;  %1391 = vmatpush.msra.mxu1 %v1286_v61 }
 0x107   : > { %4268 = vmatpush.msra.mxu2 %v1303_v24  ;;  %1317 = vmatpush.msra.mxu0 %v1303_v24 }
 0x108   : > { %760 = vadd.xlane.f32.xlu0 %v732_v6  ;;  %764 = vadd.xlane.f32.xlu1 %v734_v8  ;;  %v1284_v8 = vld [vmem:[#allocation9 + $0x38] sm:$0xff] }
 0x109   : > { %742 = vadd.xlane.f32.xlu2 %v723_v10  ;;  %4269 = vmatpush.msra.mxu2 %v1301_v29  ;;  %v1283_v10 = vld [vmem:[#allocation9 + $0x30] sm:$0xff] }
 0x10a   : > { %1318 = vmatpush.msra.mxu0 %v1301_v29  ;;  %4294 = vmatpush.msra.mxu3 %v1284_v8 }
 0x10b   : > { %4270 = vmatpush.msra.mxu2 %v1299_v31  ;;  %1392 = vmatpush.msra.mxu1 %v1284_v8 }
 0x10c   : > { %1319 = vmatpush.msra.mxu0 %v1299_v31  ;;  %4295 = vmatpush.msra.mxu3 %v1282_v13  ;;  %v1278_v31 = vld [vmem:[#allocation9 + $0x8] sm:$0xff] }
 0x10d   : > { %4271 = vmatpush.msra.mxu2 %v1297_v34  ;;  %1393 = vmatpush.msra.mxu1 %v1282_v13 }
 0x10e   : > { %1320 = vmatpush.msra.mxu0 %v1297_v34  ;;  %4296 = vmatpush.msra.mxu3 %v1280_v26 }
 0x10f   : > { %4272 = vmatpush.msra.mxu2 %v1295_v39  ;;  %1394 = vmatpush.msra.mxu1 %v1280_v26 }
 0x110   : > { %746 = vadd.xlane.f32.xlu0 %v725_v15  ;;  %1321 = vmatpush.msra.mxu0 %v1295_v39 }
 0x111   : > { %762 = vadd.xlane.f32.xlu2 %v733_v16  ;;  %4273 = vmatpush.msra.mxu2 %v1293_v43 }
 0x112   : > { %1322 = vmatpush.msra.mxu0 %v1293_v43  ;;  %4297 = vmatpush.msra.mxu3 %v1278_v31 }
 0x113   : > { %4274 = vmatpush.msra.mxu2 %v1291_v53  ;;  %1395 = vmatpush.msra.mxu1 %v1278_v31 }
 0x114   : > { %1323 = vmatpush.msra.mxu0 %v1291_v53 }
 0x115   : > { %4275 = vmatpush.msra.mxu2 %v1289_v55 }
 0x116   : > { %1324 = vmatpush.msra.mxu0 %v1289_v55  ;;  %v5707_v55 = vperm.slane %v5539_v0, 0 }
 0x117   : > { %4276 = vmatpush.msra.mxu2 %v1287_v58 }
 0x118   : > { %1325 = vmatpush.msra.mxu0 %v1287_v58 }
 0x119   : > { %4277 = vmatpush.msra.mxu2 %v1285_v60 }
 0x11a   : > { %1326 = vmatpush.msra.mxu0 %v1285_v60 }
 0x11b   : > { %4278 = vmatpush.msra.mxu2 %v1283_v10 }
 0x11c   : > { %1327 = vmatpush.msra.mxu0 %v1283_v10 }
 0x11d   : > { %4279 = vmatpush.msra.mxu2 %v1281_v22 }
 0x11e   : > { %1328 = vmatpush.msra.mxu0 %v1281_v22 }
 0x11f   : > { %4280 = vmatpush.msra.mxu2 %v1279_v25 }
 0x120   : > { %1329 = vmatpush.msra.mxu0 %v1279_v25 }
 0x121   : > { %4281 = vmatpush.msra.mxu2 %v1277_v30 }
 0x122   : > { %1330 = vmatpush.msra.mxu0 %v1277_v30 }
 0x15b   : > { %v755_v46 = vpop.xlane.xlu1 %754  ;;  %v753_v47 = vpop.xlane.xlu0 %752 }
 0x15c   : > { %v5672_v49 = vmul.f32 %v5669_v42, %v755_v46  ;;  %v5675_v50 = vmul.f32 %v5669_v42, %v753_v47 }
 0x15e   : > { %4494 = vrsqrt.f32 %v5672_v49  ;;  %vm894_vm2 = vcmp.eq.f32.partialorder %v5675_v50, inf  ;;  %vm906_vm3 = vcmp.eq.f32.partialorder %v5672_v49, inf  ;;  %v897_v61 = vand.u32 2147483648, %v5675_v50 }
 0x15f   : > { %4496 = vrsqrt.f32 %v5675_v50  ;;  %vm896_vm4 = vcmp.eq.f32.partialorder %v5675_v50, 0.0  ;;  %vm908_vm5 = vcmp.eq.f32.partialorder %v5672_v49, 0.0 }
 0x163   : > { %v664_v2 = vpop.xlane.xlu1 %663  ;;  %v662_v3 = vpop.xlane.xlu0 %661 }
 0x164   : > { %v4495_v4 = vpop.eup %4494  ;;  %v695_v6 = vmul.f32 %v5583_v21, %v664_v2  ;;  %v737_v7 = vpop.xlane.xlu2 %736  ;;  %v694_v9 = vmul.f32 %v5583_v21, %v662_v3 }
 0x165   : > { %v4497_v15 = vpop.eup %4496  ;;  %v900_v16 = vmul.f32 %v4495_v4, %v5672_v49  ;;  %v5683_v17 = vmul.f32 %v5669_v42, %v737_v7 }
 0x166   : > { %v888_v18 = vmul.f32 %v4497_v15, %v5675_v50  ;;  %v5687_v19 = vsub.f32 %v5600_v36, %v695_v6  ;;  %v5690_v20 = vsub.f32 %v5603_v37, %v694_v9 }
 0x167   : > { %v901_v11 = vmul.f32 %v4495_v4, %v900_v16  ;;  %4498 = vrsqrt.f32 %v5683_v17  ;;  %vm798_vm6 = vcmp.eq.f32.partialorder %v5683_v17, inf  ;;  %vm800_vm7 = vcmp.eq.f32.partialorder %v5683_v17, 0.0 }
 0x168   : > { %v889_v23 = vmul.f32 %v4497_v15, %v888_v18  ;;  %v727_v24 = vmul.f32 %v5687_v19, %v5687_v19  ;;  %v726_v37 = vmul.f32 %v5690_v20, %v5690_v20 }
 0x169   : > { %v902_v36 = vmul.f32 0.5, %v901_v11 }
 0x16a   : > { %v890_v29 = vmul.f32 0.5, %v889_v23  ;;  %750 = vadd.xlane.f32.xlu1 %v727_v24  ;;  %748 = vadd.xlane.f32.xlu2 %v726_v37 }
 0x16b   : > { %v903_v32 = vsub.f32 1.5, %v902_v36  ;;  %v759_v33 = vpop.xlane.xlu1 %758  ;;  %v739_v34 = vpop.xlane.xlu0 %738  ;;  %v5751_v36 = vmul.f32 %v5707_v55, %v5607_v40  ;;  %v801_v40 = vand.u32 2147483648, %v5683_v17 }
 0x16c   : > { %v891_v38 = vsub.f32 1.5, %v890_v29  ;;  %v680_v39 = vpop.xlane.xlu2 %679  ;;  %v5698_v41 = vmul.f32 %v5669_v42, %v759_v33  ;;  %v5701_v43 = vmul.f32 %v5669_v42, %v739_v34  ;;  %v5760_v29 = vmul.f32 %v5707_v55, %v5597_v35 }
 0x16d   : > { %v4499_v45 = vpop.eup %4498  ;;  %v904_v46 = vmul.f32 %v4495_v4, %v903_v32  ;;  %v703_v47 = vmul.f32 %v5583_v21, %v680_v39  ;;  %v5772_v35 = vmul.f32 %v5707_v55, %v5645_v63  ;;  %v5776_v34 = vmul.f32 %v5707_v55, %v5624_v51 }
 0x16e   : > { %v892_v53 = vmul.f32 %v4497_v15, %v891_v38  ;;  %v792_v54 = vmul.f32 %v4499_v45, %v5683_v17  ;;  %4500 = vrsqrt.f32 %v5698_v41  ;;  %v5727_v15 = vmul.f32 %v5707_v55, %v5587_v27 }
 0x16f   : > { %v905_v57 = vmul.f32 %v904_v46, %v5672_v49  ;;  %v5711_v58 = vsub.f32 %v5619_v48, %v703_v47  ;;  %4502 = vrsqrt.f32 %v5701_v43  ;;  %v909_v48 = vand.u32 2147483648, %v5672_v49 }
 0x170   : > { %v893_v21 = vmul.f32 %v892_v53, %v5675_v50  ;;  %v793_v59 = vmul.f32 %v4499_v45, %v792_v54  ;;  %v5787_v63 = vperm.slane %v5544_v1, 0  ;;  %vm810_vm10 = vcmp.eq.f32.partialorder %v5701_v43, inf }
 0x171   : > { %v735_v60 = vmul.f32 %v5711_v58, %v5711_v58  ;;  %v907_v2 = vsel %vm906_vm3, %v5672_v49, %v905_v57  ;;  %v5737_v49 = vmul.f32 %v5707_v55, %v5589_v28  ;;  %v5755_v28 = vmul.f32 %v5707_v55, %v5627_v52 }
 0x172   : > { %v794_v3 = vmul.f32 0.5, %v793_v59  ;;  %v895_v4 = vsel %vm894_vm2, %v5675_v50, %v893_v21  ;;  %v910_v10 = vsel %vm908_vm5, %v909_v48, %v907_v2  ;;  %vm812_vm12 = vcmp.eq.f32.partialorder %v5701_v43, 0.0 }
 0x173   : > { %766 = vadd.xlane.f32.xlu0 %v735_v60  ;;  %v745_v6 = vpop.xlane.xlu1 %744  ;;  %v741_v7 = vpop.xlane.xlu0 %740  ;;  %v898_v9 = vsel %vm896_vm4, %v897_v61, %v895_v4  ;;  %v5747_v26 = vadd.f32 1e-06, %v910_v10 }
 0x174   : > { %v4501_v8 = vpop.eup %4500  ;;  %v795_v16 = vsub.f32 1.5, %v794_v3  ;;  %v757_v18 = vpop.xlane.xlu2 %756  ;;  %v5730_v22 = vmul.f32 %v5669_v42, %v745_v6  ;;  %v5733_v13 = vmul.f32 %v5669_v42, %v741_v7  ;;  %v5743_v27 = vadd.f32 1e-06, %v898_v9 }
 0x175   : > { %v4503_v50 = vpop.eup %4502  ;;  %v924_v11 = vmul.f32 %v4501_v8, %v5698_v41  ;;  %v5741_v23 = vmul.f32 %v5669_v42, %v757_v18  ;;  %vm1158_vm13 = vweird.f32 %v5747_v26 }
 0x176   : > { %v796_v24 = vmul.f32 %v4499_v45, %v795_v16  ;;  %v804_v25 = vmul.f32 %v4503_v50, %v5701_v43  ;;  %4504 = vrsqrt.f32 %v5730_v22  ;;  %v1147_v60 = vand.u32 2147483647, %v5743_v27 }
 0x177   : > { %v925_v37 = vmul.f32 %v4501_v8, %v924_v11  ;;  %4506 = vrsqrt.f32 %v5741_v23  ;;  %vm1143_vm8 = vweird.f32 %v5743_v27  ;;  %v1149_v3 = vand.u32 2147483648, %v5743_v27 }
 0x178   : > { %v797_v30 = vmul.f32 %v796_v24, %v5683_v17  ;;  %v805_v31 = vmul.f32 %v4503_v50, %v804_v25  ;;  %4508 = vrsqrt.f32 %v5733_v13  ;;  %vm5812_vm9 = vcmp.eq.f32.partialorder %v1147_v60, 8.507059e+37 }
 0x179   : > { %v926_v32 = vmul.f32 0.5, %v925_v37  ;;  %4510 = vrcp.f32 %v5743_v27 }
 0x17a   : > { %v806_v52 = vmul.f32 0.5, %v805_v31  ;;  %v799_v33 = vsel %vm798_vm6, %v5683_v17, %v797_v30  ;;  %4512 = vrcp.f32 %v5747_v26  ;;  %v1150_v31 = vor.u32 1.1754944e-38, %v1149_v3 }
 0x17b   : > { %v927_v38 = vsub.f32 1.5, %v926_v32  ;;  %v765_v39 = vpop.xlane.xlu1 %764  ;;  %v761_v45 = vpop.xlane.xlu0 %760  ;;  %v802_v46 = vsel %vm800_vm7, %v801_v40, %v799_v33  ;;  %vm822_vm6 = vcmp.eq.f32.partialorder %v5733_v13, inf  ;;  %vm824_vm7 = vcmp.eq.f32.partialorder %v5733_v13, 0.0 }
 0x17c   : > { %v5778_v47 = vpop.eup %4504  ;;  %v807_v53 = vsub.f32 1.5, %v806_v52  ;;  %v743_v54 = vpop.xlane.xlu2 %742  ;;  %v5781_v17 = vmul.f32 %v5669_v42, %v765_v39  ;;  %v5784_v57 = vmul.f32 %v5669_v42, %v761_v45  ;;  %v5797_v61 = vadd.f32 1e-06, %v802_v46 }
 0x17d   : > { %v5789_v21 = vpop.eup %4506  ;;  %v840_v51 = vmul.f32 %v5778_v47, %v5730_v22  ;;  %v5794_v59 = vmul.f32 %v5669_v42, %v743_v54  ;;  %v928_v6 = vmul.f32 %v4501_v8, %v927_v38  ;;  %v1162_v8 = vand.u32 2147483647, %v5747_v26 }
 0x17e   : > { %v4509_v2 = vpop.eup %4508  ;;  %v912_v48 = vmul.f32 %v5789_v21, %v5741_v23  ;;  %4514 = vrsqrt.f32 %v5781_v17  ;;  %v808_v16 = vmul.f32 %v4503_v50, %v807_v53  ;;  %vm1023_vm15 = vweird.f32 %v5797_v61 }
 0x17f   : > { %v4511_v4 = vpop.eup %4510  ;;  %v841_v7 = vmul.f32 %v5778_v47, %v840_v51  ;;  %v816_v9 = vmul.f32 %v4509_v2, %v5733_v13  ;;  %4516 = vrsqrt.f32 %v5794_v59  ;;  %v5820_v32 = vmul.f32 %v928_v6, %v5698_v41 }
 0x180   : > { %v5807_v10 = vpop.eup %4512  ;;  %v913_v18 = vmul.f32 %v5789_v21, %v912_v48  ;;  %4518 = vrsqrt.f32 %v5784_v57  ;;  %v1139_v11 = vmul.f32 %v4511_v4, %v5743_v27  ;;  %v809_v45 = vmul.f32 %v808_v16, %v5701_v43 }
 0x181   : > { %v817_v24 = vmul.f32 %v4509_v2, %v816_v9  ;;  %4520 = vrcp.f32 %v5797_v61  ;;  %v842_v37 = vmul.f32 0.5, %v841_v7  ;;  %v1154_v38 = vmul.f32 %v5807_v10, %v5747_v26 }
 0x182   : > { %v1140_v30 = vsub.f32 1.0, %v1139_v11  ;;  %v914_v40 = vmul.f32 0.5, %v913_v18  ;;  %vm1144_vm11 = vweird.f32 %v4511_v4  ;;  %v1027_v6 = vand.u32 2147483647, %v5797_v61 }
 0x183   : > { %v818_v52 = vmul.f32 0.5, %v817_v24  ;;  %v747_v33 = vpop.xlane.xlu0 %746  ;;  %v843_v9 = vsub.f32 1.5, %v842_v37  ;;  %vm1145_vm14 = vmor %vm1143_vm8, %vm1144_vm11  ;;  %v1155_v37 = vsub.f32 1.0, %v1154_v38  ;;  %vm5853_vm0 = vcmp.eq.f32.partialorder %v1162_v8, 8.507059e+37 }
 0x184   : > { %v5825_v39 = vpop.eup %4514  ;;  %v763_v46 = vpop.xlane.xlu2 %762  ;;  %v5829_v53 = vmul.f32 %v5669_v42, %v747_v33  ;;  %v1141_v54 = vmul.f32 %v4511_v4, %v1140_v30  ;;  %v915_v24 = vsub.f32 1.5, %v914_v40  ;;  %v1029_v27 = vand.u32 2147483648, %v5797_v61 }
 0x185   : > { %v4517_v51 = vpop.eup %4516  ;;  %v819_v60 = vsub.f32 1.5, %v818_v52  ;;  %v960_v48 = vmul.f32 %v5825_v39, %v5781_v17  ;;  %v5834_v3 = vmul.f32 %v5669_v42, %v763_v46  ;;  %vm1159_vm1 = vweird.f32 %v5807_v10 }
 0x186   : > { %v5838_v7 = vpop.eup %4518  ;;  %v828_v16 = vmul.f32 %v4517_v51, %v5794_v59  ;;  %4522 = vrsqrt.f32 %v5829_v53  ;;  %v1142_v18 = vadd.f32 %v4511_v4, %v1141_v54  ;;  %v844_v8 = vmul.f32 %v5778_v47, %v843_v9  ;;  %vm1160_vm4 = vmor %vm1158_vm13, %vm1159_vm1 }
 0x187   : > { %v5843_v11 = vpop.eup %4520  ;;  %v961_v30 = vmul.f32 %v5825_v39, %v960_v48  ;;  %v936_v52 = vmul.f32 %v5838_v7, %v5784_v57  ;;  %v820_v33 = vmul.f32 %v4509_v2, %v819_v60  ;;  %4524 = vrsqrt.f32 %v5834_v3 }
 0x188   : > { %v829_v46 = vmul.f32 %v4517_v51, %v828_v16  ;;  %v1146_v54 = vsel %vm1145_vm14, %v4511_v4, %v1142_v18  ;;  %v1019_v4 = vmul.f32 %v5843_v11, %v5797_v61  ;;  %vm5866_vm2 = vcmp.eq.f32.partialorder %v1027_v6, 8.507059e+37 }
 0x189   : > { %v937_v40 = vmul.f32 %v5838_v7, %v936_v52  ;;  %v1151_v48 = vsel %vm5812_vm9, %v1150_v31, %v1146_v54  ;;  %v962_v38 = vmul.f32 0.5, %v961_v30  ;;  %v1156_v25 = vmul.f32 %v5807_v10, %v1155_v37 }
 0x18a   : > { %v830_v2 = vmul.f32 0.5, %v829_v46  ;;  %v1152_v60 = vmul.f32 %v1151_v48, %v5737_v49  ;;  %v916_v52 = vmul.f32 %v5789_v21, %v915_v24  ;;  %v821_v46 = vmul.f32 %v820_v33, %v5733_v13 }
 0x18b   : > { %v938_v16 = vmul.f32 0.5, %v937_v40  ;;  %v1020_v49 = vsub.f32 1.0, %v1019_v4  ;;  %vm1024_vm3 = vweird.f32 %v5843_v11  ;;  %v1157_v47 = vadd.f32 %v5807_v10, %v1156_v25 }
 0x18c   : > { %v4523_v31 = vpop.eup %4522  ;;  %v1269_v30 = vadd.f32 %v5787_v63, %v1152_v60  ;;  %v831_v54 = vsub.f32 1.5, %v830_v2  ;;  %v963_v9 = vsub.f32 1.5, %v962_v38  ;;  %v811_v21 = vsel %vm810_vm10, %v5701_v43, %v809_v45  ;;  %vm1025_vm5 = vmor %vm1023_vm15, %vm1024_vm3 }
 0x18d   : > { %v852_v48 = vmul.f32 %v4523_v31, %v5829_v53  ;;  %v4525_v6 = vpop.eup %4524  ;;  %v1021_v37 = vmul.f32 %v5843_v11, %v1020_v49  ;;  %v813_v24 = vand.u32 2147483648, %v5701_v43  ;;  %v939_v33 = vsub.f32 1.5, %v938_v16 }
 0x18e   : > { %1355 = vmatmul.f32.vlgmr.msra.gmra.mxu2 %v1269_v30  ;;  %1420 = vmatmul.f32.vlgmr.msra.gmra.mxu3 %v1269_v30  ;;  %v948_v40 = vmul.f32 %v4525_v6, %v5834_v3  ;;  %v7496_v38 = vand.u32 2147483648, %v5747_v26  ;;  %v1030_v25 = vor.u32 1.1754944e-38, %v1029_v27  ;;  %v1161_v30 = vsel %vm1160_vm4, %v5807_v10, %v1157_v47 }
 0x18f   : > { %v853_v2 = vmul.f32 %v4523_v31, %v852_v48  ;;  %v1022_v4 = vadd.f32 %v5843_v11, %v1021_v37  ;;  %v814_v45 = vsel %vm812_vm12, %v813_v24, %v811_v21  ;;  %v832_v16 = vmul.f32 %v4517_v51, %v831_v54 }
 0x190   : > { %v1165_v60 = vor.u32 1.1754944e-38, %v7496_v38  ;;  %v949_v49 = vmul.f32 %v4525_v6, %v948_v40  ;;  %v1003_v37 = vadd.f32 1e-06, %v814_v45  ;;  %v940_v43 = vmul.f32 %v5838_v7, %v939_v33 }
 0x191   : > { %v854_v1 = vmul.f32 0.5, %v853_v2  ;;  %v1026_v48 = vsel %vm1025_vm5, %v5843_v11, %v1022_v4  ;;  %v917_v61 = vmul.f32 %v916_v52, %v5741_v23  ;;  %v5909_v11 = vmul.f32 %v844_v8, %v5730_v22 }
 0x192   : > { %v1166_v26 = vsel %vm5853_vm0, %v1165_v60, %v1161_v30  ;;  %v950_v10 = vmul.f32 0.5, %v949_v49  ;;  %v1031_v54 = vsel %vm5866_vm2, %v1030_v25, %v1026_v48  ;;  %4526 = vrcp.f32 %v1003_v37 }
 0x193   : > { %v1167_v27 = vmul.f32 %v1166_v26, %v5727_v15  ;;  %v855_v51 = vsub.f32 1.5, %v854_v1  ;;  %v1032_v47 = vmul.f32 %v1031_v54, %v5760_v29  ;;  %v833_v15 = vmul.f32 %v832_v16, %v5794_v59 }
 0x194   : > { %v951_v21 = vsub.f32 1.5, %v950_v10  ;;  %v823_v7 = vsel %vm822_vm6, %v5733_v13, %v821_v46  ;;  %v825_v18 = vand.u32 2147483648, %v5733_v13  ;;  %vm918_vm8 = vcmp.eq.f32.partialorder %v5741_v23, inf }
 0x195   : > { %v1270_v50 = vadd.f32 %v5787_v63, %v1167_v27  ;;  %v1261_v1 = vadd.f32 %v5787_v63, %v1032_v47  ;;  %v5918_v29 = vmul.f32 %v5825_v39, %v963_v9  ;;  %v5921_v8 = vmul.f32 %v940_v43, %v5784_v57 }
 0x196   : > { %v856_v52 = vmul.f32 %v4523_v31, %v855_v51  ;;  %v1042_v24 = vand.u32 2147483647, %v1003_v37  ;;  %v826_v46 = vsel %vm824_vm7, %v825_v18, %v823_v7  ;;  %v919_v33 = vsel %vm918_vm8, %v5741_v23, %v917_v61 }
 0x197   : > { %1358 = vmatmul.f32.gmra.mxu2 %v1270_v50  ;;  %1423 = vmatmul.f32.gmra.mxu3 %v1270_v50  ;;  %vm920_vm9 = vcmp.eq.f32.partialorder %v5741_v23, 0.0  ;;  %v921_v40 = vand.u32 2147483648, %v5741_v23  ;;  %v1044_v13 = vand.u32 2147483648, %v1003_v37  ;;  %v1004_v2 = vadd.f32 1e-06, %v826_v46 }
 0x198   : > { %1331 = vmatmul.f32.vlgmr.msra.gmra.mxu0 %v1261_v1  ;;  %1396 = vmatmul.f32.vlgmr.msra.gmra.mxu1 %v1261_v1  ;;  %vm834_vm10 = vcmp.eq.f32.partialorder %v5794_v59, inf  ;;  %vm836_vm11 = vcmp.eq.f32.partialorder %v5794_v59, 0.0  ;;  %v4527_v39 = vpop.eup %4526  ;;  %v952_v9 = vmul.f32 %v4525_v6, %v951_v21  ;;  %v837_v60 = vand.u32 2147483648, %v5794_v59 }
 0x199   : > { %v922_v38 = vsel %vm920_vm9, %v921_v40, %v919_v33  ;;  %v835_v31 = vsel %vm834_vm10, %v5794_v59, %v833_v15  ;;  %v1034_v4 = vmul.f32 %v4527_v39, %v1003_v37  ;;  %vm1038_vm12 = vweird.f32 %v1003_v37 }
 0x19a   : > { %4528 = vrcp.f32 %v1004_v2  ;;  %vm930_vm13 = vcmp.eq.f32.partialorder %v5698_v41, inf  ;;  %v1057_v25 = vand.u32 2147483647, %v1004_v2  ;;  %v1059_v23 = vand.u32 2147483648, %v1004_v2 }
 0x19b   : > { %v5931_v30 = vadd.f32 1e-06, %v922_v38  ;;  %v838_v45 = vsel %vm836_vm11, %v837_v60, %v835_v31  ;;  %v5934_v16 = vmul.f32 %v856_v52, %v5829_v53  ;;  %v1035_v49 = vsub.f32 1.0, %v1034_v4 }
 0x19c   : > { %vm1039_vm14 = vweird.f32 %v4527_v39  ;;  %v5936_v6 = vadd.f32 1e-06, %v838_v45  ;;  %v5939_v26 = vmul.f32 %v952_v9, %v5834_v3  ;;  %vm5941_vm15 = vcmp.eq.f32.partialorder %v1042_v24, 8.507059e+37 }
 0x19d   : > { %v1045_v48 = vor.u32 1.1754944e-38, %v1044_v13  ;;  %4530 = vrcp.f32 %v5931_v30  ;;  %v1036_v27 = vmul.f32 %v4527_v39, %v1035_v49  ;;  %vm1053_vm0 = vweird.f32 %v1004_v2  ;;  %vm5952_vm1 = vmor %vm1038_vm12, %vm1039_vm14 }
 0x19e   : > { %4532 = vrcp.f32 %v5936_v6  ;;  %v931_v43 = vsel %vm930_vm13, %v5698_v41, %v5820_v32  ;;  %vm5956_vm2 = vcmp.eq.f32.partialorder %v1057_v25, 8.507059e+37  ;;  %v1060_v54 = vor.u32 1.1754944e-38, %v1059_v23 }
 0x19f   : > { %vm932_vm3 = vcmp.eq.f32.partialorder %v5698_v41, 0.0  ;;  %v933_v61 = vand.u32 2147483648, %v5698_v41  ;;  %v1037_v50 = vadd.f32 %v4527_v39, %v1036_v27  ;;  %vm1173_vm4 = vweird.f32 %v5931_v30 }
 0x1a0   : > { %v4529_v47 = vpop.eup %4528  ;;  %v1177_v32 = vand.u32 2147483647, %v5931_v30  ;;  %v1179_v37 = vand.u32 2147483648, %v5931_v30  ;;  %vm1068_vm5 = vweird.f32 %v5936_v6  ;;  %v1072_v21 = vand.u32 2147483647, %v5936_v6 }
 0x1a1   : > { %v1049_v15 = vmul.f32 %v4529_v47, %v1004_v2  ;;  %vm846_vm6 = vcmp.eq.f32.partialorder %v5730_v22, inf  ;;  %v1041_v7 = vsel %vm5952_vm1, %v4527_v39, %v1037_v50  ;;  %vm1054_vm7 = vweird.f32 %v4529_v47 }
 0x1a2   : > { %v1074_v41 = vand.u32 2147483648, %v5936_v6  ;;  %v934_v1 = vsel %vm932_vm3, %v933_v61, %v931_v43  ;;  %v1046_v52 = vsel %vm5941_vm15, %v1045_v48, %v1041_v7  ;;  %v849_v33 = vand.u32 2147483648, %v5730_v22  ;;  %vm5990_vm10 = vmor %vm1053_vm0, %vm1054_vm7 }
 0x1a3   : > { %v4531_v18 = vpop.eup %4530  ;;  %v1050_v24 = vsub.f32 1.0, %v1049_v15  ;;  %v5973_v46 = vadd.f32 1e-06, %v934_v1  ;;  %v1047_v13 = vmul.f32 %v1046_v52, %v5751_v36  ;;  %v847_v39 = vsel %vm846_vm6, %v5730_v22, %v5909_v11 }
 0x1a4   : > { %v4533_v40 = vpop.eup %4532  ;;  %v1169_v9 = vmul.f32 %v4531_v18, %v5931_v30  ;;  %vm848_vm8 = vcmp.eq.f32.partialorder %v5730_v22, 0.0  ;;  %vm5981_vm9 = vcmp.eq.f32.partialorder %v1177_v32, 8.507059e+37  ;;  %vm1174_vm11 = vweird.f32 %v4531_v18 }
 0x1a5   : > { %v1051_v38 = vmul.f32 %v4529_v47, %v1050_v24  ;;  %v1064_v60 = vmul.f32 %v4533_v40, %v5936_v6  ;;  %4534 = vrcp.f32 %v5973_v46  ;;  %v1262_v4 = vadd.f32 %v5787_v63, %v1047_v13  ;;  %vm6005_vm15 = vmor %vm1173_vm4, %vm1174_vm11 }
 0x1a6   : > { %v1170_v11 = vsub.f32 1.0, %v1169_v9  ;;  %v1180_v22 = vor.u32 1.1754944e-38, %v1179_v37  ;;  %vm1069_vm12 = vweird.f32 %v4533_v40  ;;  %v850_v45 = vsel %vm848_vm8, %v849_v33, %v847_v39 }
 0x1a7   : > { %v1052_v25 = vadd.f32 %v4529_v47, %v1051_v38  ;;  %v1065_v23 = vsub.f32 1.0, %v1064_v60  ;;  %1334 = vmatmul.f32.gmra.mxu0 %v1262_v4  ;;  %1399 = vmatmul.f32.gmra.mxu1 %v1262_v4  ;;  %vm5994_vm13 = vcmp.eq.f32.partialorder %v1072_v21, 8.507059e+37  ;;  %v5998_v48 = vadd.f32 1e-06, %v850_v45  ;;  %vm6015_vm0 = vmor %vm1068_vm5, %vm1069_vm12 }
 0x1a8   : > { %v1171_v49 = vmul.f32 %v4531_v18, %v1170_v11  ;;  %vm942_vm14 = vcmp.eq.f32.partialorder %v5784_v57, inf  ;;  %v1075_v10 = vor.u32 1.1754944e-38, %v1074_v41  ;;  %v1192_v61 = vand.u32 2147483647, %v5973_v46 }
 0x1a9   : > { %v1056_v2 = vsel %vm5990_vm10, %v4529_v47, %v1052_v25  ;;  %v1066_v43 = vmul.f32 %v4533_v40, %v1065_v23  ;;  %vm1188_vm1 = vweird.f32 %v5973_v46  ;;  %4536 = vrcp.f32 %v5998_v48 }
 0x1aa   : > { %v1061_v50 = vsel %vm5956_vm2, %v1060_v54, %v1056_v2  ;;  %v1172_v32 = vadd.f32 %v4531_v18, %v1171_v49  ;;  %v1194_v21 = vand.u32 2147483648, %v5973_v46  ;;  %v943_v51 = vsel %vm942_vm14, %v5784_v57, %v5921_v8 }
 0x1ab   : > { %v4535_v30 = vpop.eup %4534  ;;  %v1062_v47 = vmul.f32 %v1061_v50, %v5776_v34  ;;  %v1067_v15 = vadd.f32 %v4533_v40, %v1066_v43  ;;  %vm944_vm2 = vcmp.eq.f32.partialorder %v5784_v57, 0.0  ;;  %v945_v7 = vand.u32 2147483648, %v5784_v57 }
 0x1ac   : > { %v1176_v6 = vsel %vm6005_vm15, %v4531_v18, %v1172_v32  ;;  %v1184_v54 = vmul.f32 %v4535_v30, %v5973_v46  ;;  %vm6035_vm3 = vcmp.eq.f32.partialorder %v1192_v61, 8.507059e+37  ;;  %vm1189_vm4 = vweird.f32 %v4535_v30 }
 0x1ad   : > { %v1263_v41 = vadd.f32 %v5787_v63, %v1062_v47  ;;  %v1181_v34 = vsel %vm5981_vm9, %v1180_v22, %v1176_v6  ;;  %v1071_v1 = vsel %vm6015_vm0, %v4533_v40, %v1067_v15  ;;  %v946_v33 = vsel %vm944_vm2, %v945_v7, %v943_v51  ;;  %vm6052_vm7 = vmor %vm1188_vm1, %vm1189_vm4 }
 0x1ae   : > { %v1182_v8 = vmul.f32 %v1181_v34, %v5755_v28  ;;  %v1076_v18 = vsel %vm5994_vm13, %v1075_v10, %v1071_v1  ;;  %v1185_v24 = vsub.f32 1.0, %v1184_v54  ;;  %vm858_vm5 = vcmp.eq.f32.partialorder %v5829_v53, inf }
 0x1af   : > { %v1077_v57 = vmul.f32 %v1076_v18, %v5772_v35  ;;  %vm860_vm6 = vcmp.eq.f32.partialorder %v5829_v53, 0.0  ;;  %v4537_v13 = vpop.eup %4536  ;;  %1337 = vmatmul.f32.gmra.mxu0 %v1263_v41  ;;  %1402 = vmatmul.f32.gmra.mxu1 %v1263_v41  ;;  %v6046_v39 = vadd.f32 1e-06, %v946_v33  ;;  %v859_v28 = vsel %vm858_vm5, %v5829_v53, %v5934_v16 }
 0x1b0   : > { %v1271_v40 = vadd.f32 %v5787_v63, %v1182_v8  ;;  %v1186_v9 = vmul.f32 %v4535_v30, %v1185_v24  ;;  %v1195_v38 = vor.u32 1.1754944e-38, %v1194_v21  ;;  %v1079_v31 = vmul.f32 %v4537_v13, %v5998_v48 }
 0x1b1   : > { %v1087_v60 = vand.u32 2147483647, %v5998_v48  ;;  %v861_v4 = vand.u32 2147483648, %v5829_v53  ;;  %vm1083_vm8 = vweird.f32 %v5998_v48  ;;  %v1089_v16 = vand.u32 2147483648, %v5998_v48 }
 0x1b2   : > { %1361 = vmatmul.f32.gmra.mxu2 %v1271_v40  ;;  %1426 = vmatmul.f32.gmra.mxu3 %v1271_v40  ;;  %v1187_v36 = vadd.f32 %v4535_v30, %v1186_v9  ;;  %4538 = vrcp.f32 %v6046_v39  ;;  %v1080_v46 = vsub.f32 1.0, %v1079_v31  ;;  %vm1084_vm9 = vweird.f32 %v4537_v13 }
 0x1b3   : > { %v862_v11 = vsel %vm860_vm6, %v861_v4, %v859_v28  ;;  %vm954_vm10 = vcmp.eq.f32.partialorder %v5834_v3, inf  ;;  %v997_v22 = vmul.f32 %v5707_v55, %v5612_v44  ;;  %v1264_v25 = vadd.f32 %v5787_v63, %v1077_v57  ;;  %vm6080_vm12 = vmor %vm1083_vm8, %vm1084_vm9 }
 0x1b4   : > { %v1191_v23 = vsel %vm6052_vm7, %v4535_v30, %v1187_v36  ;;  %v1007_v45 = vadd.f32 1e-06, %v862_v11  ;;  %v965_v49 = vmul.f32 %v5918_v29, %v5781_v17  ;;  %v1081_v2 = vmul.f32 %v4537_v13, %v1080_v46 }
 0x1b5   : > { %v1196_v59 = vsel %vm6035_vm3, %v1195_v38, %v1191_v23  ;;  %vm6074_vm11 = vcmp.eq.f32.partialorder %v1087_v60, 8.507059e+37  ;;  %v1090_v43 = vor.u32 1.1754944e-38, %v1089_v16  ;;  %v955_v29 = vsel %vm954_vm10, %v5834_v3, %v5939_v26 }
 0x1b6   : > { %v1197_v27 = vmul.f32 %v1196_v59, %v997_v22  ;;  %4540 = vrcp.f32 %v1007_v45  ;;  %v1082_v10 = vadd.f32 %v4537_v13, %v1081_v2  ;;  %vm956_vm13 = vcmp.eq.f32.partialorder %v5834_v3, 0.0 }
 0x1b7   : > { %v957_v61 = vand.u32 2147483648, %v5834_v3  ;;  %vm966_vm14 = vcmp.eq.f32.partialorder %v5781_v17, inf  ;;  %v990_v48 = vmul.f32 %v5707_v55, %v5631_v56  ;;  %1340 = vmatmul.f32.gmra.mxu0 %v1264_v25  ;;  %1405 = vmatmul.f32.gmra.mxu1 %v1264_v25  ;;  %v1207_v37 = vand.u32 2147483647, %v6046_v39 }
 0x1b8   : > { %v4539_v50 = vpop.eup %4538  ;;  %v1272_v32 = vadd.f32 %v5787_v63, %v1197_v27  ;;  %v1209_v30 = vand.u32 2147483648, %v6046_v39  ;;  %v1086_v26 = vsel %vm6080_vm12, %v4537_v13, %v1082_v10  ;;  %v967_v15 = vsel %vm966_vm14, %v5781_v17, %v965_v49 }
 0x1b9   : > { %v1199_v47 = vmul.f32 %v4539_v50, %v6046_v39  ;;  %vm968_vm15 = vcmp.eq.f32.partialorder %v5781_v17, 0.0  ;;  %v1091_v56 = vsel %vm6074_vm11, %v1090_v43, %v1086_v26  ;;  %vm1203_vm0 = vweird.f32 %v6046_v39 }
 0x1ba   : > { %1364 = vmatmul.f32.gmra.mxu2 %v1272_v32  ;;  %1429 = vmatmul.f32.gmra.mxu3 %v1272_v32  ;;  %v958_v21 = vsel %vm956_vm13, %v957_v61, %v955_v29  ;;  %v969_v51 = vand.u32 2147483648, %v5781_v17  ;;  %v1092_v6 = vmul.f32 %v1091_v56, %v990_v48  ;;  %vm1204_vm1 = vweird.f32 %v4539_v50 }
 0x1bb   : > { %v1200_v54 = vsub.f32 1.0, %v1199_v47  ;;  %v1015_v7 = vadd.f32 1e-06, %v958_v21  ;;  %vm6105_vm2 = vcmp.eq.f32.partialorder %v1207_v37, 8.507059e+37  ;;  %v1210_v8 = vor.u32 1.1754944e-38, %v1209_v30  ;;  %vm1205_vm4 = vmor %vm1203_vm0, %vm1204_vm1 }
 0x1bc   : > { %v4541_v41 = vpop.eup %4540  ;;  %v970_v1 = vsel %vm968_vm15, %v969_v51, %v967_v15  ;;  %vm1098_vm3 = vweird.f32 %v1007_v45  ;;  %v1265_v24 = vadd.f32 %v5787_v63, %v1092_v6  ;;  %v1102_v17 = vand.u32 2147483647, %v1007_v45 }
 0x1bd   : > { %v1201_v52 = vmul.f32 %v4539_v50, %v1200_v54  ;;  %v1094_v18 = vmul.f32 %v4541_v41, %v1007_v45  ;;  %v1104_v3 = vand.u32 2147483648, %v1007_v45  ;;  %4542 = vrcp.f32 %v1015_v7 }
 0x1be   : > { %vm1099_vm5 = vweird.f32 %v4541_v41  ;;  %v1016_v13 = vadd.f32 1e-06, %v970_v1  ;;  %v998_v40 = vmul.f32 %v5707_v55, %v5642_v62  ;;  %vm1103_vm7 = vcmp.eq.f32.partialorder %v1102_v17, 8.507059e+37 }
 0x1bf   : > { %v1202_v57 = vadd.f32 %v4539_v50, %v1201_v52  ;;  %v1095_v33 = vsub.f32 1.0, %v1094_v18  ;;  %1343 = vmatmul.f32.gmra.mxu0 %v1265_v24  ;;  %1408 = vmatmul.f32.gmra.mxu1 %v1265_v24  ;;  %vm1100_vm6 = vmor %vm1098_vm3, %vm1099_vm5  ;;  %v1105_v39 = vor.u32 1.1754944e-38, %v1104_v3  ;;  %v991_v4 = vmul.f32 %v5707_v55, %v5660_v12 }
 0x1c0   : > { %4544 = vrcp.f32 %v1016_v13  ;;  %v1224_v46 = vand.u32 2147483648, %v1015_v7  ;;  %vm1218_vm8 = vweird.f32 %v1015_v7  ;;  %v1222_v45 = vand.u32 2147483647, %v1015_v7 }
 0x1c1   : > { %v1206_v9 = vsel %vm1205_vm4, %v4539_v50, %v1202_v57  ;;  %v1096_v28 = vmul.f32 %v4541_v41, %v1095_v33  ;;  %vm1233_vm11 = vweird.f32 %v1016_v13  ;;  %v1239_v27 = vand.u32 2147483648, %v1016_v13 }
 0x1c2   : > { %v1211_v35 = vsel %vm6105_vm2, %v1210_v8, %v1206_v9  ;;  %v1225_v53 = vor.u32 1.1754944e-38, %v1224_v46  ;;  %vm1223_vm13 = vcmp.eq.f32.partialorder %v1222_v45, 8.507059e+37  ;;  %v1237_v43 = vand.u32 2147483647, %v1016_v13 }
 0x1c3   : > { %v1212_v38 = vmul.f32 %v1211_v35, %v998_v40  ;;  %v1097_v31 = vadd.f32 %v4541_v41, %v1096_v28  ;;  %v4543_v60 = vpop.eup %4542  ;;  %v999_v10 = vmul.f32 %v5707_v55, %v5663_v14  ;;  %v1240_v32 = vor.u32 1.1754944e-38, %v1239_v27 }
 0x1c4   : > { %v1214_v62 = vmul.f32 %v4543_v60, %v1015_v7  ;;  %vm1219_vm9 = vweird.f32 %v4543_v60  ;;  %vm1238_vm15 = vcmp.eq.f32.partialorder %v1237_v43, 8.507059e+37  ;;  %v1000_v15 = vmul.f32 %v5707_v55, %v5649_v5 }
 0x1c5   : > { %v1273_v36 = vadd.f32 %v5787_v63, %v1212_v38  ;;  %v1101_v16 = vsel %vm1100_vm6, %v4541_v41, %v1097_v31  ;;  %vm1220_vm10 = vmor %vm1218_vm8, %vm1219_vm9 }
 0x1c6   : > { %v1106_v11 = vsel %vm1103_vm7, %v1105_v39, %v1101_v16  ;;  %v4545_v22 = vpop.eup %4544  ;;  %v1215_v23 = vsub.f32 1.0, %v1214_v62 }
 0x1c7   : > { %1367 = vmatmul.f32.gmra.mxu2 %v1273_v36  ;;  %1432 = vmatmul.f32.gmra.mxu3 %v1273_v36  ;;  %v1107_v25 = vmul.f32 %v1106_v11, %v991_v4  ;;  %v1229_v49 = vmul.f32 %v4545_v22, %v1016_v13  ;;  %vm1234_vm12 = vweird.f32 %v4545_v22 }
 0x1c8   : > { %v1216_v2 = vmul.f32 %v4543_v60, %v1215_v23  ;;  %vm1235_vm14 = vmor %vm1233_vm11, %vm1234_vm12 }
 0x1c9   : > { %v1266_v59 = vadd.f32 %v5787_v63, %v1107_v25  ;;  %v1230_v12 = vsub.f32 1.0, %v1229_v49 }
 0x1ca   : > { %v1217_v44 = vadd.f32 %v4543_v60, %v1216_v2 }
 0x1cb   : > { %1346 = vmatmul.f32.gmra.mxu0 %v1266_v59  ;;  %1411 = vmatmul.f32.gmra.mxu1 %v1266_v59  ;;  %v1231_v29 = vmul.f32 %v4545_v22, %v1230_v12 }
 0x1cc   : > { %v1221_v61 = vsel %vm1220_vm10, %v4543_v60, %v1217_v44 }
 0x1cd   : > { %v1226_v50 = vsel %vm1223_vm13, %v1225_v53, %v1221_v61  ;;  %v1232_v48 = vadd.f32 %v4545_v22, %v1231_v29 }
 0x1ce   : > { %v1227_v37 = vmul.f32 %v1226_v50, %v999_v10 }
 0x1cf   : > { %v1236_v30 = vsel %vm1235_vm14, %v4545_v22, %v1232_v48 }
 0x1d0   : > { %v1274_v26 = vadd.f32 %v5787_v63, %v1227_v37  ;;  %v1241_v47 = vsel %vm1238_vm15, %v1240_v32, %v1236_v30  ;;  %v992_v32 = vmul.f32 %v5707_v55, %v5690_v20 }
 0x1d1   : > { %v1242_v56 = vmul.f32 %v1241_v47, %v1000_v15 }
 0x1d2   : > { %1370 = vmatmul.f32.gmra.mxu2 %v1274_v26  ;;  %1435 = vmatmul.f32.gmra.mxu3 %v1274_v26 }
 0x1d3   : > { %v1275_v21 = vadd.f32 %v5787_v63, %v1242_v56 }
 0x1da   : > { %1373 = vmatmul.f32.gmra.mxu2 %v1275_v21  ;;  %1438 = vmatmul.f32.gmra.mxu3 %v1275_v21 }
 0x1dd   : > { %v751_v14 = vpop.xlane.xlu1 %750  ;;  %v749_v6 = vpop.xlane.xlu2 %748 }
 0x1de   : > { %v782_v51 = vmul.f32 %v5669_v42, %v751_v14  ;;  %v781_v54 = vmul.f32 %v5669_v42, %v749_v6 }
 0x1e0   : > { %4546 = vrsqrt.f32 %v782_v51  ;;  %vm870_vm0 = vcmp.eq.f32.partialorder %v781_v54, inf  ;;  %v873_v39 = vand.u32 2147483648, %v781_v54  ;;  %vm872_vm1 = vcmp.eq.f32.partialorder %v781_v54, 0.0 }
 0x1e1   : > { %4548 = vrsqrt.f32 %v781_v54  ;;  %vm882_vm2 = vcmp.eq.f32.partialorder %v782_v51, inf  ;;  %v885_v62 = vand.u32 2147483648, %v782_v51  ;;  %vm884_vm3 = vcmp.eq.f32.partialorder %v782_v51, 0.0 }
 0x1e6   : > { %v4547_v7 = vpop.eup %4546  ;;  %v767_v41 = vpop.xlane.xlu0 %766 }
 0x1e7   : > { %v4549_v34 = vpop.eup %4548  ;;  %v876_v1 = vmul.f32 %v4547_v7, %v782_v51  ;;  %v790_v5 = vmul.f32 %v5669_v42, %v767_v41 }
 0x1e8   : > { %v864_v52 = vmul.f32 %v4549_v34, %v781_v54 }
 0x1e9   : > { %v877_v8 = vmul.f32 %v4547_v7, %v876_v1  ;;  %4550 = vrsqrt.f32 %v790_v5  ;;  %vm978_vm4 = vcmp.eq.f32.partialorder %v790_v5, inf  ;;  %v981_v25 = vand.u32 2147483648, %v790_v5 }
 0x1ea   : > { %v865_v18 = vmul.f32 %v4549_v34, %v864_v52  ;;  %vm980_vm5 = vcmp.eq.f32.partialorder %v790_v5, 0.0 }
 0x1eb   : > { %v878_v24 = vmul.f32 0.5, %v877_v8 }
 0x1ec   : > { %v866_v17 = vmul.f32 0.5, %v865_v18 }
 0x1ed   : > { %v879_v3 = vsub.f32 1.5, %v878_v24 }
 0x1ee   : > { %v867_v57 = vsub.f32 1.5, %v866_v17 }
 0x1ef   : > { %v4551_v33 = vpop.eup %4550  ;;  %v880_v9 = vmul.f32 %v4547_v7, %v879_v3 }
 0x1f0   : > { %v868_v13 = vmul.f32 %v4549_v34, %v867_v57  ;;  %v972_v40 = vmul.f32 %v4551_v33, %v790_v5 }
 0x1f1   : > { %v881_v60 = vmul.f32 %v880_v9, %v782_v51 }
 0x1f2   : > { %v869_v28 = vmul.f32 %v868_v13, %v781_v54  ;;  %v973_v35 = vmul.f32 %v4551_v33, %v972_v40 }
 0x1f3   : > { %v883_v11 = vsel %vm882_vm2, %v782_v51, %v881_v60  ;;  %v1309_v51 = vld [vmem:[%s7523_s21] sm:$0x3] }
 0x1f4   : > { %v974_v38 = vmul.f32 0.5, %v973_v35  ;;  %v871_v31 = vsel %vm870_vm0, %v781_v54, %v869_v28  ;;  %v886_v22 = vsel %vm884_vm3, %v885_v62, %v883_v11  ;;  %v6138_v52 = vperm.slane %v1309_v51, 0 }
 0x1f5   : > { %v874_v42 = vsel %vm872_vm1, %v873_v39, %v871_v31  ;;  %v1009_v23 = vadd.f32 1e-06, %v886_v22  ;;  %v6140_v18 = vperm.slane %v1309_v51, 1 }
 0x1f6   : > { %v975_v4 = vsub.f32 1.5, %v974_v38  ;;  %v1008_v36 = vadd.f32 1e-06, %v874_v42 }
 0x1f7   : > { %v1134_v47 = vand.u32 2147483648, %v1009_v23  ;;  %v1132_v14 = vand.u32 2147483647, %v1009_v23  ;;  %vm1128_vm11 = vweird.f32 %v1009_v23 }
 0x1f8   : > { %v976_v16 = vmul.f32 %v4551_v33, %v975_v4  ;;  %4552 = vrcp.f32 %v1008_v36  ;;  %v1119_v27 = vand.u32 2147483648, %v1008_v36  ;;  %v1117_v43 = vand.u32 2147483647, %v1008_v36 }
 0x1f9   : > { %4554 = vrcp.f32 %v1009_v23  ;;  %vm1113_vm7 = vweird.f32 %v1008_v36  ;;  %v1135_v41 = vor.u32 1.1754944e-38, %v1134_v47  ;;  %vm1133_vm14 = vcmp.eq.f32.partialorder %v1132_v14, 8.507059e+37 }
 0x1fa   : > { %v977_v46 = vmul.f32 %v976_v16, %v790_v5  ;;  %v1120_v50 = vor.u32 1.1754944e-38, %v1119_v27  ;;  %vm1118_vm9 = vcmp.eq.f32.partialorder %v1117_v43, 8.507059e+37  ;;  %v1001_v33 = vmul.f32 %v5707_v55, %v5711_v58 }
 0x1fc   : > { %v979_v45 = vsel %vm978_vm4, %v790_v5, %v977_v46  ;;  %v993_v5 = vmul.f32 %v5707_v55, %v5687_v19 }
 0x1fd   : > { %v982_v49 = vsel %vm980_vm5, %v981_v25, %v979_v45 }
 0x1fe   : > { %v4553_v59 = vpop.eup %4552  ;;  %v1017_v53 = vadd.f32 1e-06, %v982_v49 }
 0x1ff   : > { %v1109_v2 = vmul.f32 %v4553_v59, %v1008_v36  ;;  %vm1114_vm6 = vweird.f32 %v4553_v59  ;;  %v4555_v29 = vpop.eup %4554 }
 0x200   : > { %4556 = vrcp.f32 %v1017_v53  ;;  %v1124_v61 = vmul.f32 %v4555_v29, %v1009_v23  ;;  %vm1115_vm8 = vmor %vm1113_vm7, %vm1114_vm6  ;;  %vm1129_vm10 = vweird.f32 %v4555_v29  ;;  %v1254_v20 = vand.u32 2147483648, %v1017_v53 }
 0x201   : > { %v1110_v12 = vsub.f32 1.0, %v1109_v2  ;;  %vm1130_vm12 = vmor %vm1128_vm11, %vm1129_vm10  ;;  %v1252_v1 = vand.u32 2147483647, %v1017_v53  ;;  %vm1248_vm15 = vweird.f32 %v1017_v53 }
 0x202   : > { %v1125_v30 = vsub.f32 1.0, %v1124_v61  ;;  %v1255_v57 = vor.u32 1.1754944e-38, %v1254_v20 }
 0x203   : > { %v1111_v44 = vmul.f32 %v4553_v59, %v1110_v12  ;;  %vm1253_vm1 = vcmp.eq.f32.partialorder %v1252_v1, 8.507059e+37 }
 0x204   : > { %v1126_v21 = vmul.f32 %v4555_v29, %v1125_v30 }
 0x205   : > { %v1112_v10 = vadd.f32 %v4553_v59, %v1111_v44 }
 0x206   : > { %v4557_v48 = vpop.eup %4556  ;;  %v1127_v7 = vadd.f32 %v4555_v29, %v1126_v21 }
 0x207   : > { %v1116_v37 = vsel %vm1115_vm8, %v4553_v59, %v1112_v10  ;;  %v1244_v15 = vmul.f32 %v4557_v48, %v1017_v53  ;;  %vm1249_vm13 = vweird.f32 %v4557_v48 }
 0x208   : > { %v1121_v26 = vsel %vm1118_vm9, %v1120_v50, %v1116_v37  ;;  %v1131_v8 = vsel %vm1130_vm12, %v4555_v29, %v1127_v7  ;;  %vm1250_vm0 = vmor %vm1248_vm15, %vm1249_vm13 }
 0x209   : > { %v1122_v56 = vmul.f32 %v1121_v26, %v992_v32  ;;  %v1245_v6 = vsub.f32 1.0, %v1244_v15  ;;  %v1136_v24 = vsel %vm1133_vm14, %v1135_v41, %v1131_v8 }
 0x20a   : > { %v1137_v3 = vmul.f32 %v1136_v24, %v993_v5 }
 0x20b   : > { %v1267_v54 = vadd.f32 %v5787_v63, %v1122_v56  ;;  %v1246_v34 = vmul.f32 %v4557_v48, %v1245_v6 }
 0x20c   : > { %v1268_v38 = vadd.f32 %v5787_v63, %v1137_v3 }
 0x20d   : > { %1349 = vmatmul.f32.gmra.mxu0 %v1267_v54  ;;  %1414 = vmatmul.f32.gmra.mxu1 %v1267_v54  ;;  %v1247_v17 = vadd.f32 %v4557_v48, %v1246_v34 }
 0x20f   : > { %v1251_v13 = vsel %vm1250_vm0, %v4557_v48, %v1247_v17 }
 0x210   : > { %v1256_v9 = vsel %vm1253_vm1, %v1255_v57, %v1251_v13 }
 0x211   : > { %v1356_v19 = vpop.f32.mrf.mxu2  ;;  %v1421_v40 = vpop.f32.mrf.mxu3  ;;  %v1257_v39 = vmul.f32 %v1256_v9, %v1001_v33 }
 0x212   : > { %v1357_v28 = vadd.f32 %v1356_v19, %v6138_v52  ;;  %v1422_v35 = vadd.f32 %v1421_v40, %v6140_v18 }
 0x213   : > { %v1276_v31 = vadd.f32 %v5787_v63, %v1257_v39 }
 0x214   : > { %1461 = vst [vmem:[#allocation2 + $0x38] sm:$0xff] %v1357_v28 }
 0x215   : > { %1462 = vst [vmem:[#allocation2 + $0x58] sm:$0xff] %v1422_v35  ;;  %v1332_v42 = vpop.f32.mrf.mxu0  ;;  %v1397_v60 = vpop.f32.mrf.mxu1  ;;  %1352 = vmatmul.f32.gmra.mxu0 %v1268_v38  ;;  %1417 = vmatmul.f32.gmra.mxu1 %v1268_v38 }
 0x216   : > { %v1333_v55 = vadd.f32 %v1332_v42, %v6138_v52  ;;  %v1398_v58 = vadd.f32 %v1397_v60, %v6140_v18  ;;  %1376 = vmatmul.f32.gmra.mxu2 %v1276_v31  ;;  %1441 = vmatmul.f32.gmra.mxu3 %v1276_v31 }
 0x218   : > { %1445 = vst [vmem:[#allocation2 + $0xb0] sm:$0xff] %v1333_v55 }
 0x219   : > { %1446 = vst [vmem:[#allocation2] sm:$0xff] %v1398_v58 }
 0x21a   : > { %v1359_v4 = vpop.f32.mrf.mxu2  ;;  %v1424_v36 = vpop.f32.mrf.mxu3 }
 0x21b   : > { %v1360_v16 = vadd.f32 %v1359_v4, %v6138_v52  ;;  %v1425_v62 = vadd.f32 %v1424_v36, %v6140_v18 }
 0x21d   : > { %1463 = vst [vmem:[#allocation2 + $0x40] sm:$0xff] %v1360_v16 }
 0x21e   : > { %1464 = vst [vmem:[#allocation2 + $0xc8] sm:$0xff] %v1425_v62 }
 0x224   : > { %v1335_v63 = vpop.f32.mrf.mxu0  ;;  %v1400_v46 = vpop.f32.mrf.mxu1 }
 0x225   : > { %v1336_v11 = vadd.f32 %v1335_v63, %v6138_v52  ;;  %v1401_v22 = vadd.f32 %v1400_v46, %v6140_v18 }
 0x227   : > { %1447 = vst [vmem:[#allocation2 + $0xd8] sm:$0xff] %v1336_v11 }
 0x228   : > { %1448 = vst [vmem:[#allocation2 + $0x18] sm:$0xff] %v1401_v22 }
 0x22c   : > { %v1338_v25 = vpop.f32.mrf.mxu0  ;;  %v1403_v23 = vpop.f32.mrf.mxu1 }
 0x22d   : > { %v1339_v45 = vadd.f32 %v1338_v25, %v6138_v52  ;;  %v1404_v49 = vadd.f32 %v1403_v23, %v6140_v18 }
 0x22f   : > { %1449 = vst [vmem:[#allocation2 + $0x50] sm:$0xff] %v1339_v45 }
 0x230   : > { %1450 = vst [vmem:[#allocation2 + $0x68] sm:$0xff] %v1404_v49 }
 0x234   : > { %v1341_v27 = vpop.f32.mrf.mxu0  ;;  %v1406_v44 = vpop.f32.mrf.mxu1 }
 0x235   : > { %v1362_v59 = vpop.f32.mrf.mxu2  ;;  %v1427_v2 = vpop.f32.mrf.mxu3  ;;  %v1342_v43 = vadd.f32 %v1341_v27, %v6138_v52  ;;  %v1407_v29 = vadd.f32 %v1406_v44, %v6140_v18 }
 0x236   : > { %v1363_v53 = vadd.f32 %v1362_v59, %v6138_v52  ;;  %v1428_v12 = vadd.f32 %v1427_v2, %v6140_v18 }
 0x237   : > { %1451 = vst [vmem:[#allocation2 + $0x30] sm:$0xff] %v1342_v43 }
 0x238   : > { %1465 = vst [vmem:[#allocation2 + $0xe0] sm:$0xff] %v1363_v53 }
 0x239   : > { %1466 = vst [vmem:[#allocation2 + $0x90] sm:$0xff] %v1428_v12 }
 0x23a   : > { %1452 = vst [vmem:[#allocation2 + $0x48] sm:$0xff] %v1407_v29 }
 0x23c   : > { %v1344_v32 = vpop.f32.mrf.mxu0  ;;  %v1409_v37 = vpop.f32.mrf.mxu1 }
 0x23d   : > { %v1365_v10 = vpop.f32.mrf.mxu2  ;;  %v1430_v61 = vpop.f32.mrf.mxu3  ;;  %v1345_v30 = vadd.f32 %v1344_v32, %v6138_v52  ;;  %v1410_v26 = vadd.f32 %v1409_v37, %v6140_v18 }
 0x23e   : > { %v1366_v50 = vadd.f32 %v1365_v10, %v6138_v52  ;;  %v1431_v48 = vadd.f32 %v1430_v61, %v6140_v18 }
 0x23f   : > { %1453 = vst [vmem:[#allocation2 + $0x80] sm:$0xff] %v1345_v30 }
 0x240   : > { %1467 = vst [vmem:[#allocation2 + $0x70] sm:$0xff] %v1366_v50 }
 0x241   : > { %1468 = vst [vmem:[#allocation2 + $0xc0] sm:$0xff] %v1431_v48 }
 0x242   : > { %1454 = vst [vmem:[#allocation2 + $0x88] sm:$0xff] %v1410_v26 }
 0x248   : > { %v1347_v47 = vpop.f32.mrf.mxu0  ;;  %v1412_v15 = vpop.f32.mrf.mxu1 }
 0x249   : > { %v1348_v56 = vadd.f32 %v1347_v47, %v6138_v52  ;;  %v1413_v21 = vadd.f32 %v1412_v15, %v6140_v18 }
 0x24a   : > { %v1368_v14 = vpop.f32.mrf.mxu2  ;;  %v1433_v51 = vpop.f32.mrf.mxu3 }
 0x24b   : > { %v1369_v6 = vadd.f32 %v1368_v14, %v6138_v52  ;;  %v1434_v54 = vadd.f32 %v1433_v51, %v6140_v18  ;;  %1455 = vst [vmem:[#allocation2 + $0xe8] sm:$0xff] %v1348_v56 }
 0x24c   : > { %1456 = vst [vmem:[#allocation2 + $0xb8] sm:$0xff] %v1413_v21 }
 0x24d   : > { %1469 = vst [vmem:[#allocation2 + $0xa8] sm:$0xff] %v1369_v6 }
 0x24e   : > { %1470 = vst [vmem:[#allocation2 + $0xd0] sm:$0xff] %v1434_v54 }
 0x255   : > { %v1371_v7 = vpop.f32.mrf.mxu2  ;;  %v1436_v20 = vpop.f32.mrf.mxu3 }
 0x256   : > { %v1372_v41 = vadd.f32 %v1371_v7, %v6138_v52  ;;  %v1437_v34 = vadd.f32 %v1436_v20, %v6140_v18 }
 0x258   : > { %1471 = vst [vmem:[#allocation2 + $0x10] sm:$0xff] %v1372_v41 }
 0x259   : > { %1472 = vst [vmem:[#allocation2 + $0x28] sm:$0xff] %v1437_v34 }
 0x25d   : > { %v1374_v1 = vpop.f32.mrf.mxu2  ;;  %v1439_v5 = vpop.f32.mrf.mxu3 }
 0x25e   : > { %v1375_v8 = vadd.f32 %v1374_v1, %v6138_v52  ;;  %v1440_v24 = vadd.f32 %v1439_v5, %v6140_v18 }
 0x260   : > { %1473 = vst [vmem:[#allocation2 + $0xa0] sm:$0xff] %v1375_v8 }
 0x261   : > { %1474 = vst [vmem:[#allocation2 + $0xf8] sm:$0xff] %v1440_v24 }
 0x28a   : > { %v1350_v17 = vpop.f32.mrf.mxu0  ;;  %v1415_v3 = vpop.f32.mrf.mxu1 }
 0x28b   : > { %v1351_v57 = vadd.f32 %v1350_v17, %v6138_v52  ;;  %v1416_v33 = vadd.f32 %v1415_v3, %v6140_v18 }
 0x28d   : > { %1457 = vst [vmem:[#allocation2 + $0x60] sm:$0xff] %v1351_v57 }
 0x28e   : > { %1458 = vst [vmem:[#allocation2 + $0xf0] sm:$0xff] %v1416_v33 }
 0x292   : > { %v1353_v13 = vpop.f32.mrf.mxu0  ;;  %v1418_v19 = vpop.f32.mrf.mxu1 }
 0x293   : > { %v1354_v40 = vadd.f32 %v1353_v13, %v6138_v52  ;;  %v1419_v9 = vadd.f32 %v1418_v19, %v6140_v18 }
 0x295   : > { %1459 = vst [vmem:[#allocation2 + $0x8] sm:$0xff] %v1354_v40 }
 0x296   : > { %1460 = vst [vmem:[#allocation2 + $0x78] sm:$0xff] %v1419_v9 }
 0x299   : > { %v1377_v28 = vpop.f32.mrf.mxu2  ;;  %v1442_v35 = vpop.f32.mrf.mxu3 }
 0x29a   : > { %v1378_v39 = vadd.f32 %v1377_v28, %v6138_v52  ;;  %v1443_v38 = vadd.f32 %v1442_v35, %v6140_v18 }
 0x29c   : > { %1475 = vst [vmem:[#allocation2 + $0x20] sm:$0xff] %v1378_v39 }
 0x29d   : > { %1476 = vst [vmem:[#allocation2 + $0x98] sm:$0xff] %v1443_v38 }
 0x29e PF: > { %s7524_s25 = sld [smem:[#allocation21_spill]]  ;;  %v5245_v36 = vmov 128.0   ;;  %s5246_s14 = smov 96   ;;  %v5247_v5 = vmov 127.0   ;;  %v1826_v17 = vld [vmem:[#allocation6 + $0x78] sm:$0xff]  ;;  %v1825_v57 = vld [vmem:[#allocation6 + $0x70] sm:$0xff] }
 0x29f   : > { %4683 = vrcp.f32 %v5245_v36  ;;  %1831 = vmatpush.msra.mxu0 %v1826_v17  ;;  %4298 = vmatpush.msra.mxu2 %v1826_v17  ;;  %v1824_v33 = vld [vmem:[#allocation6 + $0x68] sm:$0xff]  ;;  %v1823_v19 = vld [vmem:[#allocation6 + $0x60] sm:$0xff]  ;;  %v1822_v40 = vld [vmem:[#allocation6 + $0x58] sm:$0xff]  ;;  %vm1928_vm4 = vcmask 261120   ;;  %s5249_s5 = smov 32   ;;  %s7536_s11 = sld [smem:[#allocation32_spill]] }
 0x2a0   : > { %4685 = vrcp.f32 %v5247_v5  ;;  %v1821_v28 = vld [vmem:[#allocation6 + $0x50] sm:$0xff]  ;;  %v1820_v35 = vld [vmem:[#allocation6 + $0x48] sm:$0xff]  ;;  %v1819_v38 = vld [vmem:[#allocation6 + $0x40] sm:$0xff]  ;;  %s7537_s1 = sld [smem:[#allocation39_spill]]  ;;  %s3958_s21 = sshll.u32 %s5546_s0, 4  ;;  %s3959_s21 = int_to_ptr.vmem [resolvable:$true] %s3958_s21 }
 0x2a1   : > { %1832 = vmatpush.msra.mxu0 %v1825_v57  ;;  %4299 = vmatpush.msra.mxu2 %v1825_v57  ;;  %s7538_s29 = sld [smem:[#allocation40_spill]] }
 0x2a2   : > { %s7541_s6 = sld [smem:[#allocation22_spill]] }
 0x2a3   : > { %v6227_v7 = vld [vmem:[#allocation2 + $0x20] sm:$0xff]  ;;  %1833 = vmatpush.msra.mxu0 %v1824_v33  ;;  %4300 = vmatpush.msra.mxu2 %v1824_v33  ;;  %s7542_s30 = sld [smem:[#allocation41_spill]] }
 0x2a4   : > { %s4130_s24 = sshll.u32 %s7524_s25, 6  ;;  %4131 = vmatpush.xpose.msk.msra.mxu1 %vm1928_vm4, %v6227_v7  ;;  %s4260_s9 = sshll.u32 %s7524_s25, 3 }
 0x2a5   : > { %s6180_s7 = scalar_lea.vmem %s5515_s17, %s4130_s24 [#allocation3]  ;;  %v4684_v16 = vpop.eup %4683  ;;  %1834 = vmatpush.msra.mxu0 %v1823_v19  ;;  %4301 = vmatpush.msra.mxu2 %v1823_v19  ;;  %s5248_s17 = smov 64  }
 0x2a6   : > { %v1481_v31 = vld [vmem:[%s6180_s7 + $0x10] sm:$0xff]  ;;  %v1479_v52 = vld [vmem:[%s6180_s7] sm:$0xff]  ;;  %v1482_v18 = vld [vmem:[%s6180_s7 + $0x18] sm:$0xff]  ;;  %v1504_v62 = vmul.f32 128.0, %v4684_v16  ;;  %vm1508_vm2 = vweird.f32 %v4684_v16  ;;  %v4686_v8 = vpop.eup %4685  ;;  %s3944_s25 = scalar_lea.sflag [#allocation5], %s623_s2 }
 0x2a7   : > { %v1483_v42 = vld [vmem:[%s6180_s7 + $0x20] sm:$0xff]  ;;  %1491 = vadd.xlane.f32.xlu1 %v1481_v31  ;;  %1487 = vadd.xlane.f32.xlu0 %v1479_v52  ;;  %v1480_v60 = vld [vmem:[%s6180_s7 + $0x8] sm:$0xff]  ;;  %v1485_v58 = vld [vmem:[%s6180_s7 + $0x30] sm:$0xff]  ;;  %v1551_v24 = vmul.f32 127.0, %v4686_v8  ;;  %vm1555_vm3 = vweird.f32 %v4686_v8 }
 0x2a8   : > { %1495 = vadd.xlane.f32.xlu2 %v1483_v42  ;;  %v1484_v55 = vld [vmem:[%s6180_s7 + $0x28] sm:$0xff]  ;;  %v1486_v4 = vld [vmem:[%s6180_s7 + $0x38] sm:$0xff]  ;;  %v1505_v63 = vsub.f32 1.0, %v1504_v62  ;;  %1835 = vmatpush.msra.mxu0 %v1822_v40  ;;  %v6246_v62 = vld [vmem:[#allocation2 + $0x40] sm:$0xff] }
 0x2a9   : > { %v1552_v3 = vsub.f32 1.0, %v1551_v24  ;;  %4302 = vmatpush.msra.mxu2 %v1822_v40 }
 0x2aa   : > { %v1506_v46 = vmul.f32 %v4684_v16, %v1505_v63  ;;  %1836 = vmatpush.msra.mxu0 %v1821_v28 }
 0x2ab   : > { %v1553_v13 = vmul.f32 %v4686_v8, %v1552_v3  ;;  %4303 = vmatpush.msra.mxu2 %v1821_v28  ;;  %v6296_v28 = vperm.slane %v5539_v0, 0 }
 0x2ac   : > { %v1507_v11 = vadd.f32 %v4684_v16, %v1506_v46  ;;  %1837 = vmatpush.msra.mxu0 %v1820_v35 }
 0x2ad   : > { %v1554_v9 = vadd.f32 %v4686_v8, %v1553_v13  ;;  %4304 = vmatpush.msra.mxu2 %v1820_v35 }
 0x2ae   : > { %v6190_v22 = vsel %vm1508_vm2, %v4684_v16, %v1507_v11  ;;  %1838 = vmatpush.msra.mxu0 %v1819_v38 }
 0x2af   : > { %1493 = vadd.xlane.f32.xlu1 %v1482_v18  ;;  %1489 = vadd.xlane.f32.xlu0 %v1480_v60  ;;  %v6236_v39 = vsel %vm1555_vm3, %v4686_v8, %v1554_v9 }
 0x2b0   : > { %1497 = vadd.xlane.f32.xlu2 %v1484_v55  ;;  %4305 = vmatpush.msra.mxu2 %v1819_v38 }
 0x2b7   : > { %1499 = vadd.xlane.f32.xlu0 %v1485_v58 }
 0x2b8   : > { %1501 = vadd.xlane.f32.xlu2 %v1486_v4 }
 0x31a   : > { %v1492_v25 = vpop.xlane.xlu1 %1491  ;;  %v1488_v23 = vpop.xlane.xlu0 %1487 }
 0x31b   : > { %v1510_v45 = vmul.f32 %v6190_v22, %v1488_v23  ;;  %v1496_v49 = vpop.xlane.xlu2 %1495  ;;  %v1512_v59 = vmul.f32 %v6190_v22, %v1492_v25  ;;  %v1813_v23 = vld [vmem:[#allocation6 + $0x10] sm:$0xff] }
 0x31c   : > { %v1514_v37 = vmul.f32 %v6190_v22, %v1496_v49 }
 0x31d   : > { %v6194_v2 = vsub.f32 %v1479_v52, %v1510_v45  ;;  %v6198_v12 = vsub.f32 %v1481_v31, %v1512_v59  ;;  %v1812_v59 = vld [vmem:[#allocation6 + $0x8] sm:$0xff] }
 0x31e   : > { %v6216_v56 = vsub.f32 %v1483_v42, %v1514_v37  ;;  %v1818_v42 = vld [vmem:[#allocation6 + $0x38] sm:$0xff] }
 0x31f   : > { %v1526_v53 = vmul.f32 %v6194_v2, %v6194_v2  ;;  %v1528_v50 = vmul.f32 %v6198_v12, %v6198_v12  ;;  %1839 = vmatpush.msra.mxu0 %v1818_v42  ;;  %4306 = vmatpush.msra.mxu2 %v1818_v42  ;;  %v6301_v42 = vld [vmem:[#allocation2 + $0x30] sm:$0xff] }
 0x320   : > { %v1530_v6 = vmul.f32 %v6216_v56, %v6216_v56 }
 0x321   : > { %1534 = vadd.xlane.f32.xlu1 %v1526_v53 }
 0x322   : > { %v1494_v27 = vpop.xlane.xlu1 %1493  ;;  %v1490_v44 = vpop.xlane.xlu0 %1489 }
 0x323   : > { %v1513_v43 = vmul.f32 %v6190_v22, %v1494_v27  ;;  %v1511_v29 = vmul.f32 %v6190_v22, %v1490_v44  ;;  %v1498_v10 = vpop.xlane.xlu2 %1497  ;;  %v1811_v27 = vld [vmem:[#allocation6] sm:$0xff] }
 0x324   : > { %v1515_v32 = vmul.f32 %v6190_v22, %v1498_v10 }
 0x325   : > { %v6202_v61 = vsub.f32 %v1482_v18, %v1513_v43  ;;  %v6206_v48 = vsub.f32 %v1480_v60, %v1511_v29  ;;  %v6241_v18 = vld [vmem:[#allocation2 + $0xa8] sm:$0xff]  ;;  %v1817_v60 = vld [vmem:[#allocation6 + $0x30] sm:$0xff]  ;;  %v6263_v43 = vld [vmem:[#allocation2 + $0xa0] sm:$0xff] }
 0x326   : > { %v6214_v47 = vsub.f32 %v1484_v55, %v1515_v32  ;;  %1840 = vmatpush.msra.mxu0 %v1817_v60  ;;  %4307 = vmatpush.msra.mxu2 %v1817_v60  ;;  %v1816_v55 = vld [vmem:[#allocation6 + $0x28] sm:$0xff]  ;;  %v6265_v32 = vld [vmem:[#allocation2 + $0x60] sm:$0xff] }
 0x327   : > { %v1529_v30 = vmul.f32 %v6202_v61, %v6202_v61  ;;  %v1527_v26 = vmul.f32 %v6206_v48, %v6206_v48  ;;  %4132 = vmatpush.xpose.msk.msra.mxu1 %vm1928_vm4, %v6263_v43 }
 0x328   : > { %v1531_v14 = vmul.f32 %v6214_v47, %v6214_v47  ;;  %1841 = vmatpush.msra.mxu0 %v1816_v55  ;;  %4308 = vmatpush.msra.mxu2 %v1816_v55 }
 0x329   : > { %1540 = vadd.xlane.f32.xlu2 %v1529_v30  ;;  %1538 = vadd.xlane.f32.xlu1 %v1528_v50 }
 0x32a   : > { %1536 = vadd.xlane.f32.xlu0 %v1527_v26  ;;  %v1500_v15 = vpop.xlane.xlu0 %1499 }
 0x32b   : > { %v1516_v21 = vmul.f32 %v6190_v22, %v1500_v15  ;;  %v1502_v20 = vpop.xlane.xlu2 %1501 }
 0x32c   : > { %v1517_v41 = vmul.f32 %v6190_v22, %v1502_v20 }
 0x32d   : > { %v6221_v51 = vsub.f32 %v1485_v58, %v1516_v21  ;;  %v1815_v58 = vld [vmem:[#allocation6 + $0x20] sm:$0xff] }
 0x32e   : > { %v6232_v34 = vsub.f32 %v1486_v4, %v1517_v41  ;;  %v1814_v4 = vld [vmem:[#allocation6 + $0x18] sm:$0xff]  ;;  %1842 = vmatpush.msra.mxu0 %v1815_v58  ;;  %4309 = vmatpush.msra.mxu2 %v1815_v58 }
 0x32f   : > { %v1532_v54 = vmul.f32 %v6221_v51, %v6221_v51 }
 0x330   : > { %v1533_v1 = vmul.f32 %v6232_v34, %v6232_v34  ;;  %1843 = vmatpush.msra.mxu0 %v1814_v4  ;;  %4310 = vmatpush.msra.mxu2 %v1814_v4 }
 0x331   : > { %1544 = vadd.xlane.f32.xlu1 %v1531_v14  ;;  %1546 = vadd.xlane.f32.xlu2 %v1532_v54 }
 0x332   : > { %1542 = vadd.xlane.f32.xlu0 %v1530_v6  ;;  %1844 = vmatpush.msra.mxu0 %v1813_v23 }
 0x333   : > { %4311 = vmatpush.msra.mxu2 %v1813_v23 }
 0x334   : > { %1845 = vmatpush.msra.mxu0 %v1812_v59 }
 0x335   : > { %4312 = vmatpush.msra.mxu2 %v1812_v59 }
 0x336   : > { %1846 = vmatpush.msra.mxu0 %v1811_v27 }
 0x337   : > { %4313 = vmatpush.msra.mxu2 %v1811_v27 }
 0x346   : > { %2201 = vrot.lane.b32.xlu0 %v6227_v7, %s5246_s14 }
 0x34a   : > { %2199 = vrot.lane.b32.xlu1 %v6263_v43, %s5246_s14 }
 0x370   : > { %1548 = vadd.xlane.f32.xlu0 %v1533_v1 }
 0x384   : > { %2195 = vrot.lane.b32.xlu0 %v6241_v18, %s5246_s14 }
 0x38c   : > { %2189 = vrot.lane.b32.xlu0 %v6246_v62, %s5246_s14 }
 0x394   : > { %v1535_v31 = vpop.xlane.xlu1 %1534  ;;  %2183 = vrot.lane.b32.xlu0 %v6265_v32, %s5246_s14 }
 0x395   : > { %v6239_v52 = vmul.f32 %v6236_v39, %v1535_v31 }
 0x397   : > { %4687 = vrsqrt.f32 %v6239_v52  ;;  %vm1572_vm5 = vcmp.eq.f32.partialorder %v6239_v52, inf  ;;  %v1575_v17 = vand.u32 2147483648, %v6239_v52  ;;  %vm1574_vm6 = vcmp.eq.f32.partialorder %v6239_v52, 0.0 }
 0x39c   : > { %v1541_v36 = vpop.xlane.xlu2 %1540  ;;  %v1539_v16 = vpop.xlane.xlu1 %1538  ;;  %2177 = vrot.lane.b32.xlu0 %v6301_v42, %s5246_s14 }
 0x39d   : > { %v4688_v63 = vpop.eup %4687  ;;  %v6249_v46 = vmul.f32 %v6236_v39, %v1541_v36  ;;  %v6252_v11 = vmul.f32 %v6236_v39, %v1539_v16  ;;  %v1537_v25 = vpop.xlane.xlu0 %1536 }
 0x39e   : > { %v1566_v45 = vmul.f32 %v4688_v63, %v6239_v52  ;;  %v6256_v49 = vmul.f32 %v6236_v39, %v1537_v25 }
 0x39f   : > { %4689 = vrsqrt.f32 %v6249_v46  ;;  %vm1596_vm8 = vcmp.eq.f32.partialorder %v6252_v11, inf  ;;  %vm1598_vm9 = vcmp.eq.f32.partialorder %v6252_v11, 0.0  ;;  %v1599_v16 = vand.u32 2147483648, %v6252_v11 }
 0x3a0   : > { %v1567_v53 = vmul.f32 %v4688_v63, %v1566_v45  ;;  %4691 = vrsqrt.f32 %v6252_v11  ;;  %vm1584_vm7 = vcmp.eq.f32.partialorder %v6256_v49, inf  ;;  %vm1608_vm10 = vcmp.eq.f32.partialorder %v6249_v46, inf }
 0x3a1   : > { %4693 = vrsqrt.f32 %v6256_v49  ;;  %vm1610_vm11 = vcmp.eq.f32.partialorder %v6249_v46, 0.0  ;;  %v1611_v27 = vand.u32 2147483648, %v6249_v46  ;;  %vm1586_vm12 = vcmp.eq.f32.partialorder %v6256_v49, 0.0 }
 0x3a2   : > { %v1568_v44 = vmul.f32 0.5, %v1567_v53 }
 0x3a4   : > { %v1569_v29 = vsub.f32 1.5, %v1568_v44  ;;  %v1545_v10 = vpop.xlane.xlu1 %1544  ;;  %v1547_v50 = vpop.xlane.xlu2 %1546 }
 0x3a5   : > { %v4690_v37 = vpop.eup %4689  ;;  %v6270_v30 = vmul.f32 %v6236_v39, %v1545_v10  ;;  %v6273_v26 = vmul.f32 %v6236_v39, %v1547_v50  ;;  %v1543_v15 = vpop.xlane.xlu0 %1542 }
 0x3a6   : > { %v4692_v21 = vpop.eup %4691  ;;  %v1570_v14 = vmul.f32 %v4688_v63, %v1569_v29  ;;  %v1602_v6 = vmul.f32 %v4690_v37, %v6249_v46  ;;  %v6279_v54 = vmul.f32 %v6236_v39, %v1543_v15  ;;  %v1587_v15 = vand.u32 2147483648, %v6256_v49 }
 0x3a7   : > { %v4694_v20 = vpop.eup %4693  ;;  %v1590_v41 = vmul.f32 %v4692_v21, %v6252_v11  ;;  %4695 = vrsqrt.f32 %v6270_v30  ;;  %vm1632_vm14 = vcmp.eq.f32.partialorder %v6270_v30, inf }
 0x3a8   : > { %v1571_v1 = vmul.f32 %v1570_v14, %v6239_v52  ;;  %v1603_v5 = vmul.f32 %v4690_v37, %v1602_v6  ;;  %v1578_v8 = vmul.f32 %v4694_v20, %v6256_v49  ;;  %4697 = vrsqrt.f32 %v6273_v26 }
 0x3a9   : > { %v1591_v24 = vmul.f32 %v4692_v21, %v1590_v41  ;;  %4699 = vrsqrt.f32 %v6279_v54  ;;  %vm1620_vm15 = vcmp.eq.f32.partialorder %v6279_v54, inf  ;;  %vm1622_vm0 = vcmp.eq.f32.partialorder %v6279_v54, 0.0 }
 0x3aa   : > { %v1604_v3 = vmul.f32 0.5, %v1603_v5  ;;  %v1579_v57 = vmul.f32 %v4694_v20, %v1578_v8  ;;  %v1573_v33 = vsel %vm1572_vm5, %v6239_v52, %v1571_v1  ;;  %v1664_v5 = vmul.f32 %v6296_v28, %v6194_v2 }
 0x3ab   : > { %v1592_v13 = vmul.f32 0.5, %v1591_v24  ;;  %v1576_v19 = vsel %vm1574_vm6, %v1575_v17, %v1573_v33  ;;  %v6336_v17 = vld [vmem:[#allocation2 + $0xe0] sm:$0xff]  ;;  %vm1634_vm5 = vcmp.eq.f32.partialorder %v6270_v30, 0.0  ;;  %vm1644_vm6 = vcmp.eq.f32.partialorder %v6273_v26, inf }
 0x3ac   : > { %v1605_v40 = vsub.f32 1.5, %v1604_v3  ;;  %v1580_v9 = vmul.f32 0.5, %v1579_v57  ;;  %v6298_v35 = vadd.f32 1e-06, %v1576_v19  ;;  %v6338_v3 = vld [vmem:[#allocation2 + $0xb0] sm:$0xff]  ;;  %2191 = vrot.lane.b32.xlu1 %v6336_v17, %s5246_s14 }
 0x3ad   : > { %v4696_v38 = vpop.eup %4695  ;;  %v1593_v31 = vsub.f32 1.5, %v1592_v13  ;;  %v6340_v57 = vld [vmem:[#allocation2 + $0x10] sm:$0xff]  ;;  %2171 = vrot.lane.b32.xlu0 %v6338_v3, %s5246_s14 }
 0x3ae   : > { %v6305_v52 = vpop.eup %4697  ;;  %v1606_v60 = vmul.f32 %v4690_v37, %v1605_v40  ;;  %v1581_v55 = vsub.f32 1.5, %v1580_v9  ;;  %v1626_v58 = vmul.f32 %v4696_v38, %v6270_v30  ;;  %4701 = vrcp.f32 %v6298_v35  ;;  %2197 = vrot.lane.b32.xlu2 %v6340_v57, %s5246_s14  ;;  %4133 = vmatpush.xpose.msk.msra.mxu1 %vm1928_vm4, %v6340_v57 }
 0x3af   : > { %v4700_v0 = vpop.eup %4699  ;;  %v1594_v4 = vmul.f32 %v4692_v21, %v1593_v31  ;;  %v1638_v36 = vmul.f32 %v6305_v52, %v6273_v26  ;;  %v6359_v9 = vmul.f32 %v6296_v28, %v6216_v56  ;;  %vm1685_vm1 = vweird.f32 %v6298_v35 }
 0x3b0   : > { %v1607_v63 = vmul.f32 %v1606_v60, %v6249_v46  ;;  %v1582_v25 = vmul.f32 %v4694_v20, %v1581_v55  ;;  %v1627_v23 = vmul.f32 %v4696_v38, %v1626_v58  ;;  %v1614_v45 = vmul.f32 %v4700_v0, %v6279_v54 }
 0x3b1   : > { %v1595_v59 = vmul.f32 %v1594_v4, %v6252_v11  ;;  %v1639_v53 = vmul.f32 %v6305_v52, %v1638_v36  ;;  %v1689_v58 = vand.u32 2147483647, %v6298_v35  ;;  %v1623_v36 = vand.u32 2147483648, %v6279_v54 }
 0x3b2   : > { %v1583_v44 = vmul.f32 %v1582_v25, %v6256_v49  ;;  %v1628_v29 = vmul.f32 0.5, %v1627_v23  ;;  %v1615_v10 = vmul.f32 %v4700_v0, %v1614_v45  ;;  %v1609_v50 = vsel %vm1608_vm10, %v6249_v46, %v1607_v63  ;;  %4134 = vmatpush.xpose.msk.msra.mxu1 %vm1928_vm4, %v6241_v18  ;;  %v7525_v45 = vld [vmem:[#allocation25_spill] sm:$0xff] }
 0x3b3   : > { %v1640_v37 = vmul.f32 0.5, %v1639_v53  ;;  %v1597_v21 = vsel %vm1596_vm8, %v6252_v11, %v1595_v59  ;;  %v1612_v33 = vsel %vm1610_vm11, %v1611_v27, %v1609_v50  ;;  %v6348_v11 = vmul.f32 %v6296_v28, %v6198_v12 }
 0x3b4   : > { %v4702_v14 = vpop.eup %4701  ;;  %v1629_v6 = vsub.f32 1.5, %v1628_v29  ;;  %v1616_v20 = vmul.f32 0.5, %v1615_v10  ;;  %v1585_v41 = vsel %vm1584_vm7, %v6256_v49, %v1583_v44  ;;  %v1600_v1 = vsel %vm1598_vm9, %v1599_v16, %v1597_v21 }
 0x3b5   : > { %v1681_v8 = vmul.f32 %v4702_v14, %v6298_v35  ;;  %v1588_v24 = vsel %vm1586_vm12, %v1587_v15, %v1585_v41  ;;  %v6350_v2 = vadd.f32 1e-06, %v1600_v1  ;;  %v1691_v46 = vand.u32 2147483648, %v6298_v35  ;;  %v6386_v35 = vld [vmem:[#allocation2 + $0x8] sm:$0xff]  ;;  %2645 = vrot.lane.b32.xlu0 %v6227_v7, %s5248_s17 }
 0x3b6   : > { %v1617_v13 = vsub.f32 1.5, %v1616_v20  ;;  %v6344_v49 = vadd.f32 1e-06, %v1588_v24  ;;  %v1630_v19 = vmul.f32 %v4696_v38, %v1629_v6  ;;  %v1641_v12 = vsub.f32 1.5, %v1640_v37  ;;  %2185 = vrot.lane.b32.xlu1 %v6386_v35, %s5246_s14 }
 0x3b7   : > { %v1682_v40 = vsub.f32 1.0, %v1681_v8  ;;  %v6366_v55 = vadd.f32 1e-06, %v1612_v33  ;;  %vm1686_vm13 = vweird.f32 %v4702_v14  ;;  %v1692_v63 = vor.u32 1.1754944e-38, %v1691_v46 }
 0x3b8   : > { %v1618_v31 = vmul.f32 %v4700_v0, %v1617_v13  ;;  %v2202_v60 = vpop.permute.xlu0 %2201  ;;  %4703 = vrcp.f32 %v6344_v49  ;;  %v1631_v0 = vmul.f32 %v1630_v19, %v6270_v30  ;;  %v1642_v16 = vmul.f32 %v6305_v52, %v1641_v12  ;;  %vm1687_vm2 = vmor %vm1685_vm1, %vm1686_vm13 }
 0x3b9   : > { %v1683_v38 = vmul.f32 %v4702_v14, %v1682_v40  ;;  %4155 = vmatpush.xpose.msk.msra.mxu3 %vm1928_vm4, %v2202_v60  ;;  %4705 = vrcp.f32 %v6350_v2  ;;  %vm1690_vm3 = vcmp.eq.f32.partialorder %v1689_v58, 8.507059e+37  ;;  %v6384_v59 = vperm.slane %v7525_v45, 0 }
 0x3ba   : > { %v1619_v56 = vmul.f32 %v1618_v31, %v6279_v54  ;;  %4707 = vrcp.f32 %v6366_v55  ;;  %v1665_v29 = vmul.f32 %v6296_v28, %v6206_v48  ;;  %v1635_v10 = vand.u32 2147483648, %v6270_v30 }
 0x3bb   : > { %v1684_v4 = vadd.f32 %v4702_v14, %v1683_v38  ;;  %v1633_v37 = vsel %vm1632_vm14, %v6270_v30, %v1631_v0  ;;  %v1643_v15 = vmul.f32 %v1642_v16, %v6273_v26  ;;  %vm1646_vm7 = vcmp.eq.f32.partialorder %v6273_v26, 0.0 }
 0x3bc   : > { %v1621_v25 = vsel %vm1620_vm15, %v6279_v54, %v1619_v56  ;;  %v1647_v20 = vand.u32 2147483648, %v6273_v26  ;;  %vm1700_vm8 = vweird.f32 %v6344_v49  ;;  %v1704_v1 = vand.u32 2147483647, %v6344_v49 }
 0x3bd   : > { %v1688_v23 = vsel %vm1687_vm2, %v4702_v14, %v1684_v4  ;;  %v1624_v53 = vsel %vm1622_vm0, %v1623_v36, %v1621_v25  ;;  %v1636_v8 = vsel %vm1634_vm5, %v1635_v10, %v1633_v37  ;;  %vm1715_vm10 = vweird.f32 %v6350_v2  ;;  %2635 = vrot.lane.b32.xlu0 %v6336_v17, %s5248_s17  ;;  %v6453_v10 = vld [vmem:[#allocation2 + $0x70] sm:$0xff] }
 0x3be   : > { %v4704_v27 = vpop.eup %4703  ;;  %v1693_v44 = vsel %vm1690_vm3, %v1692_v63, %v1688_v23  ;;  %v6390_v52 = vadd.f32 1e-06, %v1624_v53  ;;  %v1719_v19 = vand.u32 2147483647, %v6350_v2  ;;  %v6420_v40 = vadd.f32 1e-06, %v1636_v8  ;;  %2193 = vrot.lane.b32.xlu2 %v6453_v10, %s5246_s14  ;;  %4135 = vmatpush.xpose.msk.msra.mxu1 %vm1928_vm4, %v6453_v10 }
 0x3bf   : > { %v1694_v54 = vmul.f32 %v1693_v44, %v1664_v5  ;;  %v1696_v50 = vmul.f32 %v4704_v27, %v6344_v49  ;;  %v4706_v48 = vpop.eup %4705  ;;  %v1706_v5 = vand.u32 2147483648, %v6344_v49  ;;  %vm1701_vm9 = vweird.f32 %v4704_v27 }
 0x3c0   : > { %4709 = vrcp.f32 %v6390_v52  ;;  %v1711_v6 = vmul.f32 %v4706_v48, %v6350_v2  ;;  %v6409_v41 = vpop.eup %4707  ;;  %v1645_v46 = vsel %vm1644_vm6, %v6273_v26, %v1643_v15  ;;  %vm1716_vm11 = vweird.f32 %v4706_v48  ;;  %vm1702_vm12 = vmor %vm1700_vm8, %vm1701_vm9 }
 0x3c1   : > { %v1803_v21 = vadd.f32 %v6384_v59, %v1694_v54  ;;  %v1697_v14 = vsub.f32 1.0, %v1696_v50  ;;  %v1726_v13 = vmul.f32 %v6409_v41, %v6366_v55  ;;  %v1707_v38 = vor.u32 1.1754944e-38, %v1706_v5  ;;  %vm6436_vm14 = vmor %vm1715_vm10, %vm1716_vm11 }
 0x3c2   : > { %v1712_v33 = vsub.f32 1.0, %v1711_v6  ;;  %v1721_v58 = vand.u32 2147483648, %v6350_v2  ;;  %4711 = vrcp.f32 %v6420_v40  ;;  %v1648_v56 = vsel %vm1646_vm7, %v1647_v20, %v1645_v46  ;;  %4136 = vmatpush.xpose.msk.msra.mxu1 %vm1928_vm4, %v6336_v17 }
 0x3c3   : > { %1847 = vmatmul.f32.vlgmr.msra.gmra.mxu0 %v1803_v21  ;;  %v1698_v24 = vmul.f32 %v4704_v27, %v1697_v14  ;;  %v1727_v31 = vsub.f32 1.0, %v1726_v13  ;;  %vm1705_vm13 = vcmp.eq.f32.partialorder %v1704_v1, 8.507059e+37  ;;  %vm6440_vm15 = vcmp.eq.f32.partialorder %v1719_v19, 8.507059e+37 }
 0x3c4   : > { %v1713_v30 = vmul.f32 %v4706_v48, %v1712_v33  ;;  %v1749_v26 = vand.u32 2147483647, %v6390_v52  ;;  %v1722_v2 = vor.u32 1.1754944e-38, %v1721_v58  ;;  %v1751_v44 = vand.u32 2147483648, %v6390_v52 }
 0x3c5   : > { %v1699_v12 = vadd.f32 %v4704_v27, %v1698_v24  ;;  %v1728_v25 = vmul.f32 %v6409_v41, %v1727_v31  ;;  %vm1730_vm0 = vweird.f32 %v6366_v55  ;;  %vm1731_vm1 = vweird.f32 %v6409_v41  ;;  %2629 = vrot.lane.b32.xlu0 %v6386_v35, %s5248_s17 }
 0x3c6   : > { %v4710_v60 = vpop.eup %4709  ;;  %v1714_v4 = vadd.f32 %v4706_v48, %v1713_v30  ;;  %vm1745_vm3 = vweird.f32 %v6390_v52  ;;  %v1736_v15 = vand.u32 2147483648, %v6366_v55  ;;  %vm1750_vm5 = vcmp.eq.f32.partialorder %v1749_v26, 8.507059e+37  ;;  %vm6471_vm6 = vmor %vm1730_vm0, %vm1731_vm1  ;;  %v6489_v30 = vld [vmem:[#allocation2 + $0x80] sm:$0xff]  ;;  %4137 = vmatpush.xpose.msk.msra.mxu1 %vm1928_vm4, %v6246_v62 }
 0x3c7   : > { %v1703_v0 = vsel %vm1702_vm12, %v4704_v27, %v1699_v12  ;;  %v1741_v36 = vmul.f32 %v4710_v60, %v6390_v52  ;;  %v6448_v27 = vadd.f32 1e-06, %v1648_v56  ;;  %vm1746_vm2 = vweird.f32 %v4710_v60  ;;  %2179 = vrot.lane.b32.xlu1 %v6489_v30, %s5246_s14 }
 0x3c8   : > { %v1708_v16 = vsel %vm1705_vm13, %v1707_v38, %v1703_v0  ;;  %v1718_v45 = vsel %vm6436_vm14, %v4706_v48, %v1714_v4  ;;  %v1734_v48 = vand.u32 2147483647, %v6366_v55  ;;  %v1729_v14 = vadd.f32 %v6409_v41, %v1728_v25  ;;  %vm1747_vm7 = vmor %vm1745_vm3, %vm1746_vm2 }
 0x3c9   : > { %v1709_v23 = vmul.f32 %v1708_v16, %v1665_v29  ;;  %v1742_v53 = vsub.f32 1.0, %v1741_v36  ;;  %4713 = vrcp.f32 %v6448_v27  ;;  %v4712_v29 = vpop.eup %4711  ;;  %v1723_v37 = vsel %vm6440_vm15, %v1722_v2, %v1718_v45 }
 0x3ca   : > { %v1756_v20 = vmul.f32 %v4712_v29, %v6420_v40  ;;  %v1752_v52 = vor.u32 1.1754944e-38, %v1751_v44  ;;  %vm1760_vm8 = vweird.f32 %v6420_v40  ;;  %v1764_v1 = vand.u32 2147483647, %v6420_v40 }
 0x3cb   : > { %v1804_v54 = vadd.f32 %v6384_v59, %v1709_v23  ;;  %v1743_v50 = vmul.f32 %v4710_v60, %v1742_v53  ;;  %v1766_v5 = vand.u32 2147483648, %v6420_v40  ;;  %v1724_v8 = vmul.f32 %v1723_v37, %v6348_v11  ;;  %v6521_v53 = vld [vmem:[#allocation2 + $0x38] sm:$0xff]  ;;  %v1890_v37 = vld [vmem:[#allocation2 + $0xe8] sm:$0xff] }
 0x3cc   : > { %v1757_v33 = vsub.f32 1.0, %v1756_v20  ;;  %vm1761_vm9 = vweird.f32 %v4712_v29  ;;  %v1737_v13 = vor.u32 1.1754944e-38, %v1736_v15  ;;  %v1733_v12 = vsel %vm6471_vm6, %v6409_v41, %v1729_v14  ;;  %2187 = vrot.lane.b32.xlu2 %v6521_v53, %s5246_s14  ;;  %4138 = vmatpush.xpose.msk.msra.mxu1 %vm1928_vm4, %v6521_v53  ;;  %v6548_v14 = vld [vmem:[#allocation2 + $0x50] sm:$0xff] }
 0x3cd   : > { %1850 = vmatmul.f32.gmra.mxu0 %v1804_v54  ;;  %v1744_v21 = vadd.f32 %v4710_v60, %v1743_v50  ;;  %vm1735_vm10 = vcmp.eq.f32.partialorder %v1734_v48, 8.507059e+37  ;;  %vm6493_vm11 = vmor %vm1760_vm8, %vm1761_vm9  ;;  %vm6497_vm12 = vcmp.eq.f32.partialorder %v1764_v1, 8.507059e+37  ;;  %v1767_v38 = vor.u32 1.1754944e-38, %v1766_v5  ;;  %3002 = vrot.lane.b32.xlu0 %v6521_v53, %s5249_s5 }
 0x3ce   : > { %v1758_v11 = vmul.f32 %v4712_v29, %v1757_v33  ;;  %v1805_v41 = vadd.f32 %v6384_v59, %v1724_v8  ;;  %vm1775_vm13 = vweird.f32 %v6448_v27  ;;  %v1738_v40 = vsel %vm1735_vm10, %v1737_v13, %v1733_v12 }
 0x3cf   : > { %v1748_v24 = vsel %vm1747_vm7, %v4710_v60, %v1744_v21  ;;  %v4714_v19 = vpop.eup %4713  ;;  %v1781_v4 = vand.u32 2147483648, %v6448_v27  ;;  %v1667_v36 = vmul.f32 %v6296_v28, %v6202_v61  ;;  %v1669_v16 = vmul.f32 %v6296_v28, %v6214_v47  ;;  %v6523_v61 = vld [vmem:[#allocation2 + $0xd8] sm:$0xff] }
 0x3d0   : > { %v1753_v55 = vsel %vm1750_vm5, %v1752_v52, %v1748_v24  ;;  %v1759_v56 = vadd.f32 %v4712_v29, %v1758_v11  ;;  %vm1776_vm14 = vweird.f32 %v4714_v19  ;;  %v1779_v63 = vand.u32 2147483647, %v6448_v27  ;;  %2173 = vrot.lane.b32.xlu1 %v6523_v61, %s5246_s14  ;;  %4139 = vmatpush.xpose.msk.msra.mxu1 %vm1928_vm4, %v6386_v35 }
 0x3d1   : > { %v1754_v46 = vmul.f32 %v1753_v55, %v6359_v9  ;;  %v1771_v9 = vmul.f32 %v4714_v19, %v6448_v27  ;;  %v1739_v23 = vmul.f32 %v1738_v40, %v1667_v36  ;;  %vm1777_vm15 = vmor %vm1775_vm13, %vm1776_vm14  ;;  %v1782_v47 = vor.u32 1.1754944e-38, %v1781_v4 }
 0x3d2   : > { %v1763_v49 = vsel %vm6493_vm11, %v4712_v29, %v1759_v56  ;;  %vm1780_vm0 = vcmp.eq.f32.partialorder %v1779_v63, 8.507059e+37  ;;  %v1670_v29 = vmul.f32 %v6296_v28, %v6221_v51 }
 0x3d3   : > { %v1807_v58 = vadd.f32 %v6384_v59, %v1754_v46  ;;  %v1772_v0 = vsub.f32 1.0, %v1771_v9  ;;  %v1768_v26 = vsel %vm6497_vm12, %v1767_v38, %v1763_v49  ;;  %v1806_v27 = vadd.f32 %v6384_v59, %v1739_v23  ;;  %v6625_v49 = vld [vmem:[#allocation8] ss:$0 sm:$0xff] }
 0x3d4   : > { %v1769_v45 = vmul.f32 %v1768_v26, %v1669_v16  ;;  %2181 = vrot.lane.b32.xlu2 %v1890_v37, %s5246_s14  ;;  %4140 = vmatpush.xpose.msk.msra.mxu1 %vm1928_vm4, %v6265_v32  ;;  %v1671_v38 = vmul.f32 %v6296_v28, %v6232_v34 }
 0x3d5   : > { %1853 = vmatmul.f32.gmra.mxu0 %v1805_v41  ;;  %1859 = vmatmul.f32.vlgmr.msra.gmra.mxu2 %v1807_v58  ;;  %v1773_v25 = vmul.f32 %v4714_v19, %v1772_v0 }
 0x3d6   : > { %v1808_v54 = vadd.f32 %v6384_v59, %v1769_v45  ;;  %3000 = vrot.lane.b32.xlu0 %v6386_v35, %s5249_s5 }
 0x3d7   : > { %v1774_v2 = vadd.f32 %v4714_v19, %v1773_v25 }
 0x3d8   : > { %2643 = vrot.lane.b32.xlu1 %v6263_v43, %s5248_s17  ;;  %4141 = vmatpush.xpose.msk.msra.mxu1 %vm1928_vm4, %v1890_v37 }
 0x3d9   : > { %v1778_v44 = vsel %vm1777_vm15, %v4714_v19, %v1774_v2 }
 0x3da   : > { %v1783_v50 = vsel %vm1780_vm0, %v1782_v47, %v1778_v44 }
 0x3db   : > { %v1784_v48 = vmul.f32 %v1783_v50, %v1670_v29 }
 0x3dc   : > { %2175 = vrot.lane.b32.xlu2 %v6548_v14, %s5246_s14  ;;  %4142 = vmatpush.xpose.msk.msra.mxu1 %vm1928_vm4, %v6489_v30 }
 0x3dd   : > { %1856 = vmatmul.f32.gmra.mxu0 %v1806_v27  ;;  %1862 = vmatmul.f32.gmra.mxu2 %v1808_v54  ;;  %v1809_v21 = vadd.f32 %v6384_v59, %v1784_v48  ;;  %v1915_v48 = vld [vmem:[#allocation11 + $0x18] sm:$0xff] }
 0x3de   : > { %2623 = vrot.lane.b32.xlu0 %v6489_v30, %s5248_s17 }
 0x3e0   : > { %2641 = vrot.lane.b32.xlu1 %v6340_v57, %s5248_s17  ;;  %4143 = vmatpush.xpose.msk.msra.mxu1 %vm1928_vm4, %v6301_v42 }
 0x3e3   : > { %v1549_v15 = vpop.xlane.xlu0 %1548 }
 0x3e4   : > { %v1564_v51 = vmul.f32 %v6236_v39, %v1549_v15  ;;  %3014 = vrot.lane.b32.xlu2 %v6263_v43, %s5249_s5  ;;  %4144 = vmatpush.xpose.msk.msra.mxu1 %vm1928_vm4, %v6548_v14  ;;  %v1914_v15 = vld [vmem:[#allocation11 + $0x10] sm:$0xff] }
 0x3e5   : > { %1865 = vmatmul.f32.gmra.mxu2 %v1809_v21 }
 0x3e6   : > { %4715 = vrsqrt.f32 %v1564_v51  ;;  %2998 = vrot.lane.b32.xlu0 %v6265_v32, %s5249_s5  ;;  %vm1656_vm1 = vcmp.eq.f32.partialorder %v1564_v51, inf  ;;  %v1659_v43 = vand.u32 2147483648, %v1564_v51  ;;  %vm1658_vm2 = vcmp.eq.f32.partialorder %v1564_v51, 0.0 }
 0x3e8   : > { %3016 = vrot.lane.b32.xlu1 %v6227_v7, %s5249_s5  ;;  %4145 = vmatpush.xpose.msk.msra.mxu1 %vm1928_vm4, %v6523_v61 }
 0x3ec   : > { %v4716_v35 = vpop.eup %4715  ;;  %2637 = vrot.lane.b32.xlu2 %v6453_v10, %s5248_s17  ;;  %4146 = vmatpush.xpose.msk.msra.mxu1 %vm1928_vm4, %v6338_v3 }
 0x3ed   : > { %v1650_v6 = vmul.f32 %v4716_v35, %v1564_v51 }
 0x3ee   : > { %2996 = vrot.lane.b32.xlu0 %v1890_v37, %s5249_s5 }
 0x3ef   : > { %v1651_v20 = vmul.f32 %v4716_v35, %v1650_v6 }
 0x3f0   : > { %2639 = vrot.lane.b32.xlu1 %v6241_v18, %s5248_s17  ;;  %2570 = vmatpush.msrb.mxu1 %v1915_v48  ;;  %v1909_v48 = vld [vmem:[#allocation2 + $0xf8] sm:$0xff] }
 0x3f1   : > { %v1652_v52 = vmul.f32 0.5, %v1651_v20 }
 0x3f2   : > { %2571 = vmatpush.msrb.mxu1 %v1914_v15  ;;  %v6770_v15 = vld [vmem:[#allocation2 + $0x28] sm:$0xff] }
 0x3f3   : > { %v1653_v1 = vsub.f32 1.5, %v1652_v52 }
 0x3f4   : > { %3012 = vrot.lane.b32.xlu2 %v6340_v57, %s5249_s5 }
 0x3f5   : > { %v1654_v5 = vmul.f32 %v4716_v35, %v1653_v1 }
 0x3f6   : > { %2619 = vrot.lane.b32.xlu0 %v6548_v14, %s5248_s17  ;;  %v2196_v57 = vpop.permute.xlu0 %2195 }
 0x3f7   : > { %v1655_v8 = vmul.f32 %v1654_v5, %v1564_v51 }
 0x3f8   : > { %2633 = vrot.lane.b32.xlu1 %v6246_v62, %s5248_s17 }
 0x3f9   : > { %v1657_v24 = vsel %vm1656_vm1, %v1564_v51, %v1655_v8  ;;  %v1913_v8 = vld [vmem:[#allocation11 + $0x8] sm:$0xff] }
 0x3fa   : > { %v1660_v7 = vsel %vm1658_vm2, %v1659_v43, %v1657_v24  ;;  %v1912_v43 = vld [vmem:[#allocation11] sm:$0xff]  ;;  %2572 = vmatpush.msrb.mxu1 %v1913_v8  ;;  %v6801_v8 = vld [vmem:[#allocation2 + $0xb8] sm:$0xff] }
 0x3fb   : > { %v1679_v33 = vadd.f32 1e-06, %v1660_v7 }
 0x3fc   : > { %3010 = vrot.lane.b32.xlu2 %v6241_v18, %s5249_s5  ;;  %2573 = vmatpush.msrb.mxu1 %v1912_v43  ;;  %v6803_v43 = vld [vmem:[#allocation2 + $0x88] sm:$0xff] }
 0x3fd   : > { %4717 = vrcp.f32 %v1679_v33  ;;  %v1796_v46 = vand.u32 2147483648, %v1679_v33  ;;  %v1794_v11 = vand.u32 2147483647, %v1679_v33  ;;  %vm1790_vm5 = vweird.f32 %v1679_v33 }
 0x3fe   : > { %2994 = vrot.lane.b32.xlu0 %v6489_v30, %s5249_s5  ;;  %v2190_v18 = vpop.permute.xlu0 %2189  ;;  %v2200_v30 = vpop.permute.xlu1 %2199 }
 0x3ff   : > { %v1797_v60 = vor.u32 1.1754944e-38, %v1796_v46  ;;  %vm1795_vm7 = vcmp.eq.f32.partialorder %v1794_v11, 8.507059e+37  ;;  %4156 = vmatpush.xpose.msk.msra.mxu3 %vm1928_vm4, %v2200_v30 }
 0x400   : > { %2625 = vrot.lane.b32.xlu1 %v1890_v37, %s5248_s17 }
 0x403   : > { %v4718_v55 = vpop.eup %4717 }
 0x404   : > { %v1786_v13 = vmul.f32 %v4718_v55, %v1679_v33  ;;  %vm1791_vm3 = vweird.f32 %v4718_v55  ;;  %3008 = vrot.lane.b32.xlu2 %v6453_v10, %s5249_s5 }
 0x405   : > { %vm1792_vm6 = vmor %vm1790_vm5, %vm1791_vm3 }
 0x406   : > { %v1787_v19 = vsub.f32 1.0, %v1786_v13  ;;  %2617 = vrot.lane.b32.xlu0 %v6523_v61, %s5248_s17  ;;  %v2184_v34 = vpop.permute.xlu0 %2183 }
 0x408   : > { %v1788_v12 = vmul.f32 %v4718_v55, %v1787_v19  ;;  %2992 = vrot.lane.b32.xlu1 %v6301_v42, %s5249_s5  ;;  %v2198_v28 = vpop.permute.xlu2 %2197 }
 0x409   : > { %4157 = vmatpush.xpose.msk.msra.mxu3 %vm1928_vm4, %v2198_v28 }
 0x40a   : > { %v1789_v31 = vadd.f32 %v4718_v55, %v1788_v12 }
 0x40c   : > { %v1793_v9 = vsel %vm1792_vm6, %v4718_v55, %v1789_v31  ;;  %2631 = vrot.lane.b32.xlu2 %v6521_v53, %s5248_s17 }
 0x40d   : > { %v1798_v41 = vsel %vm1795_vm7, %v1797_v60, %v1793_v9  ;;  %4158 = vmatpush.xpose.msk.msra.mxu3 %vm1928_vm4, %v2196_v57 }
 0x40e   : > { %v1799_v58 = vmul.f32 %v1798_v41, %v1671_v38  ;;  %2615 = vrot.lane.b32.xlu0 %v6338_v3, %s5248_s17 }
 0x410   : > { %v1810_v56 = vadd.f32 %v6384_v59, %v1799_v58  ;;  %2988 = vrot.lane.b32.xlu1 %v6523_v61, %s5249_s5  ;;  %v2178_v59 = vpop.permute.xlu0 %2177 }
 0x412   : > { %1868 = vmatmul.f32.gmra.mxu2 %v1810_v56 }
 0x414   : > { %3006 = vrot.lane.b32.xlu2 %v6336_v17, %s5249_s5 }
 0x416   : > { %2990 = vrot.lane.b32.xlu0 %v6548_v14, %s5249_s5 }
 0x418   : > { %v2194_v10 = vpop.permute.xlu2 %2193 }
 0x419   : > { %4159 = vmatpush.xpose.msk.msra.mxu3 %vm1928_vm4, %v2194_v10 }
 0x41c   : > { %3004 = vrot.lane.b32.xlu2 %v6246_v62, %s5249_s5 }
 0x41e   : > { %v2192_v40 = vpop.permute.xlu1 %2191 }
 0x41f   : > { %v2172_v0 = vpop.permute.xlu0 %2171  ;;  %4160 = vmatpush.xpose.msk.msra.mxu3 %vm1928_vm4, %v2192_v40 }
 0x423   : > { %4161 = vmatpush.xpose.msk.msra.mxu3 %vm1928_vm4, %v2190_v18 }
 0x424   : > { %2627 = vrot.lane.b32.xlu2 %v6265_v32, %s5248_s17 }
 0x426   : > { %v2188_v4 = vpop.permute.xlu2 %2187 }
 0x427   : > { %v2646_v17 = vpop.permute.xlu0 %2645  ;;  %4162 = vmatpush.xpose.msk.msra.mxu3 %vm1928_vm4, %v2188_v4 }
 0x428   : > { %v2186_v36 = vpop.permute.xlu1 %2185 }
 0x42b   : > { %4163 = vmatpush.xpose.msk.msra.mxu3 %vm1928_vm4, %v2186_v36 }
 0x42c   : > { %2621 = vrot.lane.b32.xlu2 %v6301_v42, %s5248_s17 }
 0x42e   : > { %v2182_v62 = vpop.permute.xlu2 %2181 }
 0x42f   : > { %v6622_v16 = vpop.permute.xlu0 %2635  ;;  %4164 = vmatpush.xpose.msk.msra.mxu3 %vm1928_vm4, %v2184_v34 }
 0x433   : > { %4165 = vmatpush.xpose.msk.msra.mxu3 %vm1928_vm4, %v2182_v62 }
 0x434   : > { %2986 = vrot.lane.b32.xlu2 %v6338_v3, %s5249_s5 }
 0x436   : > { %v2176_v26 = vpop.permute.xlu2 %2175 }
 0x437   : > { %v6631_v23 = vpop.permute.xlu0 %2629 }
 0x439   : > { %v2180_v42 = vpop.permute.xlu1 %2179 }
 0x43a   : > { %4166 = vmatpush.xpose.msk.msra.mxu3 %vm1928_vm4, %v2180_v42 }
 0x43e   : > { %v3015_v53 = vpop.permute.xlu2 %3014  ;;  %4167 = vmatpush.xpose.msk.msra.mxu3 %vm1928_vm4, %v2178_v59 }
 0x43f   : > { %v6639_v61 = vpop.permute.xlu0 %3002 }
 0x440   : > { %v1848_v32 = vpop.f32.mrf.mxu0 }
 0x441   : > { %v1849_v63 = vadd.f32 %v6625_v49, %v1848_v32 }
 0x442   : > { %v2174_v2 = vpop.permute.xlu1 %2173  ;;  %4168 = vmatpush.xpose.msk.msra.mxu3 %vm1928_vm4, %v2176_v26 }
 0x443   : > { %v1872_v25 = vmul.f32 0.17677669, %v1849_v63 }
 0x445   : > { %2155 = vrot.lane.b32.xlu1 %v1872_v25, %s5246_s14  ;;  %4147 = vmatmul.msk.f32.vlgmr.msra.gmra.mxu1 %vm1928_vm4, %v1872_v25 }
 0x446   : > { %2599 = vrot.lane.b32.xlu0 %v1872_v25, %s5248_s17  ;;  %v2638_v27 = vpop.permute.xlu2 %2637  ;;  %4169 = vmatpush.xpose.msk.msra.mxu3 %vm1928_vm4, %v2174_v2 }
 0x448   : > { %v6651_v50 = vpop.permute.xlu0 %3000 }
 0x44a   : > { %v1851_v45 = vpop.f32.mrf.mxu0  ;;  %v2644_v29 = vpop.permute.xlu1 %2643  ;;  %4170 = vmatpush.xpose.msk.msra.mxu3 %vm1928_vm4, %v2172_v0 }
 0x44b   : > { %v1852_v3 = vadd.f32 %v6625_v49, %v1851_v45 }
 0x44d   : > { %v6641_v47 = vmul.f32 0.17677669, %v1852_v3  ;;  %2970 = vrot.lane.b32.xlu1 %v1872_v25, %s5249_s5 }
 0x44e   : > { %4195 = vmatpush.xpose.msk.msrb.mxu3 %vm1928_vm4, %v2646_v17  ;;  %v3013_v35 = vpop.permute.xlu2 %3012 }
 0x44f   : > { %2601 = vrot.lane.b32.xlu0 %v6641_v47, %s5248_s17  ;;  %4148 = vmatmul.msk.f32.gmra.mxu1 %vm1928_vm4, %v6641_v47 }
 0x450   : > { %v2624_v52 = vpop.permute.xlu0 %2623 }
 0x452   : > { %v1854_v44 = vpop.f32.mrf.mxu0  ;;  %4196 = vmatpush.xpose.msk.msrb.mxu3 %vm1928_vm4, %v2644_v29  ;;  %v2642_v1 = vpop.permute.xlu1 %2641  ;;  %v6765_v29 = vld [vmem:[#allocation2 + $0x98] sm:$0xff] }
 0x453   : > { %v1855_v54 = vadd.f32 %v6625_v49, %v1854_v44  ;;  %2098 = vmatpush.msrb.mxu2 %v6765_v29 }
 0x455   : > { %v6653_v37 = vmul.f32 0.17677669, %v1855_v54  ;;  %2157 = vrot.lane.b32.xlu1 %v6641_v47, %s5246_s14  ;;  %2099 = vmatpush.msrb.mxu2 %v1909_v48 }
 0x456   : > { %4197 = vmatpush.xpose.msk.msrb.mxu3 %vm1928_vm4, %v2642_v1  ;;  %v3011_v33 = vpop.permute.xlu2 %3010  ;;  %v6798_v1 = vld [vmem:[#allocation2 + $0xf0] sm:$0xff] }
 0x457   : > { %4149 = vmatmul.msk.f32.gmra.mxu1 %vm1928_vm4, %v6653_v37  ;;  %2100 = vmatpush.msrb.mxu2 %v6770_v15 }
 0x458   : > { %v1860_v21 = vpop.f32.mrf.mxu2  ;;  %v2999_v13 = vpop.permute.xlu0 %2998 }
 0x459   : > { %v1861_v51 = vadd.f32 %v6625_v49, %v1860_v21  ;;  %v6775_v21 = vld [vmem:[#allocation2 + $0xc0] sm:$0xff] }
 0x45a   : > { %v1857_v14 = vpop.f32.mrf.mxu0  ;;  %v3017_v19 = vpop.permute.xlu1 %3016 }
 0x45b   : > { %v6662_v6 = vmul.f32 0.17677669, %v1861_v51  ;;  %v1858_v20 = vadd.f32 %v6625_v49, %v1857_v14  ;;  %4227 = vmatpush.xpose.msk.msra.mxu1 %vm1928_vm4, %v3017_v19  ;;  %v6778_v51 = vld [vmem:[#allocation2 + $0x90] sm:$0xff]  ;;  %v6820_v19 = vld [vmem:[#allocation2] sm:$0xff] }
 0x45d   : > { %v6666_v5 = vmul.f32 0.17677669, %v1858_v20  ;;  %2163 = vrot.lane.b32.xlu2 %v6662_v6, %s5246_s14  ;;  %v6790_v20 = vld [vmem:[#allocation2 + $0x78] sm:$0xff] }
 0x45e   : > { %v3009_v46 = vpop.permute.xlu2 %3008 }
 0x45f   : > { %4150 = vmatmul.msk.f32.gmra.mxu1 %vm1928_vm4, %v6666_v5 }
 0x460   : > { %v1863_v24 = vpop.f32.mrf.mxu2  ;;  %4228 = vmatpush.xpose.msk.msra.mxu1 %vm1928_vm4, %v3015_v53  ;;  %v2997_v11 = vpop.permute.xlu0 %2996 }
 0x461   : > { %v1864_v7 = vadd.f32 %v6625_v49, %v1863_v24  ;;  %v6807_v24 = vld [vmem:[#allocation2 + $0x48] sm:$0xff] }
 0x462   : > { %v2640_v12 = vpop.permute.xlu1 %2639 }
 0x463   : > { %v6674_v55 = vmul.f32 0.17677669, %v1864_v7  ;;  %4198 = vmatpush.xpose.msk.msrb.mxu3 %vm1928_vm4, %v2640_v12 }
 0x464   : > { %4229 = vmatpush.xpose.msk.msra.mxu1 %vm1928_vm4, %v3013_v35  ;;  %v6785_v35 = vld [vmem:[#allocation2 + $0xc8] sm:$0xff] }
 0x465   : > { %2165 = vrot.lane.b32.xlu0 %v6674_v55, %s5246_s14  ;;  %2161 = vrot.lane.b32.xlu2 %v6666_v5, %s5246_s14 }
 0x466   : > { %v2632_v60 = vpop.permute.xlu2 %2631 }
 0x467   : > { %4151 = vmatmul.msk.f32.gmra.mxu1 %vm1928_vm4, %v6662_v6  ;;  %4199 = vmatpush.xpose.msk.msrb.mxu3 %vm1928_vm4, %v2638_v27 }
 0x468   : > { %v1866_v57 = vpop.f32.mrf.mxu2  ;;  %4230 = vmatpush.xpose.msk.msra.mxu1 %vm1928_vm4, %v3011_v33  ;;  %v2620_v41 = vpop.permute.xlu0 %2619  ;;  %v6812_v33 = vld [vmem:[#allocation2 + $0x68] sm:$0xff] }
 0x469   : > { %v1867_v31 = vadd.f32 %v6625_v49, %v1866_v57 }
 0x46a   : > { %v2634_v9 = vpop.permute.xlu1 %2633 }
 0x46b   : > { %v6693_v38 = vmul.f32 0.17677669, %v1867_v31  ;;  %4200 = vmatpush.xpose.msk.msrb.mxu3 %vm1928_vm4, %v6622_v16 }
 0x46c   : > { %4231 = vmatpush.xpose.msk.msra.mxu1 %vm1928_vm4, %v3009_v46 }
 0x46d   : > { %2159 = vrot.lane.b32.xlu0 %v6653_v37, %s5246_s14 }
 0x46e   : > { %v3007_v58 = vpop.permute.xlu2 %3006 }
 0x46f   : > { %4152 = vmatmul.msk.f32.gmra.mxu1 %vm1928_vm4, %v6674_v55  ;;  %4201 = vmatpush.xpose.msk.msrb.mxu3 %vm1928_vm4, %v2634_v9 }
 0x470   : > { %4232 = vmatpush.xpose.msk.msra.mxu1 %vm1928_vm4, %v3007_v58  ;;  %v2995_v56 = vpop.permute.xlu0 %2994  ;;  %v6843_v58 = vpack.i.bf16 %v1909_v48, %v6765_v29 }
 0x472   : > { %v2626_v28 = vpop.permute.xlu1 %2625 }
 0x473   : > { %4202 = vmatpush.xpose.msk.msrb.mxu3 %vm1928_vm4, %v2632_v60 }
 0x475   : > { %2603 = vrot.lane.b32.xlu0 %v6653_v37, %s5248_s17 }
 0x476   : > { %v3005_v18 = vpop.permute.xlu2 %3004 }
 0x477   : > { %4153 = vmatmul.msk.f32.gmra.mxu1 %vm1928_vm4, %v6693_v38  ;;  %4203 = vmatpush.xpose.msk.msrb.mxu3 %vm1928_vm4, %v6631_v23 }
 0x478   : > { %4233 = vmatpush.xpose.msk.msra.mxu1 %vm1928_vm4, %v3005_v18  ;;  %v2618_v34 = vpop.permute.xlu0 %2617 }
 0x47a   : > { %v2993_v4 = vpop.permute.xlu1 %2992 }
 0x47c   : > { %4234 = vmatpush.xpose.msk.msra.mxu1 %vm1928_vm4, %v6639_v61 }
 0x47d   : > { %2167 = vrot.lane.b32.xlu0 %v6693_v38, %s5246_s14 }
 0x47e   : > { %v2628_v30 = vpop.permute.xlu2 %2627 }
 0x47f   : > { %4204 = vmatpush.xpose.msk.msrb.mxu3 %vm1928_vm4, %v2628_v30 }
 0x480   : > { %4235 = vmatpush.xpose.msk.msra.mxu1 %vm1928_vm4, %v6651_v50  ;;  %v2616_v59 = vpop.permute.xlu0 %2615 }
 0x482   : > { %v2989_v62 = vpop.permute.xlu1 %2988 }
 0x483   : > { %4205 = vmatpush.xpose.msk.msrb.mxu3 %vm1928_vm4, %v2626_v28 }
 0x484   : > { %4236 = vmatpush.xpose.msk.msra.mxu1 %vm1928_vm4, %v2999_v13  ;;  %v6818_v13 = vld [vmem:[#allocation2 + $0x18] sm:$0xff] }
 0x486   : > { %v2622_v0 = vpop.permute.xlu2 %2621 }
 0x487   : > { %4206 = vmatpush.xpose.msk.msrb.mxu3 %vm1928_vm4, %v2624_v52 }
 0x488   : > { %4237 = vmatpush.xpose.msk.msra.mxu1 %vm1928_vm4, %v2997_v11  ;;  %v2991_v36 = vpop.permute.xlu0 %2990 }
 0x48b   : > { %4207 = vmatpush.xpose.msk.msrb.mxu3 %vm1928_vm4, %v2622_v0 }
 0x48c   : > { %4238 = vmatpush.xpose.msk.msra.mxu1 %vm1928_vm4, %v2995_v56 }
 0x48e   : > { %v2987_v16 = vpop.permute.xlu2 %2986 }
 0x48f   : > { %4208 = vmatpush.xpose.msk.msrb.mxu3 %vm1928_vm4, %v2620_v41 }
 0x490   : > { %4239 = vmatpush.xpose.msk.msra.mxu1 %vm1928_vm4, %v2993_v4 }
 0x493   : > { %4209 = vmatpush.xpose.msk.msrb.mxu3 %vm1928_vm4, %v2618_v34 }
 0x494   : > { %4240 = vmatpush.xpose.msk.msra.mxu1 %vm1928_vm4, %v2991_v36 }
 0x495   : > { %v1869_v10 = vpop.f32.mrf.mxu2 }
 0x496   : > { %v1870_v40 = vadd.f32 %v6625_v49, %v1869_v10 }
 0x497   : > { %4210 = vmatpush.xpose.msk.msrb.mxu3 %vm1928_vm4, %v2616_v59 }
 0x498   : > { %v6722_v17 = vmul.f32 0.17677669, %v1870_v40  ;;  %4241 = vmatpush.xpose.msk.msra.mxu1 %vm1928_vm4, %v2989_v62 }
 0x49a   : > { %2169 = vrot.lane.b32.xlu0 %v6722_v17, %s5246_s14  ;;  %4154 = vmatmul.msk.f32.gmra.mxu1 %vm1928_vm4, %v6722_v17 }
 0x49c   : > { %4242 = vmatpush.xpose.msk.msra.mxu1 %vm1928_vm4, %v2987_v16 }
 0x4b7   : > { %v2156_v49 = vpop.permute.xlu1 %2155  ;;  %v2164_v61 = vpop.permute.xlu2 %2163 }
 0x4b8   : > { %4171 = vmatmul.msk.f32.vlgmr.msra.gmra.mxu3 %vm1928_vm4, %v2156_v49  ;;  %v2600_v26 = vpop.permute.xlu0 %2599 }
 0x4bf   : > { %v6736_v32 = vpop.permute.xlu1 %2970  ;;  %v2162_v27 = vpop.permute.xlu2 %2161 }
 0x4c1   : > { %v2602_v42 = vpop.permute.xlu0 %2601 }
 0x4c2   : > { %v6738_v63 = vpop.f32.mrf.mxu1 }
 0x4c3   : > { %2042 = vmax.xlane.f32.xlu1 %v6738_v63 }
 0x4c7   : > { %v2158_v25 = vpop.permute.xlu1 %2157 }
 0x4c8   : > { %4172 = vmatmul.msk.f32.gmra.mxu3 %vm1928_vm4, %v2158_v25 }
 0x4cc   : > { %v6742_v23 = vpop.f32.mrf.mxu1 }
 0x4cd   : > { %2044 = vmax.xlane.f32.xlu2 %v6742_v23 }
 0x4d4   : > { %v6745_v45 = vpop.f32.mrf.mxu1 }
 0x4d5   : > { %2046 = vmax.xlane.f32.xlu0 %v6745_v45 }
 0x4d7   : > { %v2166_v53 = vpop.permute.xlu0 %2165 }
 0x4dc   : > { %v6748_v3 = vpop.f32.mrf.mxu1 }
 0x4dd   : > { %2048 = vmax.xlane.f32.xlu1 %v6748_v3 }
 0x4df   : > { %v2160_v2 = vpop.permute.xlu0 %2159 }
 0x4e0   : > { %4173 = vmatmul.msk.f32.gmra.mxu3 %vm1928_vm4, %v2160_v2 }
 0x4e4   : > { %v6752_v44 = vpop.f32.mrf.mxu1 }
 0x4e5   : > { %2050 = vmax.xlane.f32.xlu2 %v6752_v44 }
 0x4e7   : > { %v2604_v54 = vpop.permute.xlu0 %2603 }
 0x4e8   : > { %4174 = vmatmul.msk.f32.gmra.mxu3 %vm1928_vm4, %v2162_v27 }
 0x4e9   : > { %2605 = vrot.lane.b32.xlu0 %v6666_v5, %s5248_s17 }
 0x4ec   : > { %v6792_v52 = vpop.f32.mrf.mxu1 }
 0x4ef   : > { %v2168_v50 = vpop.permute.xlu0 %2167 }
 0x4f0   : > { %4175 = vmatmul.msk.f32.gmra.mxu3 %vm1928_vm4, %v2164_v61 }
 0x4f4   : > { %v6810_v7 = vpop.f32.mrf.mxu1 }
 0x4f6   : > { %2972 = vrot.lane.b32.xlu1 %v6641_v47, %s5249_s5  ;;  %v6772_v47 = vld [vmem:[#allocation2 + $0xd0] sm:$0xff] }
 0x4f7   : > { %2101 = vmatpush.msrb.mxu2 %v6772_v47 }
 0x4f8   : > { %4176 = vmatmul.msk.f32.gmra.mxu3 %vm1928_vm4, %v2166_v53 }
 0x4f9   : > { %2102 = vmatpush.msrb.mxu2 %v6775_v21 }
 0x4fb   : > { %2103 = vmatpush.msrb.mxu2 %v6778_v51 }
 0x4fd   : > { %2607 = vrot.lane.b32.xlu2 %v6662_v6, %s5248_s17  ;;  %2104 = vmatpush.msrb.mxu2 %v6785_v35 }
 0x500   : > { %4177 = vmatmul.msk.f32.gmra.mxu3 %vm1928_vm4, %v2168_v50  ;;  %v6876_v50 = vpack.i.bf16 %v6798_v1, %v6790_v20 }
 0x505   : > { %2978 = vrot.lane.b32.xlu2 %v6662_v6, %s5249_s5  ;;  %v6787_v6 = vld [vmem:[#allocation2 + $0x58] sm:$0xff] }
 0x506   : > { %2105 = vmatpush.msrb.mxu2 %v6787_v6  ;;  %v6867_v61 = vpack.i.bf16 %v6787_v6, %v6785_v35  ;;  %v6885_v6 = vpack.i.bf16 %v6778_v51, %v6775_v21  ;;  %v6900_v21 = vpack.i.bf16 %v6820_v19, %v6818_v13 }
 0x508   : > { %2106 = vmatpush.msrb.mxu2 %v6790_v20  ;;  %v6889_v20 = vpack.i.bf16 %v6812_v33, %v6807_v24 }
 0x50a   : > { %2107 = vmatpush.msrb.mxu2 %v6798_v1 }
 0x50c   : > { %v2170_v14 = vpop.permute.xlu0 %2169  ;;  %2108 = vmatpush.msrb.mxu2 %v6801_v8 }
 0x50d   : > { %2613 = vrot.lane.b32.xlu2 %v6722_v17, %s5248_s17  ;;  %4178 = vmatmul.msk.f32.gmra.mxu3 %vm1928_vm4, %v2170_v14 }
 0x50e   : > { %2109 = vmatpush.msrb.mxu2 %v6803_v43 }
 0x510   : > { %2110 = vmatpush.msrb.mxu2 %v6807_v24 }
 0x512   : > { %2111 = vmatpush.msrb.mxu2 %v6812_v33 }
 0x513   : > { %2052 = vmax.xlane.f32.xlu0 %v6792_v52 }
 0x514   : > { %2112 = vmatpush.msrb.mxu2 %v6818_v13 }
 0x515   : > { %4211 = vmatmul.msk.f32.vlgmr.msrb.gmra.mxu3 %vm1928_vm4, %v2600_v26 }
 0x516   : > { %2113 = vmatpush.msrb.mxu2 %v6820_v19  ;;  %v6920_v19 = vpack.i.bf16 %v6803_v43, %v6801_v8 }
 0x517   : > { %v6828_v46 = vpop.f32.mrf.mxu1 }
 0x51d   : > { %4212 = vmatmul.msk.f32.gmra.mxu3 %vm1928_vm4, %v2602_v42 }
 0x520   : > { %2054 = vmax.xlane.f32.xlu1 %v6810_v7 }
 0x525   : > { %4213 = vmatmul.msk.f32.gmra.mxu3 %vm1928_vm4, %v2604_v54 }
 0x527   : > { %2976 = vrot.lane.b32.xlu0 %v6666_v5, %s5249_s5 }
 0x52f   : > { %2611 = vrot.lane.b32.xlu0 %v6693_v38, %s5248_s17 }
 0x536   : > { %2056 = vmax.xlane.f32.xlu2 %v6828_v46  ;;  %v2043_v12 = vpop.xlane.xlu1 %2042 }
 0x537   : > { %2982 = vrot.lane.b32.xlu0 %v6693_v38, %s5249_s5  ;;  %v2058_v11 = vsub.f32 %v6738_v63, %v2043_v12 }
 0x539   : > { %v2066_v57 = vmul.f32 1.442695, %v2058_v11  ;;  %2974 = vrot.lane.b32.xlu1 %v6653_v37, %s5249_s5 }
 0x53b   : > { %4719 = vpow2.f32 %v2066_v57  ;;  %v6895_v1 = vpop.f32.mrf.mxu3 }
 0x540   : > { %v2045_v5 = vpop.xlane.xlu2 %2044 }
 0x541   : > { %v4720_v31 = vpop.eup %4719  ;;  %v2059_v60 = vsub.f32 %v6742_v23, %v2045_v5  ;;  %2609 = vrot.lane.b32.xlu1 %v6674_v55, %s5248_s17 }
 0x542   : > { %2114 = vmatmul.f32.vlgmr.msrb.gmra.mxu2 %v4720_v31 }
 0x543   : > { %v2068_v9 = vmul.f32 1.442695, %v2059_v60 }
 0x545   : > { %4721 = vpow2.f32 %v2068_v9 }
 0x548   : > { %v2047_v41 = vpop.xlane.xlu0 %2046 }
 0x549   : > { %v2060_v38 = vsub.f32 %v6745_v45, %v2047_v41  ;;  %2980 = vrot.lane.b32.xlu1 %v6674_v55, %s5249_s5 }
 0x54b   : > { %v4722_v37 = vpop.eup %4721  ;;  %v2070_v56 = vmul.f32 1.442695, %v2060_v38  ;;  %v6904_v51 = vpop.f32.mrf.mxu3 }
 0x54c   : > { %2117 = vmatmul.f32.gmra.mxu2 %v4722_v37 }
 0x54d   : > { %4723 = vpow2.f32 %v2070_v56 }
 0x54e   : > { %4559 = vrot.lane.b32.xlu2 %v6843_v58, %s5246_s14 }
 0x550   : > { %v2049_v18 = vpop.xlane.xlu1 %2048 }
 0x551   : > { %v2061_v30 = vsub.f32 %v6748_v3, %v2049_v18  ;;  %2984 = vrot.lane.b32.xlu1 %v6722_v17, %s5249_s5  ;;  %v6855_v17 = vpack.i.bf16 %v6772_v47, %v6770_v15 }
 0x553   : > { %v4724_v34 = vpop.eup %4723  ;;  %v2072_v28 = vmul.f32 1.442695, %v2061_v30 }
 0x554   : > { %2120 = vmatmul.f32.gmra.mxu2 %v4724_v34 }
 0x555   : > { %4725 = vpow2.f32 %v2072_v28 }
 0x558   : > { %v2051_v55 = vpop.xlane.xlu2 %2050 }
 0x559   : > { %v2062_v59 = vsub.f32 %v6752_v44, %v2051_v55 }
 0x55b   : > { %v4726_v10 = vpop.eup %4725  ;;  %v2074_v40 = vmul.f32 1.442695, %v2062_v59  ;;  %v2606_v0 = vpop.permute.xlu0 %2605 }
 0x55c   : > { %2123 = vmatmul.f32.gmra.mxu2 %v4726_v10  ;;  %4214 = vmatmul.msk.f32.gmra.mxu3 %vm1928_vm4, %v2606_v0 }
 0x55d   : > { %4727 = vpow2.f32 %v2074_v40 }
 0x560   : > { %v2608_v36 = vpop.permute.xlu2 %2607 }
 0x561   : > { %2084 = vadd.xlane.f32.xlu0 %v4722_v37 }
 0x563   : > { %v4728_v4 = vpop.eup %4727  ;;  %v6907_v24 = vpop.f32.mrf.mxu3 }
 0x564   : > { %2126 = vmatmul.f32.gmra.mxu2 %v4728_v4  ;;  %4215 = vmatmul.msk.f32.gmra.mxu3 %vm1928_vm4, %v2608_v36 }
 0x568   : > { %v6860_v63 = vpop.permute.xlu1 %2972  ;;  %v6863_v45 = vpop.permute.xlu2 %2978 }
 0x570   : > { %v2614_v3 = vpop.permute.xlu2 %2613 }
 0x575   : > { %4564 = vrot.lane.b32.xlu0 %v6855_v17, %s5246_s14 }
 0x577   : > { %2082 = vadd.xlane.f32.xlu2 %v4720_v31 }
 0x57b   : > { %2086 = vadd.xlane.f32.xlu1 %v4724_v34 }
 0x583   : > { %2090 = vadd.xlane.f32.xlu1 %v4728_v4 }
 0x586   : > { %v2053_v62 = vpop.xlane.xlu0 %2052 }
 0x587   : > { %v2063_v16 = vsub.f32 %v6792_v52, %v2053_v62 }
 0x589   : > { %v2076_v49 = vmul.f32 1.442695, %v2063_v16 }
 0x58b   : > { %4729 = vpow2.f32 %v2076_v49 }
 0x591   : > { %v4730_v26 = vpop.eup %4729 }
 0x592   : > { %2092 = vadd.xlane.f32.xlu2 %v4730_v26  ;;  %2129 = vmatmul.f32.gmra.mxu2 %v4730_v26 }
 0x593   : > { %v2055_v25 = vpop.xlane.xlu1 %2054 }
 0x594   : > { %v2064_v23 = vsub.f32 %v6810_v7, %v2055_v25  ;;  %v6909_v7 = vpop.f32.mrf.mxu3 }
 0x596   : > { %v2078_v42 = vmul.f32 1.442695, %v2064_v23 }
 0x598   : > { %4731 = vpow2.f32 %v2078_v42 }
 0x599   : > { %v6878_v29 = vpop.permute.xlu0 %2976 }
 0x59e   : > { %v4732_v53 = vpop.eup %4731 }
 0x59f   : > { %2088 = vadd.xlane.f32.xlu0 %v4726_v10  ;;  %2094 = vadd.xlane.f32.xlu1 %v4732_v53 }
 0x5a0   : > { %2132 = vmatmul.f32.gmra.mxu2 %v4732_v53 }
 0x5a1   : > { %v2612_v52 = vpop.permute.xlu0 %2611 }
 0x5a9   : > { %v2057_v2 = vpop.xlane.xlu2 %2056  ;;  %v6911_v33 = vpop.permute.xlu0 %2982 }
 0x5aa   : > { %v2065_v44 = vsub.f32 %v6828_v46, %v2057_v2  ;;  %4574 = vrot.lane.b32.xlu2 %v6867_v61, %s5246_s14  ;;  %v6913_v46 = vpop.f32.mrf.mxu3 }
 0x5ab   : > { %v6872_v27 = vpop.permute.xlu1 %2974 }
 0x5ac   : > { %v2080_v54 = vmul.f32 1.442695, %v2065_v44 }
 0x5ae   : > { %4733 = vpow2.f32 %v2080_v54 }
 0x5b1   : > { %v4560_v48 = vpop.permute.xlu2 %4559 }
 0x5b2   : > { %v4561_v15 = vunpack.i.l.bf16 %v4560_v48  ;;  %v4562_v47 = vunpack.i.h.bf16 %v4560_v48  ;;  %v6922_v31 = vpop.f32.mrf.mxu3 }
 0x5b3   : > { %v2610_v14 = vpop.permute.xlu1 %2609  ;;  %4579 = vrot.lane.b32.xlu0 %v6876_v50, %s5246_s14 }
 0x5b4   : > { %v4734_v35 = vpop.eup %4733  ;;  %4216 = vmatmul.msk.f32.gmra.mxu3 %vm1928_vm4, %v2610_v14  ;;  %2412 = vmatpush.msrb.mxu0 %v4561_v15 }
 0x5b5   : > { %2135 = vmatmul.f32.gmra.mxu2 %v4734_v35 }
 0x5b6   : > { %2413 = vmatpush.msrb.mxu0 %v4562_v47 }
 0x5b8   : > { %4569 = vrot.lane.b32.xlu1 %v6885_v6, %s5246_s14 }
 0x5ba   : > { %v6931_v38 = vpop.f32.mrf.mxu3 }
 0x5bb   : > { %4589 = vrot.lane.b32.xlu0 %v6889_v20, %s5246_s14  ;;  %v6916_v13 = vpop.permute.xlu1 %2980 }
 0x5bc   : > { %4217 = vmatmul.msk.f32.gmra.mxu3 %vm1928_vm4, %v2612_v52 }
 0x5c3   : > { %4594 = vrot.lane.b32.xlu0 %v6900_v21, %s5246_s14  ;;  %v6928_v41 = vpop.permute.xlu1 %2984 }
 0x5c4   : > { %4218 = vmatmul.msk.f32.gmra.mxu3 %vm1928_vm4, %v2614_v3 }
 0x5c5   : > { %v2115_v9 = vpop.f32.mrf.mxu2 }
 0x5cf   : > { %v2118_v18 = vpop.f32.mrf.mxu2 }
 0x5d3   : > { %2096 = vadd.xlane.f32.xlu2 %v4734_v35 }
 0x5d4   : > { %v2085_v12 = vpop.xlane.xlu0 %2084 }
 0x5d7   : > { %v2121_v28 = vpop.f32.mrf.mxu2 }
 0x5df   : > { %v2124_v10 = vpop.f32.mrf.mxu2 }
 0x5e2   : > { %2292 = vmax.xlane.f32.xlu1 %v6895_v1 }
 0x5e7   : > { %v4565_v11 = vpop.permute.xlu0 %4564  ;;  %v2127_v62 = vpop.f32.mrf.mxu2 }
 0x5e8   : > { %v4566_v57 = vunpack.i.l.bf16 %v4565_v11  ;;  %v4567_v5 = vunpack.i.h.bf16 %v4565_v11  ;;  %v6955_v11 = vpop.f32.mrf.mxu3 }
 0x5ea   : > { %v2083_v60 = vpop.xlane.xlu2 %2082  ;;  %2298 = vmax.xlane.f32.xlu1 %v6909_v7  ;;  %2414 = vmatpush.msrb.mxu0 %v4566_v57 }
 0x5eb   : > { %4735 = vrcp.f32 %v2083_v60  ;;  %4584 = vrot.lane.b32.xlu2 %v6920_v19, %s5246_s14 }
 0x5ec   : > { %2415 = vmatpush.msrb.mxu0 %v4567_v5  ;;  %4737 = vrcp.f32 %v2085_v12 }
 0x5ed   : > { %2296 = vmax.xlane.f32.xlu0 %v6907_v24 }
 0x5ee   : > { %v2087_v37 = vpop.xlane.xlu1 %2086 }
 0x5ef   : > { %4739 = vrcp.f32 %v2087_v37 }
 0x5f0   : > { %v6960_v57 = vpop.f32.mrf.mxu3 }
 0x5f1   : > { %v4736_v8 = vpop.eup %4735 }
 0x5f2   : > { %2300 = vmax.xlane.f32.xlu1 %v6913_v46  ;;  %v2147_v43 = vmul.f32 %v4736_v8, %v2115_v9  ;;  %v4738_v56 = vpop.eup %4737 }
 0x5f3   : > { %v2148_v30 = vmul.f32 %v4738_v56, %v2118_v18 }
 0x5f4   : > { %4187 = vmatmul.msk.f32.vlgmr.msrb.gmra.mxu1 %vm1928_vm4, %v2147_v43 }
 0x5f5   : > { %2304 = vmax.xlane.f32.xlu0 %v6931_v38  ;;  %v4740_v34 = vpop.eup %4739 }
 0x5f6   : > { %v2149_v55 = vmul.f32 %v4740_v34, %v2121_v28  ;;  %v2091_v40 = vpop.xlane.xlu1 %2090 }
 0x5fc   : > { %4188 = vmatmul.msk.f32.gmra.mxu1 %vm1928_vm4, %v2148_v30 }
 0x604   : > { %4189 = vmatmul.msk.f32.gmra.mxu1 %vm1928_vm4, %v2149_v55 }
 0x605   : > { %v2093_v16 = vpop.xlane.xlu2 %2092 }
 0x609   : > { %4609 = vrot.lane.b32.xlu0 %v6855_v17, %s5248_s17 }
 0x60b   : > { %4599 = vrot.lane.b32.xlu1 %v6843_v58, %s5248_s17 }
 0x60d   : > { %v4575_v44 = vpop.permute.xlu2 %4574 }
 0x60e   : > { %v4576_v54 = vunpack.i.l.bf16 %v4575_v44  ;;  %v4577_v47 = vunpack.i.h.bf16 %v4575_v44 }
 0x611   : > { %4629 = vrot.lane.b32.xlu0 %v6867_v61, %s5248_s17 }
 0x612   : > { %v2089_v59 = vpop.xlane.xlu0 %2088  ;;  %v2095_v49 = vpop.xlane.xlu1 %2094 }
 0x613   : > { %4619 = vrot.lane.b32.xlu1 %v6885_v6, %s5248_s17  ;;  %4741 = vrcp.f32 %v2089_v59 }
 0x614   : > { %2294 = vmax.xlane.f32.xlu2 %v6904_v51  ;;  %4743 = vrcp.f32 %v2091_v40 }
 0x615   : > { %4745 = vrcp.f32 %v2093_v16  ;;  %v2130_v25 = vpop.f32.mrf.mxu2 }
 0x616   : > { %4747 = vrcp.f32 %v2095_v49 }
 0x619   : > { %4639 = vrot.lane.b32.xlu0 %v6876_v50, %s5248_s17  ;;  %v4742_v0 = vpop.eup %4741 }
 0x61a   : > { %v2150_v4 = vmul.f32 %v4742_v0, %v2124_v10  ;;  %v4744_v36 = vpop.eup %4743 }
 0x61b   : > { %v2151_v26 = vmul.f32 %v4744_v36, %v2127_v62  ;;  %v4746_v23 = vpop.eup %4745  ;;  %v6998_v36 = vpop.f32.mrf.mxu3 }
 0x61c   : > { %2302 = vmax.xlane.f32.xlu2 %v6922_v31  ;;  %4190 = vmatmul.msk.f32.gmra.mxu1 %vm1928_vm4, %v2150_v4  ;;  %v2152_v53 = vmul.f32 %v4746_v23, %v2130_v25  ;;  %v4748_v35 = vpop.eup %4747 }
 0x623   : > { %v2133_v48 = vpop.f32.mrf.mxu2 }
 0x624   : > { %4191 = vmatmul.msk.f32.gmra.mxu1 %vm1928_vm4, %v2151_v26  ;;  %v2153_v52 = vmul.f32 %v4748_v35, %v2133_v48 }
 0x625   : > { %v4580_v15 = vpop.permute.xlu0 %4579 }
 0x626   : > { %v4581_v14 = vunpack.i.l.bf16 %v4580_v15  ;;  %v4582_v12 = vunpack.i.h.bf16 %v4580_v15 }
 0x62a   : > { %v4570_v42 = vpop.permute.xlu1 %4569 }
 0x62b   : > { %v4571_v3 = vunpack.i.l.bf16 %v4570_v42  ;;  %v4572_v2 = vunpack.i.h.bf16 %v4570_v42 }
 0x62c   : > { %4192 = vmatmul.msk.f32.gmra.mxu1 %vm1928_vm4, %v2152_v53 }
 0x62d   : > { %2416 = vmatpush.msrb.mxu0 %v4571_v3  ;;  %v4590_v5 = vpop.permute.xlu0 %4589 }
 0x62e   : > { %v4591_v56 = vunpack.i.l.bf16 %v4590_v5  ;;  %v4592_v18 = vunpack.i.h.bf16 %v4590_v5 }
 0x62f   : > { %2417 = vmatpush.msrb.mxu0 %v4572_v2  ;;  %v7007_v2 = vpop.f32.mrf.mxu3 }
 0x631   : > { %2418 = vmatpush.msrb.mxu0 %v4576_v54 }
 0x633   : > { %2419 = vmatpush.msrb.mxu0 %v4577_v47 }
 0x634   : > { %4604 = vrot.lane.b32.xlu2 %v6843_v58, %s5249_s5  ;;  %4193 = vmatmul.msk.f32.gmra.mxu1 %vm1928_vm4, %v2153_v52 }
 0x635   : > { %2420 = vmatpush.msrb.mxu0 %v4581_v14 }
 0x637   : > { %2421 = vmatpush.msrb.mxu0 %v4582_v12 }
 0x638   : > { %v2136_v9 = vpop.f32.mrf.mxu2 }
 0x63c   : > { %4614 = vrot.lane.b32.xlu2 %v6855_v17, %s5249_s5 }
 0x63d   : > { %2306 = vmax.xlane.f32.xlu1 %v6955_v11 }
 0x643   : > { %2736 = vmax.xlane.f32.xlu0 %v6960_v57 }
 0x644   : > { %4624 = vrot.lane.b32.xlu2 %v6885_v6, %s5249_s5  ;;  %v4595_v6 = vpop.permute.xlu0 %4594 }
 0x645   : > { %v4596_v34 = vunpack.i.l.bf16 %v4595_v6  ;;  %v4597_v28 = vunpack.i.h.bf16 %v4595_v6 }
 0x646   : > { %v2097_v58 = vpop.xlane.xlu2 %2096 }
 0x647   : > { %4749 = vrcp.f32 %v2097_v58 }
 0x64c   : > { %4634 = vrot.lane.b32.xlu2 %v6867_v61, %s5249_s5 }
 0x64d   : > { %v4750_v60 = vpop.eup %4749 }
 0x64e   : > { %v2154_v8 = vmul.f32 %v4750_v60, %v2136_v9  ;;  %v4585_v43 = vpop.permute.xlu2 %4584 }
 0x64f   : > { %v4586_v17 = vunpack.i.l.bf16 %v4585_v43  ;;  %v4587_v37 = vunpack.i.h.bf16 %v4585_v43 }
 0x650   : > { %4194 = vmatmul.msk.f32.gmra.mxu1 %vm1928_vm4, %v2154_v8 }
 0x651   : > { %2422 = vmatpush.msrb.mxu0 %v4586_v17 }
 0x653   : > { %2423 = vmatpush.msrb.mxu0 %v4587_v37 }
 0x654   : > { %4644 = vrot.lane.b32.xlu2 %v6876_v50, %s5249_s5 }
 0x655   : > { %v2293_v30 = vpop.xlane.xlu1 %2292  ;;  %2424 = vmatpush.msrb.mxu0 %v4591_v56 }
 0x656   : > { %v2308_v61 = vsub.f32 %v6895_v1, %v2293_v30  ;;  %4654 = vrot.lane.b32.xlu1 %v6920_v19, %s5249_s5 }
 0x657   : > { %2425 = vmatpush.msrb.mxu0 %v4592_v18  ;;  %4659 = vrot.lane.b32.xlu0 %v6889_v20, %s5248_s17 }
 0x658   : > { %v2316_v55 = vmul.f32 1.442695, %v2308_v61  ;;  %4243 = vmatmul.msk.f32.vlgmr.msra.gmra.mxu1 %vm1928_vm4, %v6736_v32 }
 0x659   : > { %2426 = vmatpush.msrb.mxu0 %v4596_v34 }
 0x65a   : > { %4751 = vpow2.f32 %v2316_v55 }
 0x65b   : > { %2427 = vmatpush.msrb.mxu0 %v4597_v28 }
 0x65c   : > { %4649 = vrot.lane.b32.xlu2 %v6920_v19, %s5248_s17 }
 0x65d   : > { %v2299_v1 = vpop.xlane.xlu1 %2298 }
 0x65e   : > { %4664 = vrot.lane.b32.xlu1 %v6889_v20, %s5249_s5 }
 0x660   : > { %v6981_v50 = vpop.eup %4751  ;;  %4244 = vmatmul.msk.f32.gmra.mxu1 %vm1928_vm4, %v6860_v63  ;;  %v2297_v32 = vpop.xlane.xlu0 %2296 }
 0x661   : > { %2428 = vmatmul.f32.vlgmr.msrb.gmra.mxu0 %v6981_v50  ;;  %v2310_v42 = vsub.f32 %v6907_v24, %v2297_v32  ;;  %v2311_v24 = vsub.f32 %v6909_v7, %v2299_v1 }
 0x663   : > { %v2320_v44 = vmul.f32 1.442695, %v2310_v42  ;;  %v2322_v47 = vmul.f32 1.442695, %v2311_v24 }
 0x665   : > { %v2301_v20 = vpop.xlane.xlu1 %2300 }
 0x666   : > { %4669 = vrot.lane.b32.xlu1 %v6900_v21, %s5248_s17 }
 0x668   : > { %4245 = vmatmul.msk.f32.gmra.mxu1 %vm1928_vm4, %v6872_v27  ;;  %v6992_v19 = vpop.xlane.xlu0 %2304 }
 0x669   : > { %v2314_v6 = vsub.f32 %v6931_v38, %v6992_v19 }
 0x66b   : > { %v2328_v34 = vmul.f32 1.442695, %v2314_v6 }
 0x670   : > { %4246 = vmatmul.msk.f32.gmra.mxu1 %vm1928_vm4, %v6878_v29 }
 0x671   : > { %v7004_v23 = vpop.f32.mrf.mxu1 }
 0x678   : > { %4247 = vmatmul.msk.f32.gmra.mxu1 %vm1928_vm4, %v6863_v45 }
 0x679   : > { %v7016_v48 = vpop.f32.mrf.mxu1 }
 0x67b   : > { %v4610_v63 = vpop.permute.xlu0 %4609 }
 0x67c   : > { %v4611_v0 = vunpack.i.l.bf16 %v4610_v63  ;;  %v4612_v27 = vunpack.i.h.bf16 %v4610_v63 }
 0x67d   : > { %v4600_v59 = vpop.permute.xlu1 %4599 }
 0x67e   : > { %v4602_v10 = vunpack.i.h.bf16 %v4600_v59  ;;  %v4601_v40 = vunpack.i.l.bf16 %v4600_v59 }
 0x680   : > { %4248 = vmatmul.msk.f32.gmra.mxu1 %vm1928_vm4, %v6916_v13  ;;  %2840 = vmatpush.msra.mxu0 %v4601_v40 }
 0x681   : > { %v7022_v12 = vpop.f32.mrf.mxu1 }
 0x682   : > { %2841 = vmatpush.msra.mxu0 %v4602_v10 }
 0x683   : > { %v4630_v4 = vpop.permute.xlu0 %4629 }
 0x684   : > { %2842 = vmatpush.msra.mxu0 %v4611_v0  ;;  %v4631_v13 = vunpack.i.l.bf16 %v4630_v4  ;;  %v4632_v25 = vunpack.i.h.bf16 %v4630_v4 }
 0x685   : > { %2738 = vmax.xlane.f32.xlu2 %v6998_v36  ;;  %v4620_v29 = vpop.permute.xlu1 %4619 }
 0x686   : > { %v4622_v62 = vunpack.i.h.bf16 %v4620_v29  ;;  %v4621_v45 = vunpack.i.l.bf16 %v4620_v29  ;;  %2843 = vmatpush.msra.mxu0 %v4612_v27 }
 0x687   : > { %v2295_v16 = vpop.xlane.xlu2 %2294 }
 0x688   : > { %v2309_v49 = vsub.f32 %v6904_v51, %v2295_v16  ;;  %4249 = vmatmul.msk.f32.gmra.mxu1 %vm1928_vm4, %v6911_v33  ;;  %2844 = vmatpush.msra.mxu0 %v4621_v45 }
 0x68a   : > { %v2318_v26 = vmul.f32 1.442695, %v2309_v49  ;;  %2845 = vmatpush.msra.mxu0 %v4622_v62 }
 0x68b   : > { %v4640_v53 = vpop.permute.xlu0 %4639 }
 0x68c   : > { %4753 = vpow2.f32 %v2318_v26  ;;  %2846 = vmatpush.msra.mxu0 %v4631_v13  ;;  %v4641_v3 = vunpack.i.l.bf16 %v4640_v53  ;;  %v4642_v33 = vunpack.i.h.bf16 %v4640_v53 }
 0x68d   : > { %4755 = vpow2.f32 %v2320_v44 }
 0x68e   : > { %2847 = vmatpush.msra.mxu0 %v4632_v25  ;;  %4757 = vpow2.f32 %v2322_v47 }
 0x68f   : > { %v2303_v51 = vpop.xlane.xlu2 %2302 }
 0x690   : > { %2740 = vmax.xlane.f32.xlu1 %v7007_v2  ;;  %4250 = vmatmul.msk.f32.gmra.mxu1 %vm1928_vm4, %v6928_v41  ;;  %v2312_v41 = vsub.f32 %v6913_v46, %v2301_v20  ;;  %v2313_v8 = vsub.f32 %v6922_v31, %v2303_v51 }
 0x691   : > { %2848 = vmatpush.msra.mxu0 %v4641_v3 }
 0x692   : > { %v7012_v54 = vpop.eup %4753  ;;  %v2324_v58 = vmul.f32 1.442695, %v2312_v41  ;;  %v2326_v46 = vmul.f32 1.442695, %v2313_v8 }
 0x693   : > { %2431 = vmatmul.f32.gmra.mxu0 %v7012_v54  ;;  %v7018_v52 = vpop.eup %4755 }
 0x694   : > { %2849 = vmatpush.msra.mxu0 %v4642_v33  ;;  %v7024_v9 = vpop.eup %4757  ;;  %4759 = vpow2.f32 %v2324_v58 }
 0x695   : > { %4761 = vpow2.f32 %v2326_v46 }
 0x696   : > { %4763 = vpow2.f32 %v2328_v34 }
 0x697   : > { %v4605_v15 = vpop.permute.xlu2 %4604 }
 0x698   : > { %v4607_v14 = vunpack.i.h.bf16 %v4605_v15  ;;  %v4606_v35 = vunpack.i.l.bf16 %v4605_v15 }
 0x699   : > { %v7028_v43 = vpop.f32.mrf.mxu1 }
 0x69a   : > { %3211 = vmatpush.msra.mxu3 %v4606_v35  ;;  %v7030_v18 = vpop.eup %4759 }
 0x69b   : > { %2434 = vmatmul.f32.gmra.mxu0 %v7018_v52  ;;  %v7037_v32 = vpop.eup %4761 }
 0x69c   : > { %3212 = vmatpush.msra.mxu3 %v4607_v14  ;;  %v7041_v59 = vpop.eup %4763 }
 0x69f   : > { %v4615_v7 = vpop.permute.xlu2 %4614 }
 0x6a0   : > { %v4617_v5 = vunpack.i.h.bf16 %v4615_v7  ;;  %v4616_v60 = vunpack.i.l.bf16 %v4615_v7 }
 0x6a1   : > { %v7035_v28 = vpop.f32.mrf.mxu1 }
 0x6a2   : > { %3213 = vmatpush.msra.mxu3 %v4616_v60 }
 0x6a3   : > { %2437 = vmatmul.f32.gmra.mxu0 %v7024_v9 }
 0x6a4   : > { %3214 = vmatpush.msra.mxu3 %v4617_v5 }
 0x6a7   : > { %v4625_v17 = vpop.permute.xlu2 %4624 }
 0x6a8   : > { %v4627_v37 = vunpack.i.h.bf16 %v4625_v17  ;;  %v4626_v56 = vunpack.i.l.bf16 %v4625_v17 }
 0x6a9   : > { %v7043_v10 = vpop.f32.mrf.mxu1 }
 0x6aa   : > { %3215 = vmatpush.msra.mxu3 %v4626_v56 }
 0x6ab   : > { %2440 = vmatmul.f32.gmra.mxu0 %v7030_v18 }
 0x6ac   : > { %3216 = vmatpush.msra.mxu3 %v4627_v37 }
 0x6af   : > { %v4635_v30 = vpop.permute.xlu2 %4634 }
 0x6b0   : > { %v4637_v31 = vunpack.i.h.bf16 %v4635_v30  ;;  %v4636_v61 = vunpack.i.l.bf16 %v4635_v30  ;;  %v2307_v55 = vpop.xlane.xlu1 %2306 }
 0x6b1   : > { %v2315_v1 = vsub.f32 %v6955_v11, %v2307_v55  ;;  %v7049_v11 = vpop.f32.mrf.mxu1 }
 0x6b2   : > { %3217 = vmatpush.msra.mxu3 %v4636_v61 }
 0x6b3   : > { %2443 = vmatmul.f32.gmra.mxu0 %v7037_v32  ;;  %v2330_v38 = vmul.f32 1.442695, %v2315_v1 }
 0x6b4   : > { %3218 = vmatpush.msra.mxu3 %v4637_v31 }
 0x6b5   : > { %4765 = vpow2.f32 %v2330_v38 }
 0x6b6   : > { %v2737_v4 = vpop.xlane.xlu0 %2736 }
 0x6b7   : > { %v4645_v20 = vpop.permute.xlu2 %4644  ;;  %v2752_v42 = vsub.f32 %v6960_v57, %v2737_v4  ;;  %v7057_v57 = vpop.f32.mrf.mxu3 }
 0x6b8   : > { %v4647_v19 = vunpack.i.h.bf16 %v4645_v20  ;;  %v4646_v63 = vunpack.i.l.bf16 %v4645_v20 }
 0x6b9   : > { %v2760_v44 = vmul.f32 1.442695, %v2752_v42 }
 0x6ba   : > { %3219 = vmatpush.msra.mxu3 %v4646_v63 }
 0x6bb   : > { %2446 = vmatmul.f32.gmra.mxu0 %v7041_v59  ;;  %v7046_v29 = vpop.eup %4765  ;;  %4767 = vpow2.f32 %v2760_v44 }
 0x6bc   : > { %3220 = vmatpush.msra.mxu3 %v4647_v19 }
 0x6bf   : > { %v4650_v40 = vpop.permute.xlu2 %4649  ;;  %v7062_v7 = vpop.f32.mrf.mxu3 }
 0x6c0   : > { %v4652_v0 = vunpack.i.h.bf16 %v4650_v40  ;;  %v4651_v27 = vunpack.i.l.bf16 %v4650_v40 }
 0x6c1   : > { %v4768_v14 = vpop.eup %4767 }
 0x6c2   : > { %2850 = vmatpush.msra.mxu0 %v4651_v27 }
 0x6c3   : > { %2449 = vmatmul.f32.gmra.mxu0 %v7046_v29 }
 0x6c4   : > { %2851 = vmatpush.msra.mxu0 %v4652_v0 }
 0x6c7   : > { %v7070_v5 = vpop.f32.mrf.mxu3 }
 0x6c8   : > { %v4655_v62 = vpop.permute.xlu1 %4654 }
 0x6c9   : > { %v4657_v45 = vunpack.i.h.bf16 %v4655_v62  ;;  %v4656_v16 = vunpack.i.l.bf16 %v4655_v62  ;;  %v4660_v49 = vpop.permute.xlu0 %4659 }
 0x6ca   : > { %v4662_v13 = vunpack.i.h.bf16 %v4660_v49  ;;  %v4661_v26 = vunpack.i.l.bf16 %v4660_v49 }
 0x6cb   : > { %3221 = vmatpush.msra.mxu3 %v4656_v16 }
 0x6cc   : > { %2852 = vmatpush.msra.mxu0 %v4661_v26  ;;  %v1917_v26 = vld [vmem:[#allocation11 + $0x28] sm:$0xff] }
 0x6cd   : > { %v7051_v25 = vpop.f32.mrf.mxu1  ;;  %3222 = vmatpush.msra.mxu3 %v4657_v45 }
 0x6ce   : > { %2853 = vmatpush.msra.mxu0 %v4662_v13 }
 0x6cf   : > { %v7077_v37 = vpop.f32.mrf.mxu3 }
 0x6d0   : > { %v4665_v53 = vpop.permute.xlu1 %4664 }
 0x6d1   : > { %v4667_v3 = vunpack.i.h.bf16 %v4665_v53  ;;  %v4666_v51 = vunpack.i.l.bf16 %v4665_v53 }
 0x6d3   : > { %3223 = vmatpush.msra.mxu3 %v4666_v51 }
 0x6d5   : > { %v7054_v33 = vpop.f32.mrf.mxu1  ;;  %3224 = vmatpush.msra.mxu3 %v4667_v3 }
 0x6d6   : > { %3107 = vmax.xlane.f32.xlu2 %v7054_v33 }
 0x6d7   : > { %v7086_v31 = vpop.f32.mrf.mxu3 }
 0x6d8   : > { %v4670_v24 = vpop.permute.xlu1 %4669 }
 0x6d9   : > { %v4672_v15 = vunpack.i.h.bf16 %v4670_v24  ;;  %v4671_v47 = vunpack.i.l.bf16 %v4670_v24 }
 0x6db   : > { %2854 = vmatpush.msra.mxu0 %v4671_v47 }
 0x6dd   : > { %2855 = vmatpush.msra.mxu0 %v4672_v15  ;;  %v3086_v35 = vpop.f32.mrf.mxu1 }
 0x6de   : > { %3109 = vmax.xlane.f32.xlu0 %v3086_v35  ;;  %2856 = vmatmul.f32.vlgmr.msra.gmra.mxu0 %v4768_v14 }
 0x6e5   : > { %v7059_v41 = vpop.f32.mrf.mxu1 }
 0x6e6   : > { %2742 = vmax.xlane.f32.xlu0 %v7057_v57 }
 0x6ed   : > { %v7064_v58 = vpop.f32.mrf.mxu1 }
 0x6ee   : > { %4674 = vrot.lane.b32.xlu2 %v6900_v21, %s5249_s5  ;;  %2744 = vmax.xlane.f32.xlu0 %v7062_v7  ;;  %s7540_s5 = sld [smem:[#allocation38_spill]] }
 0x6ef   : > { %3113 = vmax.xlane.f32.xlu1 %v7064_v58 }
 0x6f5   : > { %v7072_v60 = vpop.f32.mrf.mxu1 }
 0x6f6   : > { %2746 = vmax.xlane.f32.xlu0 %v7070_v5 }
 0x6f7   : > { %3115 = vmax.xlane.f32.xlu1 %v7072_v60 }
 0x6f8   : > { %v2739_v8 = vpop.xlane.xlu2 %2738 }
 0x6f9   : > { %v2753_v17 = vsub.f32 %v6998_v36, %v2739_v8 }
 0x6fb   : > { %v2762_v46 = vmul.f32 1.442695, %v2753_v17 }
 0x6fd   : > { %4769 = vpow2.f32 %v2762_v46  ;;  %v7079_v21 = vpop.f32.mrf.mxu1 }
 0x6fe   : > { %2748 = vmax.xlane.f32.xlu0 %v7077_v37 }
 0x6ff   : > { %3117 = vmax.xlane.f32.xlu1 %v7079_v21 }
 0x703   : > { %v4770_v56 = vpop.eup %4769  ;;  %v2741_v6 = vpop.xlane.xlu1 %2740 }
 0x704   : > { %v2754_v30 = vsub.f32 %v7007_v2, %v2741_v6  ;;  %2859 = vmatmul.f32.gmra.mxu0 %v4770_v56  ;;  %v1919_v2 = vld [vmem:[#allocation11 + $0x38] sm:$0xff] }
 0x705   : > { %v7084_v34 = vpop.f32.mrf.mxu1  ;;  %2505 = vmatpush.msra.mxu2 %v1919_v2  ;;  %v2429_v2 = vpop.f32.mrf.mxu0 }
 0x706   : > { %v2764_v36 = vmul.f32 1.442695, %v2754_v30 }
 0x707   : > { %2750 = vmax.xlane.f32.xlu1 %v7086_v31 }
 0x708   : > { %4771 = vpow2.f32 %v2764_v36  ;;  %v1927_v36 = vld [vmem:[#allocation11 + $0x78] sm:$0xff] }
 0x709   : > { %3304 = vmatpush.msrb.mxu0 %v1927_v36 }
 0x70d   : > { %v7089_v61 = vpop.f32.mrf.mxu1 }
 0x70e   : > { %v4772_v55 = vpop.eup %4771  ;;  %3121 = vmax.xlane.f32.xlu0 %v7089_v61 }
 0x70f   : > { %2334 = vadd.xlane.f32.xlu1 %v7012_v54  ;;  %2862 = vmatmul.f32.gmra.mxu0 %v4772_v55 }
 0x716   : > { %2336 = vadd.xlane.f32.xlu0 %v7018_v52 }
 0x717   : > { %2340 = vadd.xlane.f32.xlu1 %v7030_v18  ;;  %3111 = vmax.xlane.f32.xlu2 %v7059_v41 }
 0x71e   : > { %2342 = vadd.xlane.f32.xlu0 %v7037_v32 }
 0x71f   : > { %2346 = vadd.xlane.f32.xlu1 %v7046_v29  ;;  %3119 = vmax.xlane.f32.xlu2 %v7084_v34 }
 0x726   : > { %2776 = vadd.xlane.f32.xlu0 %v4768_v14 }
 0x727   : > { %2332 = vadd.xlane.f32.xlu2 %v6981_v50 }
 0x72e   : > { %2780 = vadd.xlane.f32.xlu0 %v4772_v55 }
 0x72f   : > { %2338 = vadd.xlane.f32.xlu2 %v7024_v9  ;;  %v1918_v9 = vld [vmem:[#allocation11 + $0x30] sm:$0xff] }
 0x730   : > { %2506 = vmatpush.msra.mxu2 %v1918_v9 }
 0x732   : > { %2507 = vmatpush.msra.mxu2 %v1917_v26 }
 0x737   : > { %2344 = vadd.xlane.f32.xlu2 %v7041_v59 }
 0x73f   : > { %2778 = vadd.xlane.f32.xlu2 %v4770_v56  ;;  %v1923_v56 = vld [vmem:[#allocation11 + $0x58] sm:$0xff] }
 0x749   : > { %v3108_v54 = vpop.xlane.xlu2 %3107 }
 0x74a   : > { %v3123_v52 = vsub.f32 %v7054_v33, %v3108_v54 }
 0x74c   : > { %v3131_v18 = vmul.f32 1.442695, %v3123_v52  ;;  %v1922_v52 = vld [vmem:[#allocation11 + $0x50] sm:$0xff] }
 0x74e   : > { %4773 = vpow2.f32 %v3131_v18 }
 0x751   : > { %v4675_v32 = vpop.permute.xlu2 %4674  ;;  %v3110_v1 = vpop.xlane.xlu0 %3109 }
 0x752   : > { %v4676_v20 = vunpack.i.l.bf16 %v4675_v32  ;;  %v3124_v38 = vsub.f32 %v3086_v35, %v3110_v1  ;;  %v4677_v63 = vunpack.i.h.bf16 %v4675_v32 }
 0x754   : > { %v4774_v19 = vpop.eup %4773  ;;  %v3133_v50 = vmul.f32 1.442695, %v3124_v38  ;;  %3225 = vmatpush.msra.mxu3 %v4676_v20  ;;  %v2432_v20 = vpop.f32.mrf.mxu0 }
 0x755   : > { %3147 = vadd.xlane.f32.xlu1 %v4774_v19 }
 0x756   : > { %4775 = vpow2.f32 %v3133_v50  ;;  %3226 = vmatpush.msra.mxu3 %v4677_v63  ;;  %v1926_v63 = vld [vmem:[#allocation11 + $0x70] sm:$0xff] }
 0x757   : > { %3227 = vmatmul.f32.vlgmr.msra.gmra.mxu3 %v4774_v19  ;;  %3305 = vmatpush.msrb.mxu0 %v1926_v63 }
 0x759   : > { %v2743_v59 = vpop.xlane.xlu0 %2742 }
 0x75a   : > { %v2755_v40 = vsub.f32 %v7057_v57, %v2743_v59 }
 0x75c   : > { %v4776_v0 = vpop.eup %4775  ;;  %v2766_v27 = vmul.f32 1.442695, %v2755_v40 }
 0x75d   : > { %3149 = vadd.xlane.f32.xlu2 %v4776_v0 }
 0x75e   : > { %4777 = vpow2.f32 %v2766_v27  ;;  %v1921_v27 = vld [vmem:[#allocation11 + $0x48] sm:$0xff] }
 0x75f   : > { %3230 = vmatmul.f32.gmra.mxu3 %v4776_v0 }
 0x761   : > { %v2745_v4 = vpop.xlane.xlu0 %2744 }
 0x762   : > { %v3114_v29 = vpop.xlane.xlu1 %3113  ;;  %v2756_v62 = vsub.f32 %v7062_v7, %v2745_v4 }
 0x763   : > { %v3126_v45 = vsub.f32 %v7064_v58, %v3114_v29 }
 0x764   : > { %v4778_v16 = vpop.eup %4777  ;;  %v2768_v49 = vmul.f32 1.442695, %v2756_v62 }
 0x765   : > { %v3137_v13 = vmul.f32 1.442695, %v3126_v45  ;;  %2782 = vadd.xlane.f32.xlu1 %v4778_v16  ;;  %2865 = vmatmul.f32.gmra.mxu0 %v4778_v16 }
 0x766   : > { %4779 = vpow2.f32 %v2768_v49 }
 0x767   : > { %4781 = vpow2.f32 %v3137_v13 }
 0x769   : > { %v2747_v42 = vpop.xlane.xlu0 %2746 }
 0x76a   : > { %v3116_v53 = vpop.xlane.xlu1 %3115  ;;  %v2757_v3 = vsub.f32 %v7070_v5, %v2747_v42  ;;  %v1916_v5 = vld [vmem:[#allocation11 + $0x20] sm:$0xff] }
 0x76b   : > { %v3127_v51 = vsub.f32 %v7072_v60, %v3116_v53  ;;  %2508 = vmatpush.msra.mxu2 %v1916_v5  ;;  %v1920_v53 = vld [vmem:[#allocation11 + $0x40] sm:$0xff] }
 0x76c   : > { %v4780_v44 = vpop.eup %4779  ;;  %v2770_v33 = vmul.f32 1.442695, %v2757_v3 }
 0x76d   : > { %v4782_v24 = vpop.eup %4781  ;;  %v3139_v15 = vmul.f32 1.442695, %v3127_v51  ;;  %2784 = vadd.xlane.f32.xlu2 %v4780_v44  ;;  %2868 = vmatmul.f32.gmra.mxu0 %v4780_v44 }
 0x76e   : > { %4783 = vpow2.f32 %v2770_v33  ;;  %3153 = vadd.xlane.f32.xlu1 %v4782_v24  ;;  %2933 = vmatpush.msrb.mxu2 %v1923_v56 }
 0x76f   : > { %4785 = vpow2.f32 %v3139_v15 }
 0x770   : > { %2934 = vmatpush.msrb.mxu2 %v1922_v52 }
 0x771   : > { %v2749_v47 = vpop.xlane.xlu0 %2748 }
 0x772   : > { %v3118_v14 = vpop.xlane.xlu1 %3117  ;;  %v2758_v35 = vsub.f32 %v7077_v37, %v2749_v47  ;;  %2935 = vmatpush.msrb.mxu2 %v1921_v27 }
 0x773   : > { %v3128_v1 = vsub.f32 %v7079_v21, %v3118_v14  ;;  %v2435_v21 = vpop.f32.mrf.mxu0 }
 0x774   : > { %v4784_v57 = vpop.eup %4783  ;;  %v2772_v7 = vmul.f32 1.442695, %v2758_v35  ;;  %2936 = vmatpush.msrb.mxu2 %v1920_v53 }
 0x775   : > { %v4786_v58 = vpop.eup %4785  ;;  %2871 = vmatmul.f32.gmra.mxu0 %v4784_v57 }
 0x776   : > { %4787 = vpow2.f32 %v2772_v7  ;;  %3155 = vadd.xlane.f32.xlu2 %v4786_v58 }
 0x77a   : > { %v2751_v60 = vpop.xlane.xlu1 %2750 }
 0x77b   : > { %v2759_v8 = vsub.f32 %v7086_v31, %v2751_v60  ;;  %v2438_v49 = vpop.f32.mrf.mxu0 }
 0x77c   : > { %v4788_v17 = vpop.eup %4787 }
 0x77d   : > { %v2774_v46 = vmul.f32 1.442695, %v2759_v8  ;;  %2788 = vadd.xlane.f32.xlu1 %v4788_v17  ;;  %2874 = vmatmul.f32.gmra.mxu0 %v4788_v17 }
 0x77f   : > { %4789 = vpow2.f32 %v2774_v46 }
 0x781   : > { %v3122_v19 = vpop.xlane.xlu0 %3121 }
 0x782   : > { %v2335_v9 = vpop.xlane.xlu1 %2334 }
 0x783   : > { %v2441_v44 = vpop.f32.mrf.mxu0 }
 0x785   : > { %v4790_v6 = vpop.eup %4789 }
 0x786   : > { %2790 = vadd.xlane.f32.xlu2 %v4790_v6  ;;  %2877 = vmatmul.f32.gmra.mxu0 %v4790_v6 }
 0x789   : > { %v2337_v29 = vpop.xlane.xlu0 %2336 }
 0x78a   : > { %v3112_v37 = vpop.xlane.xlu2 %3111  ;;  %v2341_v3 = vpop.xlane.xlu1 %2340 }
 0x78b   : > { %v3125_v30 = vsub.f32 %v7059_v41, %v3112_v37  ;;  %v3141_v41 = vmul.f32 1.442695, %v3128_v1  ;;  %v2444_v14 = vpop.f32.mrf.mxu0 }
 0x78d   : > { %v3135_v55 = vmul.f32 1.442695, %v3125_v30 }
 0x78f   : > { %4791 = vpow2.f32 %v3135_v55 }
 0x791   : > { %v2343_v15 = vpop.xlane.xlu0 %2342 }
 0x792   : > { %v3120_v54 = vpop.xlane.xlu2 %3119 }
 0x793   : > { %v3129_v31 = vsub.f32 %v7084_v34, %v3120_v54  ;;  %v3130_v34 = vsub.f32 %v7089_v61, %v3122_v19  ;;  %v1925_v61 = vld [vmem:[#allocation11 + $0x68] sm:$0xff]  ;;  %v2447_v60 = vpop.f32.mrf.mxu0 }
 0x794   : > { %3306 = vmatpush.msrb.mxu0 %v1925_v61 }
 0x795   : > { %v4792_v18 = vpop.eup %4791  ;;  %v3143_v32 = vmul.f32 1.442695, %v3129_v31  ;;  %v3145_v0 = vmul.f32 1.442695, %v3130_v34 }
 0x796   : > { %3151 = vadd.xlane.f32.xlu0 %v4792_v18  ;;  %3233 = vmatmul.f32.gmra.mxu3 %v4792_v18 }
 0x797   : > { %4793 = vpow2.f32 %v3143_v32 }
 0x799   : > { %v2777_v37 = vpop.xlane.xlu0 %2776 }
 0x79a   : > { %v2333_v38 = vpop.xlane.xlu2 %2332 }
 0x79b   : > { %4795 = vrcp.f32 %v2333_v38  ;;  %v2450_v6 = vpop.f32.mrf.mxu0 }
 0x79c   : > { %4797 = vpow2.f32 %v3141_v41 }
 0x79d   : > { %v4794_v50 = vpop.eup %4793  ;;  %4799 = vrcp.f32 %v2335_v9 }
 0x79e   : > { %3236 = vmatmul.f32.gmra.mxu3 %v4782_v24  ;;  %2786 = vadd.xlane.f32.xlu0 %v4784_v57  ;;  %4801 = vpow2.f32 %v3145_v0  ;;  %v1924_v24 = vld [vmem:[#allocation11 + $0x60] sm:$0xff] }
 0x79f   : > { %3159 = vadd.xlane.f32.xlu1 %v4794_v50  ;;  %4803 = vrcp.f32 %v2337_v29  ;;  %3307 = vmatpush.msrb.mxu0 %v1924_v24 }
 0x7a1   : > { %v4796_v59 = vpop.eup %4795  ;;  %v2781_v19 = vpop.xlane.xlu0 %2780 }
 0x7a2   : > { %v2461_v40 = vmul.f32 %v4796_v59, %v2429_v2  ;;  %v4798_v4 = vpop.eup %4797  ;;  %v2339_v13 = vpop.xlane.xlu2 %2338 }
 0x7a3   : > { %v4800_v62 = vpop.eup %4799  ;;  %4805 = vrcp.f32 %v2339_v13  ;;  %v2857_v52 = vpop.f32.mrf.mxu0 }
 0x7a4   : > { %4179 = vmatmul.msk.f32.vlgmr.msra.gmra.mxu2 %vm1928_vm4, %v2461_v40  ;;  %v2462_v45 = vmul.f32 %v4800_v62, %v2432_v20  ;;  %v4802_v16 = vpop.eup %4801  ;;  %4807 = vrcp.f32 %v2341_v3 }
 0x7a5   : > { %v4804_v26 = vpop.eup %4803  ;;  %4809 = vrcp.f32 %v2343_v15 }
 0x7a6   : > { %3239 = vmatmul.f32.gmra.mxu3 %v4786_v58  ;;  %3157 = vadd.xlane.f32.xlu0 %v4798_v4  ;;  %v2463_v42 = vmul.f32 %v4804_v26, %v2435_v21  ;;  %v2347_v58 = vpop.xlane.xlu1 %2346 }
 0x7a9   : > { %v4806_v51 = vpop.eup %4805 }
 0x7aa   : > { %v2464_v33 = vmul.f32 %v4806_v51, %v2438_v49  ;;  %v4808_v47 = vpop.eup %4807  ;;  %v2345_v57 = vpop.xlane.xlu2 %2344 }
 0x7ab   : > { %v2465_v35 = vmul.f32 %v4808_v47, %v2441_v44  ;;  %v4810_v7 = vpop.eup %4809  ;;  %4811 = vrcp.f32 %v2345_v57  ;;  %v2860_v41 = vpop.f32.mrf.mxu0 }
 0x7ac   : > { %4180 = vmatmul.msk.f32.gmra.mxu2 %vm1928_vm4, %v2462_v45  ;;  %v2466_v5 = vmul.f32 %v4810_v7, %v2444_v14  ;;  %4813 = vrcp.f32 %v2347_v58 }
 0x7ae   : > { %3242 = vmatmul.f32.gmra.mxu3 %v4798_v4  ;;  %3161 = vadd.xlane.f32.xlu0 %v4802_v16 }
 0x7b1   : > { %v4812_v8 = vpop.eup %4811 }
 0x7b2   : > { %v2779_v17 = vpop.xlane.xlu2 %2778  ;;  %v2467_v56 = vmul.f32 %v4812_v8, %v2447_v60  ;;  %v4814_v30 = vpop.eup %4813 }
 0x7b3   : > { %v2468_v54 = vmul.f32 %v4814_v30, %v2450_v6  ;;  %v2863_v9 = vpop.f32.mrf.mxu0 }
 0x7b4   : > { %4181 = vmatmul.msk.f32.gmra.mxu2 %vm1928_vm4, %v2463_v42 }
 0x7b6   : > { %3245 = vmatmul.f32.gmra.mxu3 %v4794_v50 }
 0x7bc   : > { %4182 = vmatmul.msk.f32.gmra.mxu2 %vm1928_vm4, %v2464_v33 }
 0x7be   : > { %3248 = vmatmul.f32.gmra.mxu3 %v4802_v16 }
 0x7c4   : > { %4183 = vmatmul.msk.f32.gmra.mxu2 %vm1928_vm4, %v2465_v35 }
 0x7c8   : > { %v3148_v46 = vpop.xlane.xlu1 %3147 }
 0x7c9   : > { %4815 = vrcp.f32 %v3148_v46 }
 0x7ca   : > { %4817 = vrcp.f32 %v2777_v37 }
 0x7cc   : > { %4184 = vmatmul.msk.f32.gmra.mxu2 %vm1928_vm4, %v2466_v5 }
 0x7cf   : > { %v4816_v55 = vpop.eup %4815 }
 0x7d0   : > { %v3150_v36 = vpop.xlane.xlu2 %3149  ;;  %v4818_v18 = vpop.eup %4817 }
 0x7d1   : > { %4819 = vrcp.f32 %v3150_v36  ;;  %v2889_v1 = vmul.f32 %v4818_v18, %v2857_v52 }
 0x7d2   : > { %4821 = vrcp.f32 %v2779_v17 }
 0x7d3   : > { %4823 = vrcp.f32 %v2781_v19 }
 0x7d4   : > { %4185 = vmatmul.msk.f32.gmra.mxu2 %vm1928_vm4, %v2467_v56 }
 0x7d7   : > { %v4820_v32 = vpop.eup %4819 }
 0x7d8   : > { %v4822_v63 = vpop.eup %4821  ;;  %v2783_v59 = vpop.xlane.xlu1 %2782 }
 0x7d9   : > { %v2890_v50 = vmul.f32 %v4822_v63, %v2860_v41  ;;  %v4824_v34 = vpop.eup %4823  ;;  %4825 = vrcp.f32 %v2783_v59 }
 0x7da   : > { %v3228_v2 = vpop.f32.mrf.mxu3  ;;  %v2891_v40 = vmul.f32 %v4824_v34, %v2863_v9 }
 0x7db   : > { %v3260_v31 = vmul.f32 %v4816_v55, %v3228_v2 }
 0x7dc   : > { %4186 = vmatmul.msk.f32.gmra.mxu2 %vm1928_vm4, %v2468_v54 }
 0x7dd   : > { %4251 = vmatmul.msk.f32.vlgmr.msrb.gmra.mxu0 %vm1928_vm4, %v3260_v31 }
 0x7df   : > { %v4826_v27 = vpop.eup %4825 }
 0x7e0   : > { %v2785_v0 = vpop.xlane.xlu2 %2784 }
 0x7e1   : > { %4827 = vrcp.f32 %v2785_v0  ;;  %v3154_v16 = vpop.xlane.xlu1 %3153  ;;  %v7144_v0 = vld [vmem:[%s7536_s11] ss:$0 sm:$0xff]  ;;  %s4261_s11 = sshll.u32 %s7541_s6, 4  ;;  %s5117_s6 = scalar_lea.hbm %s7542_s30, 256 }
 0x7e2   : > { %v3231_v20 = vpop.f32.mrf.mxu3  ;;  %v2866_v21 = vpop.f32.mrf.mxu0  ;;  %s3955_s12 = sadd.s32 %s4261_s11, %s4260_s9 }
 0x7e3   : > { %v3261_v38 = vmul.f32 %v4820_v32, %v3231_v20  ;;  %v2892_v4 = vmul.f32 %v4826_v27, %v2866_v21  ;;  %s4262_s15 = sshll.u32 %s3955_s12, 3 }
 0x7e4   : > { %4219 = vmatmul.msk.f32.vlgmr.msrb.gmra.mxu2 %vm1928_vm4, %v2889_v1 }
 0x7e5   : > { %4252 = vmatmul.msk.f32.gmra.mxu0 %vm1928_vm4, %v3261_v38 }
 0x7e7   : > { %v4828_v62 = vpop.eup %4827 }
 0x7e9   : > { %v3156_v26 = vpop.xlane.xlu2 %3155 }
 0x7ea   : > { %v2869_v29 = vpop.f32.mrf.mxu0 }
 0x7eb   : > { %v2893_v45 = vmul.f32 %v4828_v62, %v2869_v29  ;;  %v4879_v62 = vld [vmem:[%s6180_s7] sm:$0xff] }
 0x7ec   : > { %4220 = vmatmul.msk.f32.gmra.mxu2 %vm1928_vm4, %v2890_v50 }
 0x7f0   : > { %v2789_v42 = vpop.xlane.xlu1 %2788 }
 0x7f2   : > { %v2872_v13 = vpop.f32.mrf.mxu0 }
 0x7f4   : > { %4221 = vmatmul.msk.f32.gmra.mxu2 %vm1928_vm4, %v2891_v40 }
 0x7f9   : > { %v2791_v15 = vpop.xlane.xlu2 %2790 }
 0x7fa   : > { %v2875_v24 = vpop.f32.mrf.mxu0 }
 0x7fc   : > { %4222 = vmatmul.msk.f32.gmra.mxu2 %vm1928_vm4, %v2892_v4 }
 0x803   : > { %v2878_v58 = vpop.f32.mrf.mxu0 }
 0x804   : > { %4223 = vmatmul.msk.f32.gmra.mxu2 %vm1928_vm4, %v2893_v45 }
 0x809   : > { %v3152_v61 = vpop.xlane.xlu0 %3151 }
 0x811   : > { %v2787_v49 = vpop.xlane.xlu0 %2786 }
 0x812   : > { %4829 = vrcp.f32 %v2787_v49  ;;  %v3160_v30 = vpop.xlane.xlu1 %3159 }
 0x813   : > { %4831 = vrcp.f32 %v3152_v61 }
 0x814   : > { %4833 = vrcp.f32 %v2789_v42 }
 0x815   : > { %4835 = vrcp.f32 %v3154_v16 }
 0x816   : > { %4837 = vrcp.f32 %v2791_v15 }
 0x817   : > { %4839 = vrcp.f32 %v3156_v26  ;;  %v4880_v26 = vld [vmem:[%s6180_s7 + $0x8] sm:$0xff] }
 0x818   : > { %v4830_v53 = vpop.eup %4829 }
 0x819   : > { %v4832_v3 = vpop.eup %4831  ;;  %v3234_v51 = vpop.f32.mrf.mxu3  ;;  %v2894_v44 = vmul.f32 %v4830_v53, %v2872_v13 }
 0x81a   : > { %v3262_v33 = vmul.f32 %v4832_v3, %v3234_v51  ;;  %v4834_v47 = vpop.eup %4833  ;;  %v3158_v8 = vpop.xlane.xlu0 %3157 }
 0x81b   : > { %4224 = vmatmul.msk.f32.gmra.mxu2 %vm1928_vm4, %v2894_v44  ;;  %v4836_v14 = vpop.eup %4835  ;;  %v2895_v35 = vmul.f32 %v4834_v47, %v2875_v24  ;;  %4841 = vrcp.f32 %v3158_v8  ;;  %v4881_v47 = vld [vmem:[%s6180_s7 + $0x10] sm:$0xff] }
 0x81c   : > { %4253 = vmatmul.msk.f32.gmra.mxu0 %vm1928_vm4, %v3262_v33  ;;  %v4838_v60 = vpop.eup %4837  ;;  %4843 = vrcp.f32 %v3160_v30  ;;  %v4883_v30 = vld [vmem:[%s6180_s7 + $0x20] sm:$0xff] }
 0x81d   : > { %v4840_v17 = vpop.eup %4839  ;;  %v2896_v46 = vmul.f32 %v4838_v60, %v2878_v58  ;;  %v4882_v60 = vld [vmem:[%s6180_s7 + $0x18] sm:$0xff] }
 0x821   : > { %v3237_v57 = vpop.f32.mrf.mxu3  ;;  %v4842_v36 = vpop.eup %4841 }
 0x822   : > { %v3263_v7 = vmul.f32 %v4836_v14, %v3237_v57  ;;  %v3162_v31 = vpop.xlane.xlu0 %3161  ;;  %v4844_v52 = vpop.eup %4843 }
 0x823   : > { %4225 = vmatmul.msk.f32.gmra.mxu2 %vm1928_vm4, %v2895_v35  ;;  %4845 = vrcp.f32 %v3162_v31 }
 0x824   : > { %4254 = vmatmul.msk.f32.gmra.mxu0 %vm1928_vm4, %v3263_v7 }
 0x827   : > { %v2510_v5 = vpop.f32.mrf.mxu2 }
 0x828   : > { %v2576_v34 = vadd.f32 %v7004_v23, %v2510_v5 }
 0x829   : > { %v3240_v56 = vpop.f32.mrf.mxu3  ;;  %v4846_v20 = vpop.eup %4845 }
 0x82a   : > { %v3264_v6 = vmul.f32 %v4840_v17, %v3240_v56 }
 0x82b   : > { %4226 = vmatmul.msk.f32.gmra.mxu2 %vm1928_vm4, %v2896_v46 }
 0x82c   : > { %4255 = vmatmul.msk.f32.gmra.mxu0 %vm1928_vm4, %v3264_v6 }
 0x82f   : > { %v2513_v37 = vpop.f32.mrf.mxu2 }
 0x830   : > { %v2579_v29 = vadd.f32 %v7016_v48, %v2513_v37 }
 0x831   : > { %v3243_v55 = vpop.f32.mrf.mxu3 }
 0x832   : > { %v3265_v2 = vmul.f32 %v4842_v36, %v3243_v55 }
 0x834   : > { %4256 = vmatmul.msk.f32.gmra.mxu0 %vm1928_vm4, %v3265_v2 }
 0x837   : > { %v2516_v54 = vpop.f32.mrf.mxu2 }
 0x838   : > { %v2582_v48 = vadd.f32 %v7022_v12, %v2516_v54 }
 0x839   : > { %v3246_v18 = vpop.f32.mrf.mxu3 }
 0x83a   : > { %v3266_v32 = vmul.f32 %v4844_v52, %v3246_v18  ;;  %v4884_v18 = vld [vmem:[%s6180_s7 + $0x28] sm:$0xff] }
 0x83c   : > { %4257 = vmatmul.msk.f32.gmra.mxu0 %vm1928_vm4, %v3266_v32 }
 0x83f   : > { %v2519_v1 = vpop.f32.mrf.mxu2 }
 0x840   : > { %v2585_v15 = vadd.f32 %v7028_v43, %v2519_v1 }
 0x841   : > { %v3249_v38 = vpop.f32.mrf.mxu3 }
 0x842   : > { %v3267_v41 = vmul.f32 %v4846_v20, %v3249_v38 }
 0x844   : > { %4258 = vmatmul.msk.f32.gmra.mxu0 %vm1928_vm4, %v3267_v41  ;;  %v4885_v41 = vld [vmem:[%s6180_s7 + $0x30] sm:$0xff] }
 0x847   : > { %v2522_v19 = vpop.f32.mrf.mxu2 }
 0x848   : > { %v2588_v5 = vadd.f32 %v7035_v28, %v2522_v19 }
 0x84f   : > { %v2525_v63 = vpop.f32.mrf.mxu2 }
 0x850   : > { %v2591_v37 = vadd.f32 %v7043_v10, %v2525_v63 }
 0x857   : > { %v2528_v50 = vpop.f32.mrf.mxu2 }
 0x858   : > { %v2594_v52 = vadd.f32 %v7049_v11, %v2528_v50 }
 0x85a   : > { %v3309_v59 = vpop.f32.mrf.mxu0 }
 0x85f   : > { %v7138_v9 = vpop.f32.mrf.mxu2 }
 0x860   : > { %v2597_v11 = vadd.f32 %v7051_v25, %v7138_v9  ;;  %v4886_v9 = vld [vmem:[%s6180_s7 + $0x38] sm:$0xff]  ;;  %s7539_s7 = sld [smem:[#allocation36_spill]] }
 0x862   : > { %v3312_v23 = vpop.f32.mrf.mxu0 }
 0x867   : > { %v2938_v40 = vpop.f32.mrf.mxu2 }
 0x868   : > { %v2962_v21 = vadd.f32 %v2938_v40, %v2576_v34 }
 0x86a   : > { %v3333_v27 = vadd.f32 %v3309_v59, %v2962_v21 }
 0x86c   : > { %v3345_v4 = vadd.f32 %v7144_v0, %v3333_v27 }
 0x86e   : > { %v7149_v45 = vadd.f32 %v4879_v62, %v3345_v4 }
 0x86f   : > { %v2941_v61 = vpop.f32.mrf.mxu2 }
 0x870   : > { %v2963_v16 = vadd.f32 %v2941_v61, %v2579_v29  ;;  %3363 = vadd.xlane.f32.xlu2 %v7149_v45 }
 0x872   : > { %v3334_v49 = vadd.f32 %v3312_v23, %v2963_v16 }
 0x874   : > { %v3346_v13 = vadd.f32 %v7144_v0, %v3334_v49 }
 0x876   : > { %v7154_v42 = vadd.f32 %v4880_v26, %v3346_v13 }
 0x877   : > { %v2944_v53 = vpop.f32.mrf.mxu2 }
 0x878   : > { %3365 = vadd.xlane.f32.xlu1 %v7154_v42  ;;  %v2964_v3 = vadd.f32 %v2944_v53, %v2582_v48 }
 0x87f   : > { %v2947_v51 = vpop.f32.mrf.mxu2 }
 0x880   : > { %v2965_v35 = vadd.f32 %v2947_v51, %v2585_v15 }
 0x887   : > { %v2950_v58 = vpop.f32.mrf.mxu2 }
 0x888   : > { %v2966_v17 = vadd.f32 %v2950_v58, %v2588_v5 }
 0x899   : > { %v3315_v44 = vpop.f32.mrf.mxu0 }
 0x89a   : > { %v3335_v33 = vadd.f32 %v3315_v44, %v2964_v3 }
 0x89c   : > { %v3347_v24 = vadd.f32 %v7144_v0, %v3335_v33 }
 0x89e   : > { %v7161_v14 = vadd.f32 %v4881_v47, %v3347_v24  ;;  %v2953_v56 = vpop.f32.mrf.mxu2 }
 0x89f   : > { %v2967_v55 = vadd.f32 %v2953_v56, %v2591_v37  ;;  %v3702_v56 = vld [vmem:[#allocation12 + $0xe8] sm:$0xff]  ;;  %v3700_v37 = vld [vmem:[#allocation12 + $0xd8] sm:$0xff] }
 0x8a0   : > { %3367 = vadd.xlane.f32.xlu0 %v7161_v14 }
 0x8a1   : > { %v3318_v57 = vpop.f32.mrf.mxu0 }
 0x8a2   : > { %v3336_v7 = vadd.f32 %v3318_v57, %v2965_v35 }
 0x8a4   : > { %v3348_v12 = vadd.f32 %v7144_v0, %v3336_v7 }
 0x8a6   : > { %v7167_v8 = vadd.f32 %v4882_v60, %v3348_v12  ;;  %v2956_v31 = vpop.f32.mrf.mxu2 }
 0x8a7   : > { %v2968_v1 = vadd.f32 %v2956_v31, %v2594_v52  ;;  %v3693_v52 = vld [vmem:[#allocation12 + $0xa0] sm:$0xff] }
 0x8a8   : > { %3369 = vadd.xlane.f32.xlu2 %v7167_v8 }
 0x8a9   : > { %v3321_v43 = vpop.f32.mrf.mxu0 }
 0x8aa   : > { %v3337_v46 = vadd.f32 %v3321_v43, %v2966_v17  ;;  %v3703_v17 = vld [vmem:[#allocation12 + $0xf0] sm:$0xff]  ;;  %v3704_v43 = vld [vmem:[#allocation12 + $0xf8] sm:$0xff] }
 0x8ab   : > { %3711 = vmatpush.msra.mxu2 %v3703_v17  ;;  %3752 = vmatpush.msrb.mxu1 %v3704_v43  ;;  %v3676_v17 = vld [vmem:[#allocation12 + $0x18] sm:$0xff] }
 0x8ac   : > { %v3349_v6 = vadd.f32 %v7144_v0, %v3337_v46  ;;  %v3701_v46 = vld [vmem:[#allocation12 + $0xe0] sm:$0xff] }
 0x8ad   : > { %3712 = vmatpush.msra.mxu2 %v3701_v46  ;;  %3753 = vmatpush.msrb.mxu1 %v3702_v56  ;;  %v3673_v56 = vld [vmem:[#allocation12] sm:$0xff] }
 0x8ae   : > { %v7173_v36 = vadd.f32 %v4883_v30, %v3349_v6  ;;  %v2959_v63 = vpop.f32.mrf.mxu2  ;;  %v3699_v6 = vld [vmem:[#allocation12 + $0xd0] sm:$0xff]  ;;  %v3697_v30 = vld [vmem:[#allocation12 + $0xc0] sm:$0xff] }
 0x8af   : > { %v2969_v40 = vadd.f32 %v2959_v63, %v2597_v11  ;;  %3713 = vmatpush.msra.mxu2 %v3699_v6  ;;  %3754 = vmatpush.msrb.mxu1 %v3700_v37  ;;  %v3688_v11 = vld [vmem:[#allocation12 + $0x78] sm:$0xff]  ;;  %v3674_v37 = vld [vmem:[#allocation12 + $0x8] sm:$0xff] }
 0x8b0   : > { %3371 = vadd.xlane.f32.xlu1 %v7173_v36 }
 0x8b1   : > { %v3324_v28 = vpop.f32.mrf.mxu0  ;;  %3714 = vmatpush.msra.mxu2 %v3697_v30 }
 0x8b2   : > { %v3338_v2 = vadd.f32 %v3324_v28, %v2967_v55  ;;  %v3698_v55 = vld [vmem:[#allocation12 + $0xc8] sm:$0xff] }
 0x8b3   : > { %3755 = vmatpush.msrb.mxu1 %v3698_v55 }
 0x8b4   : > { %v3350_v54 = vadd.f32 %v7144_v0, %v3338_v2  ;;  %v3695_v2 = vld [vmem:[#allocation12 + $0xb0] sm:$0xff] }
 0x8b5   : > { %3715 = vmatpush.msra.mxu2 %v3695_v2 }
 0x8b6   : > { %v7179_v32 = vadd.f32 %v4884_v18, %v3350_v54  ;;  %v3696_v54 = vld [vmem:[#allocation12 + $0xb8] sm:$0xff]  ;;  %v3694_v18 = vld [vmem:[#allocation12 + $0xa8] sm:$0xff] }
 0x8b7   : > { %3756 = vmatpush.msrb.mxu1 %v3696_v54  ;;  %3716 = vmatpush.msra.mxu2 %v3693_v52 }
 0x8b8   : > { %3373 = vadd.xlane.f32.xlu0 %v7179_v32 }
 0x8b9   : > { %v3327_v10 = vpop.f32.mrf.mxu0  ;;  %3757 = vmatpush.msrb.mxu1 %v3694_v18 }
 0x8ba   : > { %v3339_v20 = vadd.f32 %v3327_v10, %v2968_v1  ;;  %v3691_v1 = vld [vmem:[#allocation12 + $0x90] sm:$0xff]  ;;  %v3692_v10 = vld [vmem:[#allocation12 + $0x98] sm:$0xff] }
 0x8bb   : > { %3717 = vmatpush.msra.mxu2 %v3691_v1  ;;  %3758 = vmatpush.msrb.mxu1 %v3692_v10 }
 0x8bc   : > { %v3351_v38 = vadd.f32 %v7144_v0, %v3339_v20  ;;  %v3689_v20 = vld [vmem:[#allocation12 + $0x80] sm:$0xff] }
 0x8bd   : > { %3718 = vmatpush.msra.mxu2 %v3689_v20 }
 0x8be   : > { %v7184_v19 = vadd.f32 %v4885_v41, %v3351_v38  ;;  %v3690_v38 = vld [vmem:[#allocation12 + $0x88] sm:$0xff] }
 0x8bf   : > { %3759 = vmatpush.msrb.mxu1 %v3690_v38 }
 0x8c0   : > { %3375 = vadd.xlane.f32.xlu1 %v7184_v19 }
 0x8c1   : > { %v3330_v59 = vpop.f32.mrf.mxu0  ;;  %3760 = vmatpush.msrb.mxu1 %v3688_v11 }
 0x8c2   : > { %v3340_v27 = vadd.f32 %v3330_v59, %v2969_v40 }
 0x8c4   : > { %v3352_v62 = vadd.f32 %v7144_v0, %v3340_v27 }
 0x8c6   : > { %v7203_v23 = vadd.f32 %v4886_v9, %v3352_v62 }
 0x8e3   : > { %v3364_v34 = vpop.xlane.xlu2 %3363 }
 0x8e4   : > { %v3379_v50 = vmul.f32 %v3364_v34, %v6190_v22  ;;  %v3687_v34 = vld [vmem:[#allocation12 + $0x70] sm:$0xff] }
 0x8e5   : > { %3719 = vmatpush.msra.mxu2 %v3687_v34 }
 0x8e6   : > { %v7191_v21 = vsub.f32 %v7149_v45, %v3379_v50 }
 0x8e8   : > { %v3395_v4 = vmul.f32 %v7191_v21, %v7191_v21 }
 0x8ea   : > { %3403 = vadd.xlane.f32.xlu2 %v3395_v4  ;;  %v3685_v4 = vld [vmem:[#allocation12 + $0x60] sm:$0xff] }
 0x8eb   : > { %v3366_v29 = vpop.xlane.xlu1 %3365  ;;  %3720 = vmatpush.msra.mxu2 %v3685_v4  ;;  %v7272_v4 = vld [vmem:[%s7538_s29] ss:$0 sm:$0xff]  ;;  %s3957_s29 = scalar_lea.hbm %s7542_s30, %s4262_s15 }
 0x8ec   : > { %v3380_v61 = vmul.f32 %v3366_v29, %v6190_v22  ;;  %v3686_v29 = vld [vmem:[#allocation12 + $0x68] sm:$0xff]  ;;  %s3960_s24 = sshll.u32 %s3957_s29, 4  ;;  %s3961_s24 = int_to_ptr.hbm [resolvable:$true] %s3960_s24 }
 0x8ed   : > { %3761 = vmatpush.msrb.mxu1 %v3686_v29 }
 0x8ee   : > { %v7198_v16 = vsub.f32 %v7154_v42, %v3380_v61 }
 0x8f0   : > { %v3396_v25 = vmul.f32 %v7198_v16, %v7198_v16 }
 0x8f2   : > { %3405 = vadd.xlane.f32.xlu0 %v3396_v25  ;;  %3377 = vadd.xlane.f32.xlu2 %v7203_v23  ;;  %v3683_v25 = vld [vmem:[#allocation12 + $0x50] sm:$0xff] }
 0x8f3   : > { %3721 = vmatpush.msra.mxu2 %v3683_v25 }
 0x913   : > { %v3368_v49 = vpop.xlane.xlu0 %3367 }
 0x914   : > { %v3381_v13 = vmul.f32 %v3368_v49, %v6190_v22 }
 0x916   : > { %v7208_v26 = vsub.f32 %v7161_v14, %v3381_v13  ;;  %v3681_v13 = vld [vmem:[#allocation12 + $0x40] sm:$0xff] }
 0x917   : > { %3722 = vmatpush.msra.mxu2 %v3681_v13 }
 0x918   : > { %v3397_v0 = vmul.f32 %v7208_v26, %v7208_v26 }
 0x91a   : > { %3407 = vadd.xlane.f32.xlu1 %v3397_v0  ;;  %v3682_v0 = vld [vmem:[#allocation12 + $0x48] sm:$0xff] }
 0x91b   : > { %v3370_v53 = vpop.xlane.xlu2 %3369 }
 0x91c   : > { %v3382_v48 = vmul.f32 %v3370_v53, %v6190_v22 }
 0x91e   : > { %v7214_v3 = vsub.f32 %v7167_v8, %v3382_v48  ;;  %v3679_v48 = vld [vmem:[#allocation12 + $0x30] sm:$0xff] }
 0x91f   : > { %3723 = vmatpush.msra.mxu2 %v3679_v48 }
 0x920   : > { %v3398_v51 = vmul.f32 %v7214_v3, %v7214_v3 }
 0x922   : > { %3409 = vadd.xlane.f32.xlu0 %v3398_v51 }
 0x923   : > { %v3372_v44 = vpop.xlane.xlu1 %3371 }
 0x924   : > { %v3383_v33 = vmul.f32 %v3372_v44, %v6190_v22  ;;  %v3680_v44 = vld [vmem:[#allocation12 + $0x38] sm:$0xff] }
 0x926   : > { %v7220_v24 = vsub.f32 %v7173_v36, %v3383_v33 }
 0x928   : > { %v3399_v15 = vmul.f32 %v7220_v24, %v7220_v24 }
 0x92a   : > { %3411 = vadd.xlane.f32.xlu2 %v3399_v15 }
 0x92b   : > { %v3374_v47 = vpop.xlane.xlu0 %3373 }
 0x92c   : > { %v3384_v35 = vmul.f32 %v3374_v47, %v6190_v22  ;;  %v3677_v47 = vld [vmem:[#allocation12 + $0x20] sm:$0xff] }
 0x92d   : > { %3724 = vmatpush.msra.mxu2 %v3677_v47 }
 0x92e   : > { %v7226_v57 = vsub.f32 %v7179_v32, %v3384_v35  ;;  %v3678_v35 = vld [vmem:[#allocation12 + $0x28] sm:$0xff] }
 0x930   : > { %v3400_v7 = vmul.f32 %v7226_v57, %v7226_v57 }
 0x932   : > { %3413 = vadd.xlane.f32.xlu1 %v3400_v7 }
 0x933   : > { %v3376_v58 = vpop.xlane.xlu1 %3375 }
 0x934   : > { %v3385_v12 = vmul.f32 %v3376_v58, %v6190_v22 }
 0x936   : > { %v7232_v5 = vsub.f32 %v7184_v19, %v3385_v12  ;;  %v3675_v12 = vld [vmem:[#allocation12 + $0x10] sm:$0xff] }
 0x937   : > { %3725 = vmatpush.msra.mxu2 %v3675_v12 }
 0x938   : > { %v3401_v60 = vmul.f32 %v7232_v5, %v7232_v5 }
 0x939   : > { %3726 = vmatpush.msra.mxu2 %v3673_v56 }
 0x93a   : > { %3415 = vadd.xlane.f32.xlu0 %v3401_v60 }
 0x95d   : > { %v3404_v28 = vpop.xlane.xlu2 %3403 }
 0x95e   : > { %v7237_v31 = vmul.f32 %v3404_v28, %v6236_v39 }
 0x960   : > { %4847 = vrsqrt.f32 %v7237_v31  ;;  %vm3434_vm4 = vcmp.eq.f32.partialorder %v7237_v31, inf  ;;  %v3437_v60 = vand.u32 2147483648, %v7237_v31  ;;  %vm3436_vm8 = vcmp.eq.f32.partialorder %v7237_v31, 0.0 }
 0x965   : > { %v3406_v41 = vpop.xlane.xlu0 %3405  ;;  %v3378_v63 = vpop.xlane.xlu2 %3377 }
 0x966   : > { %v4848_v50 = vpop.eup %4847  ;;  %v7241_v59 = vmul.f32 %v3406_v41, %v6236_v39  ;;  %v3386_v40 = vmul.f32 %v3378_v63, %v6190_v22  ;;  %v3684_v22 = vld [vmem:[#allocation12 + $0x58] sm:$0xff] }
 0x967   : > { %v3428_v27 = vmul.f32 %v4848_v50, %v7237_v31  ;;  %3762 = vmatpush.msrb.mxu1 %v3684_v22  ;;  %v7265_v41 = vld [vmem:[%s7537_s1] ss:$0 sm:$0xff] }
 0x968   : > { %4849 = vrsqrt.f32 %v7241_v59  ;;  %v7247_v62 = vsub.f32 %v7203_v23, %v3386_v40  ;;  %vm3446_vm9 = vcmp.eq.f32.partialorder %v7241_v59, inf  ;;  %v3449_v54 = vand.u32 2147483648, %v7241_v59 }
 0x969   : > { %v3429_v61 = vmul.f32 %v4848_v50, %v3428_v27  ;;  %3763 = vmatpush.msrb.mxu1 %v3682_v0  ;;  %vm3448_vm10 = vcmp.eq.f32.partialorder %v7241_v59, 0.0  ;;  %v3526_v40 = vmul.f32 %v7265_v41, %v7191_v21 }
 0x96a   : > { %v3402_v9 = vmul.f32 %v7247_v62, %v7247_v62 }
 0x96b   : > { %v3430_v49 = vmul.f32 0.5, %v3429_v61  ;;  %3764 = vmatpush.msrb.mxu1 %v3680_v44 }
 0x96c   : > { %3417 = vadd.xlane.f32.xlu2 %v3402_v9 }
 0x96d   : > { %v3431_v53 = vsub.f32 1.5, %v3430_v49  ;;  %3765 = vmatpush.msrb.mxu1 %v3678_v35 }
 0x96e   : > { %v4850_v51 = vpop.eup %4849 }
 0x96f   : > { %v3432_v33 = vmul.f32 %v4848_v50, %v3431_v53  ;;  %v3440_v15 = vmul.f32 %v4850_v51, %v7241_v59  ;;  %3766 = vmatpush.msrb.mxu1 %v3676_v17 }
 0x971   : > { %v3433_v7 = vmul.f32 %v3432_v33, %v7237_v31  ;;  %v3441_v58 = vmul.f32 %v4850_v51, %v3440_v15  ;;  %3767 = vmatpush.msrb.mxu1 %v3674_v37 }
 0x973   : > { %v3435_v43 = vsel %vm3434_vm4, %v7237_v31, %v3433_v7  ;;  %v3442_v46 = vmul.f32 0.5, %v3441_v58 }
 0x974   : > { %v3438_v6 = vsel %vm3436_vm8, %v3437_v60, %v3435_v43 }
 0x975   : > { %v3534_v30 = vadd.f32 1e-06, %v3438_v6  ;;  %v3443_v55 = vsub.f32 1.5, %v3442_v46 }
 0x977   : > { %4851 = vrcp.f32 %v3534_v30  ;;  %v3444_v28 = vmul.f32 %v4850_v51, %v3443_v55  ;;  %v3553_v38 = vand.u32 2147483648, %v3534_v30  ;;  %v3551_v34 = vand.u32 2147483647, %v3534_v30 }
 0x978   : > { %vm3547_vm12 = vweird.f32 %v3534_v30  ;;  %v3527_v51 = vmul.f32 %v7265_v41, %v7198_v16 }
 0x979   : > { %v3445_v2 = vmul.f32 %v3444_v28, %v7241_v59  ;;  %vm3552_vm14 = vcmp.eq.f32.partialorder %v3551_v34, 8.507059e+37 }
 0x97b   : > { %v3447_v31 = vsel %vm3446_vm9, %v7241_v59, %v3445_v2  ;;  %v3554_v59 = vor.u32 1.1754944e-38, %v3553_v38 }
 0x97c   : > { %v3450_v52 = vsel %vm3448_vm10, %v3449_v54, %v3447_v31 }
 0x97d   : > { %v4852_v18 = vpop.eup %4851  ;;  %v3535_v1 = vadd.f32 1e-06, %v3450_v52 }
 0x97e   : > { %v3543_v10 = vmul.f32 %v4852_v18, %v3534_v30  ;;  %vm3548_vm11 = vweird.f32 %v4852_v18 }
 0x97f   : > { %4853 = vrcp.f32 %v3535_v1  ;;  %vm3549_vm13 = vmor %vm3547_vm12, %vm3548_vm11  ;;  %v3568_v22 = vand.u32 2147483648, %v3535_v1  ;;  %v3566_v0 = vand.u32 2147483647, %v3535_v1  ;;  %vm3562_vm0 = vweird.f32 %v3535_v1 }
 0x980   : > { %v3544_v20 = vsub.f32 1.0, %v3543_v10 }
 0x981   : > { %v3569_v48 = vor.u32 1.1754944e-38, %v3568_v22  ;;  %vm3567_vm2 = vcmp.eq.f32.partialorder %v3566_v0, 8.507059e+37 }
 0x982   : > { %v3545_v63 = vmul.f32 %v4852_v18, %v3544_v20 }
 0x984   : > { %v3546_v11 = vadd.f32 %v4852_v18, %v3545_v63 }
 0x985   : > { %v4854_v50 = vpop.eup %4853 }
 0x986   : > { %v3550_v27 = vsel %vm3549_vm13, %v4852_v18, %v3546_v11  ;;  %v3558_v29 = vmul.f32 %v4854_v50, %v3535_v1  ;;  %vm3563_vm15 = vweird.f32 %v4854_v50 }
 0x987   : > { %v3555_v61 = vsel %vm3552_vm14, %v3554_v59, %v3550_v27  ;;  %vm3564_vm1 = vmor %vm3562_vm0, %vm3563_vm15 }
 0x988   : > { %v3556_v25 = vmul.f32 %v3555_v61, %v3526_v40  ;;  %v3559_v9 = vsub.f32 1.0, %v3558_v29 }
 0x98a   : > { %v3665_v49 = vadd.f32 %v7272_v4, %v3556_v25  ;;  %v3560_v13 = vmul.f32 %v4854_v50, %v3559_v9 }
 0x98c   : > { %3727 = vmatmul.f32.vlgmr.msra.gmra.mxu2 %v3665_v49  ;;  %3768 = vmatmul.f32.vlgmr.msrb.gmra.mxu1 %v3665_v49  ;;  %v3561_v21 = vadd.f32 %v4854_v50, %v3560_v13 }
 0x98d   : > { %v3408_v53 = vpop.xlane.xlu1 %3407 }
 0x98e   : > { %v3421_v44 = vmul.f32 %v3408_v53, %v6236_v39  ;;  %v3565_v33 = vsel %vm3564_vm1, %v4854_v50, %v3561_v21 }
 0x98f   : > { %v3570_v15 = vsel %vm3567_vm2, %v3569_v48, %v3565_v33 }
 0x990   : > { %4855 = vrsqrt.f32 %v3421_v44  ;;  %v3571_v47 = vmul.f32 %v3570_v15, %v3527_v51  ;;  %vm3458_vm3 = vcmp.eq.f32.partialorder %v3421_v44, inf  ;;  %v3461_v2 = vand.u32 2147483648, %v3421_v44 }
 0x991   : > { %vm3460_vm5 = vcmp.eq.f32.partialorder %v3421_v44, 0.0 }
 0x992   : > { %v3666_v35 = vadd.f32 %v7272_v4, %v3571_v47 }
 0x994   : > { %3730 = vmatmul.f32.gmra.mxu2 %v3666_v35  ;;  %3771 = vmatmul.f32.gmra.mxu1 %v3666_v35 }
 0x995   : > { %v3410_v7 = vpop.xlane.xlu0 %3409 }
 0x996   : > { %v4856_v58 = vpop.eup %4855  ;;  %v3422_v12 = vmul.f32 %v3410_v7, %v6236_v39 }
 0x997   : > { %v3452_v60 = vmul.f32 %v4856_v58, %v3421_v44 }
 0x998   : > { %4857 = vrsqrt.f32 %v3422_v12  ;;  %vm3470_vm6 = vcmp.eq.f32.partialorder %v3422_v12, inf  ;;  %v3473_v59 = vand.u32 2147483648, %v3422_v12  ;;  %vm3472_vm7 = vcmp.eq.f32.partialorder %v3422_v12, 0.0 }
 0x999   : > { %v3453_v17 = vmul.f32 %v4856_v58, %v3452_v60 }
 0x99b   : > { %v3454_v43 = vmul.f32 0.5, %v3453_v17 }
 0x99d   : > { %v3455_v16 = vsub.f32 1.5, %v3454_v43  ;;  %v3412_v46 = vpop.xlane.xlu2 %3411 }
 0x99e   : > { %v4858_v56 = vpop.eup %4857  ;;  %v3423_v6 = vmul.f32 %v3412_v46, %v6236_v39 }
 0x99f   : > { %v3456_v37 = vmul.f32 %v4856_v58, %v3455_v16  ;;  %v3464_v30 = vmul.f32 %v4858_v56, %v3422_v12 }
 0x9a0   : > { %4859 = vrsqrt.f32 %v3423_v6  ;;  %vm3482_vm4 = vcmp.eq.f32.partialorder %v3423_v6, inf  ;;  %v3485_v15 = vand.u32 2147483648, %v3423_v6  ;;  %vm3484_vm9 = vcmp.eq.f32.partialorder %v3423_v6, 0.0 }
 0x9a1   : > { %v3457_v55 = vmul.f32 %v3456_v37, %v3421_v44  ;;  %v3465_v28 = vmul.f32 %v4858_v56, %v3464_v30  ;;  %v3528_v37 = vmul.f32 %v7265_v41, %v7208_v26 }
 0x9a3   : > { %v3466_v54 = vmul.f32 0.5, %v3465_v28  ;;  %v3459_v31 = vsel %vm3458_vm3, %v3421_v44, %v3457_v55 }
 0x9a4   : > { %v3462_v52 = vsel %vm3460_vm5, %v3461_v2, %v3459_v31 }
 0x9a5   : > { %v3467_v18 = vsub.f32 1.5, %v3466_v54  ;;  %v3414_v1 = vpop.xlane.xlu1 %3413  ;;  %v3536_v10 = vadd.f32 1e-06, %v3462_v52 }
 0x9a6   : > { %v4860_v20 = vpop.eup %4859  ;;  %v7282_v38 = vmul.f32 %v3414_v1, %v6236_v39 }
 0x9a7   : > { %v3468_v63 = vmul.f32 %v4858_v56, %v3467_v18  ;;  %v3476_v34 = vmul.f32 %v4860_v20, %v3423_v6  ;;  %4861 = vrcp.f32 %v3536_v10  ;;  %v3583_v33 = vand.u32 2147483648, %v3536_v10 }
 0x9a8   : > { %4863 = vrsqrt.f32 %v7282_v38  ;;  %v3581_v35 = vand.u32 2147483647, %v3536_v10  ;;  %vm3577_vm10 = vweird.f32 %v3536_v10  ;;  %vm3494_vm13 = vcmp.eq.f32.partialorder %v7282_v38, inf }
 0x9a9   : > { %v3469_v11 = vmul.f32 %v3468_v63, %v3422_v12  ;;  %v3477_v50 = vmul.f32 %v4860_v20, %v3476_v34  ;;  %v3584_v16 = vor.u32 1.1754944e-38, %v3583_v33  ;;  %v3497_v18 = vand.u32 2147483648, %v7282_v38 }
 0x9aa   : > { %vm3582_vm12 = vcmp.eq.f32.partialorder %v3581_v35, 8.507059e+37  ;;  %vm3496_vm15 = vcmp.eq.f32.partialorder %v7282_v38, 0.0 }
 0x9ab   : > { %v3478_v40 = vmul.f32 0.5, %v3477_v50  ;;  %v3471_v27 = vsel %vm3470_vm6, %v3422_v12, %v3469_v11 }
 0x9ac   : > { %v3474_v29 = vsel %vm3472_vm7, %v3473_v59, %v3471_v27 }
 0x9ad   : > { %v4862_v61 = vpop.eup %4861  ;;  %v3479_v25 = vsub.f32 1.5, %v3478_v40  ;;  %v3416_v9 = vpop.xlane.xlu0 %3415  ;;  %v7285_v22 = vadd.f32 1e-06, %v3474_v29 }
 0x9ae   : > { %v4864_v49 = vpop.eup %4863  ;;  %v7288_v13 = vmul.f32 %v3416_v9, %v6236_v39  ;;  %v3573_v0 = vmul.f32 %v4862_v61, %v3536_v10  ;;  %vm3578_vm8 = vweird.f32 %v4862_v61 }
 0x9af   : > { %v3480_v21 = vmul.f32 %v4860_v20, %v3479_v25  ;;  %v3488_v53 = vmul.f32 %v4864_v49, %v7282_v38  ;;  %4865 = vrcp.f32 %v7285_v22  ;;  %vm3579_vm11 = vmor %vm3577_vm10, %vm3578_vm8  ;;  %v3598_v26 = vand.u32 2147483648, %v7285_v22 }
 0x9b0   : > { %4867 = vrsqrt.f32 %v7288_v13  ;;  %v3574_v48 = vsub.f32 1.0, %v3573_v0  ;;  %v3596_v63 = vand.u32 2147483647, %v7285_v22  ;;  %vm3592_vm0 = vweird.f32 %v7285_v22 }
 0x9b1   : > { %v3481_v51 = vmul.f32 %v3480_v21, %v3423_v6  ;;  %v3489_v44 = vmul.f32 %v4864_v49, %v3488_v53  ;;  %v3599_v29 = vor.u32 1.1754944e-38, %v3598_v26  ;;  %v3529_v25 = vmul.f32 %v7265_v41, %v7214_v3 }
 0x9b2   : > { %v3575_v47 = vmul.f32 %v4862_v61, %v3574_v48  ;;  %vm3597_vm2 = vcmp.eq.f32.partialorder %v3596_v63, 8.507059e+37  ;;  %vm3506_vm3 = vcmp.eq.f32.partialorder %v7288_v13, inf  ;;  %v3509_v48 = vand.u32 2147483648, %v7288_v13 }
 0x9b3   : > { %v3490_v7 = vmul.f32 0.5, %v3489_v44  ;;  %v3483_v58 = vsel %vm3482_vm4, %v3423_v6, %v3481_v51  ;;  %vm3508_vm6 = vcmp.eq.f32.partialorder %v7288_v13, 0.0 }
 0x9b4   : > { %v3576_v12 = vadd.f32 %v4862_v61, %v3575_v47  ;;  %v3486_v60 = vsel %vm3484_vm9, %v3485_v15, %v3483_v58 }
 0x9b5   : > { %v4866_v17 = vpop.eup %4865  ;;  %v3491_v43 = vsub.f32 1.5, %v3490_v7  ;;  %v7293_v46 = vadd.f32 1e-06, %v3486_v60  ;;  %v3530_v60 = vmul.f32 %v7265_v41, %v7220_v24 }
 0x9b6   : > { %v4868_v56 = vpop.eup %4867  ;;  %v3580_v30 = vsel %vm3579_vm11, %v4862_v61, %v3576_v12  ;;  %v3588_v55 = vmul.f32 %v4866_v17, %v7285_v22  ;;  %vm3593_vm14 = vweird.f32 %v4866_v17 }
 0x9b7   : > { %v3492_v28 = vmul.f32 %v4864_v49, %v3491_v43  ;;  %v3500_v6 = vmul.f32 %v4868_v56, %v7288_v13  ;;  %v3585_v2 = vsel %vm3582_vm12, %v3584_v16, %v3580_v30  ;;  %4869 = vrcp.f32 %v7293_v46  ;;  %vm3594_vm1 = vmor %vm3592_vm0, %vm3593_vm14 }
 0x9b8   : > { %v3586_v54 = vmul.f32 %v3585_v2, %v3528_v37  ;;  %v3589_v31 = vsub.f32 1.0, %v3588_v55  ;;  %v3613_v51 = vand.u32 2147483648, %v7293_v46  ;;  %v3611_v33 = vand.u32 2147483647, %v7293_v46 }
 0x9b9   : > { %v3493_v52 = vmul.f32 %v3492_v28, %v7282_v38  ;;  %v3501_v1 = vmul.f32 %v4868_v56, %v3500_v6  ;;  %vm3607_vm7 = vweird.f32 %v7293_v46  ;;  %v3531_v2 = vmul.f32 %v7265_v41, %v7226_v57  ;;  %v3823_v57 = vld [vmem:[#allocation14 + $0x70] sm:$0xff] }
 0x9ba   : > { %v3667_v10 = vadd.f32 %v7272_v4, %v3586_v54  ;;  %v3590_v20 = vmul.f32 %v4866_v17, %v3589_v31  ;;  %v3614_v58 = vor.u32 1.1754944e-38, %v3613_v51  ;;  %vm3612_vm8 = vcmp.eq.f32.partialorder %v3611_v33, 8.507059e+37  ;;  %v3834_v51 = vld [vmem:[#allocation14 + $0xc8] sm:$0xff] }
 0x9bb   : > { %v3502_v34 = vmul.f32 0.5, %v3501_v1  ;;  %v3495_v11 = vsel %vm3494_vm13, %v7282_v38, %v3493_v52 }
 0x9bc   : > { %3733 = vmatmul.f32.gmra.mxu2 %v3667_v10  ;;  %3774 = vmatmul.f32.gmra.mxu1 %v3667_v10  ;;  %v3591_v50 = vadd.f32 %v4866_v17, %v3590_v20  ;;  %v3498_v59 = vsel %vm3496_vm15, %v3497_v18, %v3495_v11 }
 0x9bd   : > { %v4870_v40 = vpop.eup %4869  ;;  %v3503_v27 = vsub.f32 1.5, %v3502_v34  ;;  %v3539_v61 = vadd.f32 1e-06, %v3498_v59  ;;  %v3840_v34 = vld [vmem:[#allocation14 + $0xf8] sm:$0xff] }
 0x9be   : > { %v3595_v9 = vsel %vm3594_vm1, %v4866_v17, %v3591_v50  ;;  %v3603_v49 = vmul.f32 %v4870_v40, %v7293_v46  ;;  %vm3608_vm5 = vweird.f32 %v4870_v40  ;;  %v3839_v50 = vld [vmem:[#allocation14 + $0xf0] sm:$0xff]  ;;  %v3824_v59 = vld [vmem:[#allocation14 + $0x78] sm:$0xff]  ;;  %3886 = vmatpush.msra.mxu0 %v3840_v34 }
 0x9bf   : > { %v3504_v0 = vmul.f32 %v4868_v56, %v3503_v27  ;;  %v3600_v38 = vsel %vm3597_vm2, %v3599_v29, %v3595_v9  ;;  %4871 = vrcp.f32 %v3539_v61  ;;  %vm3609_vm4 = vmor %vm3607_vm7, %vm3608_vm5  ;;  %v3628_v37 = vand.u32 2147483648, %v3539_v61  ;;  %3845 = vmatpush.msrb.mxu3 %v3824_v59 }
 0x9c0   : > { %v3601_v21 = vmul.f32 %v3600_v38, %v3529_v25  ;;  %v3604_v53 = vsub.f32 1.0, %v3603_v49  ;;  %v3626_v46 = vand.u32 2147483647, %v3539_v61  ;;  %vm3622_vm10 = vweird.f32 %v3539_v61  ;;  %v3822_v25 = vld [vmem:[#allocation14 + $0x68] sm:$0xff]  ;;  %3887 = vmatpush.msra.mxu0 %v3839_v50  ;;  %v3821_v38 = vld [vmem:[#allocation14 + $0x60] sm:$0xff] }
 0x9c1   : > { %v3505_v22 = vmul.f32 %v3504_v0, %v7288_v13  ;;  %v3629_v24 = vor.u32 1.1754944e-38, %v3628_v37  ;;  %v3532_v27 = vmul.f32 %v7265_v41, %v7232_v5  ;;  %3846 = vmatpush.msrb.mxu3 %v3823_v57  ;;  %v3837_v0 = vld [vmem:[#allocation14 + $0xe0] sm:$0xff]  ;;  %v3835_v5 = vld [vmem:[#allocation14 + $0xd0] sm:$0xff]  ;;  %v3705_v50 = vld [vmem:[%s7539_s7] sm:$0x3]  ;;  %s5111_s7 = sshra.s32 %s3961_s24, 4  ;;  %s5112_s7 = int_to_ptr.hbm [resolvable:$true] %s5111_s7 }
 0x9c2   : > { %v3668_v44 = vadd.f32 %v7272_v4, %v3601_v21  ;;  %v3605_v3 = vmul.f32 %v4870_v40, %v3604_v53  ;;  %vm3627_vm12 = vcmp.eq.f32.partialorder %v3626_v46, 8.507059e+37  ;;  %v3836_v53 = vld [vmem:[#allocation14 + $0xd8] sm:$0xff]  ;;  %v3827_v37 = vld [vmem:[#allocation14 + $0x90] sm:$0xff]  ;;  %v3826_v46 = vld [vmem:[#allocation14 + $0x88] sm:$0xff]  ;;  %s5113_s14 = scalar_lea.hbm %s5112_s7, 64  ;;  %p5118_p13 = scmp.lt.s32.totalorder %s5112_s7, %s7542_s30 }
 0x9c3   : > { %v3507_v15 = vsel %vm3506_vm3, %v7288_v13, %v3505_v22  ;;  %3847 = vmatpush.msrb.mxu3 %v3822_v25  ;;  %v3820_v22 = vld [vmem:[#allocation14 + $0x58] sm:$0xff]  ;;  %v3533_v25 = vmul.f32 %v7265_v41, %v7247_v62  ;;  %p5114_p8 = scmp.ne.s32.totalorder %s5112_s7, %s5113_s14  ;;  %p5119_p0 = scmp.lt.s32.totalorder %s5117_s6, %s5113_s14 }
 0x9c4   : > { %3736 = vmatmul.f32.gmra.mxu2 %v3668_v44  ;;  %3777 = vmatmul.f32.gmra.mxu1 %v3668_v44  ;;  %v3606_v47 = vadd.f32 %v4870_v40, %v3605_v3  ;;  %v3510_v35 = vsel %vm3508_vm6, %v3509_v48, %v3507_v15  ;;  %v3819_v48 = vld [vmem:[#allocation14 + $0x50] sm:$0xff]  ;;  %v3818_v44 = vld [vmem:[#allocation14 + $0x48] sm:$0xff]  ;;  %v3833_v15 = vld [vmem:[#allocation14 + $0xc0] sm:$0xff] }
 0x9c5   : > { %v4872_v7 = vpop.eup %4871  ;;  %v3540_v12 = vadd.f32 1e-06, %v3510_v35  ;;  %3848 = vmatpush.msrb.mxu3 %v3821_v38  ;;  %v3832_v35 = vld [vmem:[#allocation14 + $0xb8] sm:$0xff]  ;;  %p5115_p9 = pnand %p5114_p8, %p5484_p7  ;;  %p5120_p2 = por %p5119_p0, %p5118_p13 }
 0x9c6   : > { %v3610_v17 = vsel %vm3609_vm4, %v4870_v40, %v3606_v47  ;;  %v3618_v43 = vmul.f32 %v4872_v7, %v3539_v61  ;;  %vm3623_vm9 = vweird.f32 %v4872_v7  ;;  %v3838_v61 = vld [vmem:[#allocation14 + $0xe8] sm:$0xff]  ;;  %v3817_v47 = vld [vmem:[#allocation14 + $0x40] sm:$0xff] }
 0x9c7   : > { %v3615_v16 = vsel %vm3612_vm8, %v3614_v58, %v3610_v17  ;;  %4873 = vrcp.f32 %v3540_v12  ;;  %vm3624_vm11 = vmor %vm3622_vm10, %vm3623_vm9  ;;  %v3643_v26 = vand.u32 2147483648, %v3540_v12  ;;  %v3641_v63 = vand.u32 2147483647, %v3540_v12  ;;  %3888 = vmatpush.msra.mxu0 %v3838_v61  ;;  %3849 = vmatpush.msrb.mxu3 %v3820_v22  ;;  %v3831_v58 = vld [vmem:[#allocation14 + $0xb0] sm:$0xff]  ;;  %p5116_p12 = pneg %p5115_p9 }
 0x9c8   : > { %v3616_v56 = vmul.f32 %v3615_v16, %v3530_v60  ;;  %v3619_v13 = vsub.f32 1.0, %v3618_v43  ;;  %vm3637_vm14 = vweird.f32 %v3540_v12  ;;  %v3830_v60 = vld [vmem:[#allocation14 + $0xa8] sm:$0xff]  ;;  %v3829_v43 = vld [vmem:[#allocation14 + $0xa0] sm:$0xff] }
 0x9c9   : > { %v3644_v40 = vor.u32 1.1754944e-38, %v3643_v26  ;;  %vm3642_vm0 = vcmp.eq.f32.partialorder %v3641_v63, 8.507059e+37  ;;  %3889 = vmatpush.msra.mxu0 %v3837_v0  ;;  %3850 = vmatpush.msrb.mxu3 %v3819_v48  ;;  %p5121_p4 = pnand %p5120_p2, %p5116_p12 }
 0x9ca   : > { %v3669_v30 = vadd.f32 %v7272_v4, %v3616_v56  ;;  %v3620_v55 = vmul.f32 %v4872_v7, %v3619_v13  ;;  %v3814_v13 = vld [vmem:[#allocation14 + $0x28] sm:$0xff] }
 0x9cb   : > { %3890 = vmatpush.msra.mxu0 %v3836_v53  ;;  %3851 = vmatpush.msrb.mxu3 %v3818_v44 }
 0x9cc   : > { %3739 = vmatmul.f32.gmra.mxu2 %v3669_v30  ;;  %3780 = vmatmul.f32.gmra.mxu1 %v3669_v30  ;;  %v3621_v28 = vadd.f32 %v4872_v7, %v3620_v55  ;;  %v3813_v30 = vld [vmem:[#allocation14 + $0x20] sm:$0xff] }
 0x9cd   : > { %v4874_v6 = vpop.eup %4873  ;;  %3891 = vmatpush.msra.mxu0 %v3835_v5  ;;  %3852 = vmatpush.msrb.mxu3 %v3817_v47  ;;  %v3707_v5 = vperm.slane %v3705_v50, 0 }
 0x9ce   : > { %v3625_v54 = vsel %vm3624_vm11, %v4872_v7, %v3621_v28  ;;  %v3633_v31 = vmul.f32 %v4874_v6, %v3540_v12  ;;  %vm3638_vm13 = vweird.f32 %v4874_v6  ;;  %v3816_v7 = vld [vmem:[#allocation14 + $0x38] sm:$0xff]  ;;  %v3815_v12 = vld [vmem:[#allocation14 + $0x30] sm:$0xff] }
 0x9cf   : > { %v3630_v52 = vsel %vm3627_vm12, %v3629_v24, %v3625_v54  ;;  %vm3639_vm15 = vmor %vm3637_vm14, %vm3638_vm13  ;;  %3892 = vmatpush.msra.mxu0 %v3834_v51  ;;  %3853 = vmatpush.msrb.mxu3 %v3816_v7  ;;  %v3812_v28 = vld [vmem:[#allocation14 + $0x18] sm:$0xff]  ;;  %v3825_v24 = vld [vmem:[#allocation14 + $0x80] sm:$0xff] }
 0x9d0   : > { %v3631_v18 = vmul.f32 %v3630_v52, %v3531_v2  ;;  %v3634_v1 = vsub.f32 1.0, %v3633_v31  ;;  %v3811_v54 = vld [vmem:[#allocation14 + $0x10] sm:$0xff] }
 0x9d1   : > { %3893 = vmatpush.msra.mxu0 %v3833_v15  ;;  %3854 = vmatpush.msrb.mxu3 %v3815_v12 }
 0x9d2   : > { %v3670_v10 = vadd.f32 %v7272_v4, %v3631_v18  ;;  %v3635_v20 = vmul.f32 %v4874_v6, %v3634_v1  ;;  %v3810_v18 = vld [vmem:[#allocation14 + $0x8] sm:$0xff]  ;;  %v3809_v1 = vld [vmem:[#allocation14] sm:$0xff] }
 0x9d3   : > { %3894 = vmatpush.msra.mxu0 %v3832_v35  ;;  %3855 = vmatpush.msrb.mxu3 %v3814_v13 }
 0x9d4   : > { %3742 = vmatmul.f32.gmra.mxu2 %v3670_v10  ;;  %3783 = vmatmul.f32.gmra.mxu1 %v3670_v10  ;;  %v3636_v11 = vadd.f32 %v4874_v6, %v3635_v20 }
 0x9d5   : > { %3895 = vmatpush.msra.mxu0 %v3831_v58  ;;  %3856 = vmatpush.msrb.mxu3 %v3813_v30 }
 0x9d6   : > { %v3640_v29 = vsel %vm3639_vm15, %v4874_v6, %v3636_v11 }
 0x9d7   : > { %v3645_v9 = vsel %vm3642_vm0, %v3644_v40, %v3640_v29  ;;  %3896 = vmatpush.msra.mxu0 %v3830_v60  ;;  %3857 = vmatpush.msrb.mxu3 %v3812_v28 }
 0x9d8   : > { %v3646_v49 = vmul.f32 %v3645_v9, %v3532_v27  ;;  %v7334_v27 = vperm.slane %v3705_v50, 1 }
 0x9d9   : > { %3897 = vmatpush.msra.mxu0 %v3829_v43  ;;  %3858 = vmatpush.msrb.mxu3 %v3811_v54 }
 0x9da   : > { %v3671_v21 = vadd.f32 %v7272_v4, %v3646_v49 }
 0x9db   : > { %3859 = vmatpush.msrb.mxu3 %v3810_v18 }
 0x9dc   : > { %3745 = vmatmul.f32.gmra.mxu2 %v3671_v21  ;;  %3786 = vmatmul.f32.gmra.mxu1 %v3671_v21 }
 0x9dd   : > { %3860 = vmatpush.msrb.mxu3 %v3809_v1 }
 0x9df   : > { %v3418_v3 = vpop.xlane.xlu2 %3417 }
 0x9e0   : > { %v3426_v33 = vmul.f32 %v3418_v3, %v6236_v39  ;;  %v3828_v39 = vld [vmem:[#allocation14 + $0x98] sm:$0xff] }
 0x9e1   : > { %3898 = vmatpush.msra.mxu0 %v3828_v39 }
 0x9e2   : > { %4875 = vrsqrt.f32 %v3426_v33  ;;  %vm3518_vm1 = vcmp.eq.f32.partialorder %v3426_v33, inf  ;;  %v3521_v52 = vand.u32 2147483648, %v3426_v33  ;;  %vm3520_vm2 = vcmp.eq.f32.partialorder %v3426_v33, 0.0 }
 0x9e3   : > { %3899 = vmatpush.msra.mxu0 %v3827_v37 }
 0x9e5   : > { %3900 = vmatpush.msra.mxu0 %v3826_v46 }
 0x9e7   : > { %3901 = vmatpush.msra.mxu0 %v3825_v24 }
 0x9e8   : > { %v4876_v17 = vpop.eup %4875 }
 0x9e9   : > { %v3512_v16 = vmul.f32 %v4876_v17, %v3426_v33 }
 0x9eb   : > { %v3513_v56 = vmul.f32 %v4876_v17, %v3512_v16 }
 0x9ed   : > { %v3514_v55 = vmul.f32 0.5, %v3513_v56 }
 0x9ef   : > { %v3515_v6 = vsub.f32 1.5, %v3514_v55 }
 0x9f1   : > { %v3516_v2 = vmul.f32 %v4876_v17, %v3515_v6 }
 0x9f3   : > { %v3517_v31 = vmul.f32 %v3516_v2, %v3426_v33 }
 0x9f5   : > { %v3519_v26 = vsel %vm3518_vm1, %v3426_v33, %v3517_v31 }
 0x9f6   : > { %v3522_v10 = vsel %vm3520_vm2, %v3521_v52, %v3519_v26 }
 0x9f7   : > { %v3541_v20 = vadd.f32 1e-06, %v3522_v10 }
 0x9f9   : > { %4877 = vrcp.f32 %v3541_v20  ;;  %v3658_v59 = vand.u32 2147483648, %v3541_v20  ;;  %v3656_v40 = vand.u32 2147483647, %v3541_v20  ;;  %vm3652_vm5 = vweird.f32 %v3541_v20 }
 0x9fb   : > { %v3659_v61 = vor.u32 1.1754944e-38, %v3658_v59  ;;  %vm3657_vm7 = vcmp.eq.f32.partialorder %v3656_v40, 8.507059e+37 }
 0x9ff   : > { %v4878_v63 = vpop.eup %4877 }
 0xa00   : > { %v3648_v34 = vmul.f32 %v4878_v63, %v3541_v20  ;;  %vm3653_vm3 = vweird.f32 %v4878_v63 }
 0xa01   : > { %vm3654_vm6 = vmor %vm3652_vm5, %vm3653_vm3 }
 0xa02   : > { %v3649_v11 = vsub.f32 1.0, %v3648_v34 }
 0xa04   : > { %v3650_v57 = vmul.f32 %v4878_v63, %v3649_v11 }
 0xa06   : > { %v3651_v29 = vadd.f32 %v4878_v63, %v3650_v57 }
 0xa08   : > { %v3655_v9 = vsel %vm3654_vm6, %v4878_v63, %v3651_v29 }
 0xa09   : > { %v3769_v49 = vpop.f32.mrf.mxu1  ;;  %v3660_v0 = vsel %vm3657_vm7, %v3659_v61, %v3655_v9  ;;  %v4682_v61 = vld [vmem:[%s7540_s5] ss:$0 sm:$0xff] }
 0xa0a   : > { %v3770_v38 = vadd.f32 %v3769_v49, %v7334_v27  ;;  %v3661_v21 = vmul.f32 %v3660_v0, %v3533_v25 }
 0xa0c   : > { %v3794_v53 = vmax.f32 %v3770_v38, 0.0  ;;  %v3672_v22 = vadd.f32 %v7272_v4, %v3661_v21 }
 0xa0e   : > { %3748 = vmatmul.f32.gmra.mxu2 %v3672_v22  ;;  %3789 = vmatmul.f32.gmra.mxu1 %v3672_v22 }
 0xa0f   : > { %3902 = vmatmul.f32.vlgmr.msra.gmra.mxu0 %v3794_v53  ;;  %v3728_v48 = vpop.f32.mrf.mxu2 }
 0xa10   : > { %v3729_v51 = vadd.f32 %v3728_v48, %v3707_v5 }
 0xa11   : > { %v3772_v44 = vpop.f32.mrf.mxu1 }
 0xa12   : > { %v3793_v3 = vmax.f32 %v3729_v51, 0.0  ;;  %v3773_v62 = vadd.f32 %v3772_v44, %v7334_v27 }
 0xa14   : > { %v3796_v41 = vmax.f32 %v3773_v62, 0.0  ;;  %3861 = vmatmul.f32.vlgmr.msrb.gmra.mxu3 %v3793_v3 }
 0xa17   : > { %3905 = vmatmul.f32.gmra.mxu0 %v3796_v41  ;;  %v3731_v33 = vpop.f32.mrf.mxu2 }
 0xa18   : > { %v3732_v15 = vadd.f32 %v3731_v33, %v3707_v5 }
 0xa1a   : > { %v3795_v47 = vmax.f32 %v3732_v15, 0.0 }
 0xa1c   : > { %3864 = vmatmul.f32.gmra.mxu3 %v3795_v47 }
 0xa39   : > { %v3775_v35 = vpop.f32.mrf.mxu1 }
 0xa3a   : > { %v3776_v4 = vadd.f32 %v3775_v35, %v7334_v27 }
 0xa3c   : > { %v3798_v7 = vmax.f32 %v3776_v4, 0.0 }
 0xa3e   : > { %3908 = vmatmul.f32.gmra.mxu0 %v3798_v7 }
 0xa3f   : > { %v3734_v58 = vpop.f32.mrf.mxu2 }
 0xa40   : > { %v3735_v12 = vadd.f32 %v3734_v58, %v3707_v5 }
 0xa41   : > { %v3778_v60 = vpop.f32.mrf.mxu1 }
 0xa42   : > { %v3797_v17 = vmax.f32 %v3735_v12, 0.0  ;;  %v3779_v43 = vadd.f32 %v3778_v60, %v7334_v27 }
 0xa44   : > { %v3800_v16 = vmax.f32 %v3779_v43, 0.0  ;;  %3867 = vmatmul.f32.gmra.mxu3 %v3797_v17 }
 0xa46   : > { %3911 = vmatmul.f32.gmra.mxu0 %v3800_v16 }
 0xa47   : > { %v3737_v39 = vpop.f32.mrf.mxu2 }
 0xa48   : > { %v3738_v56 = vadd.f32 %v3737_v39, %v3707_v5 }
 0xa49   : > { %v3781_v13 = vpop.f32.mrf.mxu1 }
 0xa4a   : > { %v3799_v37 = vmax.f32 %v3738_v56, 0.0  ;;  %v3782_v30 = vadd.f32 %v3781_v13, %v7334_v27 }
 0xa4c   : > { %v3802_v55 = vmax.f32 %v3782_v30, 0.0  ;;  %3870 = vmatmul.f32.gmra.mxu3 %v3799_v37 }
 0xa4e   : > { %3914 = vmatmul.f32.gmra.mxu0 %v3802_v55 }
 0xa4f   : > { %v3740_v46 = vpop.f32.mrf.mxu2 }
 0xa50   : > { %v3741_v28 = vadd.f32 %v3740_v46, %v3707_v5 }
 0xa51   : > { %v3784_v6 = vpop.f32.mrf.mxu1 }
 0xa52   : > { %v3801_v24 = vmax.f32 %v3741_v28, 0.0  ;;  %v3785_v2 = vadd.f32 %v3784_v6, %v7334_v27 }
 0xa54   : > { %v3804_v54 = vmax.f32 %v3785_v2, 0.0  ;;  %3873 = vmatmul.f32.gmra.mxu3 %v3801_v24 }
 0xa56   : > { %3917 = vmatmul.f32.gmra.mxu0 %v3804_v54 }
 0xa57   : > { %v3743_v31 = vpop.f32.mrf.mxu2 }
 0xa58   : > { %v3744_v52 = vadd.f32 %v3743_v31, %v3707_v5 }
 0xa59   : > { %v3787_v18 = vpop.f32.mrf.mxu1 }
 0xa5a   : > { %v3803_v1 = vmax.f32 %v3744_v52, 0.0  ;;  %v3788_v26 = vadd.f32 %v3787_v18, %v7334_v27 }
 0xa5c   : > { %v3806_v10 = vmax.f32 %v3788_v26, 0.0  ;;  %3876 = vmatmul.f32.gmra.mxu3 %v3803_v1 }
 0xa5e   : > { %3920 = vmatmul.f32.gmra.mxu0 %v3806_v10 }
 0xa5f   : > { %v3746_v20 = vpop.f32.mrf.mxu2 }
 0xa60   : > { %v3747_v63 = vadd.f32 %v3746_v20, %v3707_v5 }
 0xa62   : > { %v3805_v34 = vmax.f32 %v3747_v63, 0.0 }
 0xa64   : > { %3879 = vmatmul.f32.gmra.mxu3 %v3805_v34 }
 0xa8b   : > { %v3790_v11 = vpop.f32.mrf.mxu1 }
 0xa8c   : > { %v3791_v50 = vadd.f32 %v3790_v11, %v7334_v27  ;;  %v3903_v25 = vpop.f32.mrf.mxu0 }
 0xa8e   : > { %v3808_v59 = vmax.f32 %v3791_v50, 0.0 }
 0xa90   : > { %3923 = vmatmul.f32.gmra.mxu0 %v3808_v59 }
 0xa91   : > { %v3749_v57 = vpop.f32.mrf.mxu2 }
 0xa92   : > { %v3750_v40 = vadd.f32 %v3749_v57, %v3707_v5 }
 0xa94   : > { %v3807_v29 = vmax.f32 %v3750_v40, 0.0  ;;  %v3906_v53 = vpop.f32.mrf.mxu0 }
 0xa96   : > { %3882 = vmatmul.f32.gmra.mxu3 %v3807_v29 }
 0xa97   : > { %v3862_v9 = vpop.f32.mrf.mxu3 }
 0xa98   : > { %v3863_v49 = vadd.f32 %v4682_v61, %v3862_v9 }
 0xa9a   : > { %v3904_v0 = vadd.f32 %v3903_v25, %v3863_v49 }
 0xa9c   : > { %v3927_v38 = vadd.f32 %v3904_v0, %v7149_v45 }
 0xa9e   : > { %3935 = vst [vmem:[%s5546_s0] sm:$0xff] %v3927_v38 }
 0xa9f   : > { %v3865_v27 = vpop.f32.mrf.mxu3 }
 0xaa0   : > { %v3866_v21 = vadd.f32 %v4682_v61, %v3865_v27 }
 0xaa2   : > { %v3907_v22 = vadd.f32 %v3906_v53, %v3866_v21 }
 0xaa4   : > { %v3928_v5 = vadd.f32 %v3907_v22, %v7154_v42 }
 0xaa6   : > { %3936 = vst [vmem:[%s5546_s0 + $0x8] sm:$0xff] %v3928_v5 }
 0xabb   : > { %v3909_v48 = vpop.f32.mrf.mxu0 }
 0xac3   : > { %v3912_v62 = vpop.f32.mrf.mxu0 }
 0xac7   : > { %v3868_v51 = vpop.f32.mrf.mxu3 }
 0xac8   : > { %v3869_v44 = vadd.f32 %v4682_v61, %v3868_v51 }
 0xaca   : > { %v3910_v3 = vadd.f32 %v3909_v48, %v3869_v44 }
 0xacb   : > { %v3915_v35 = vpop.f32.mrf.mxu0 }
 0xacc   : > { %v3929_v41 = vadd.f32 %v3910_v3, %v7161_v14 }
 0xace   : > { %3937 = vst [vmem:[%s5546_s0 + $0x10] sm:$0xff] %v3929_v41 }
 0xacf   : > { %v3871_v33 = vpop.f32.mrf.mxu3 }
 0xad0   : > { %v3872_v45 = vadd.f32 %v4682_v61, %v3871_v33 }
 0xad2   : > { %v3913_v15 = vadd.f32 %v3912_v62, %v3872_v45 }
 0xad3   : > { %v3918_v12 = vpop.f32.mrf.mxu0 }
 0xad4   : > { %v3930_v47 = vadd.f32 %v3913_v15, %v7167_v8 }
 0xad6   : > { %3938 = vst [vmem:[%s5546_s0 + $0x18] sm:$0xff] %v3930_v47 }
 0xad7   : > { %v3874_v4 = vpop.f32.mrf.mxu3 }
 0xad8   : > { %v3875_v42 = vadd.f32 %v4682_v61, %v3874_v4 }
 0xada   : > { %v3916_v7 = vadd.f32 %v3915_v35, %v3875_v42 }
 0xadb   : > { %v3921_v39 = vpop.f32.mrf.mxu0 }
 0xadc   : > { %v3931_v58 = vadd.f32 %v3916_v7, %v7173_v36 }
 0xade   : > { %3939 = vst [vmem:[%s5546_s0 + $0x20] sm:$0xff] %v3931_v58 }
 0xadf   : > { %v3877_v14 = vpop.f32.mrf.mxu3 }
 0xae0   : > { %v3878_v60 = vadd.f32 %v4682_v61, %v3877_v14 }
 0xae2   : > { %v3919_v17 = vadd.f32 %v3918_v12, %v3878_v60 }
 0xae4   : > { %v3932_v43 = vadd.f32 %v3919_v17, %v7179_v32 }
 0xae6   : > { %3940 = vst [vmem:[%s5546_s0 + $0x28] sm:$0xff] %v3932_v43 }
 0xae7   : > { %v3880_v8 = vpop.f32.mrf.mxu3 }
 0xae8   : > { %v3881_v16 = vadd.f32 %v4682_v61, %v3880_v8 }
 0xaea   : > { %v3922_v56 = vadd.f32 %v3921_v39, %v3881_v16 }
 0xaec   : > { %v3933_v13 = vadd.f32 %v3922_v56, %v7184_v19 }
 0xaee   : > { %3941 = vst [vmem:[%s5546_s0 + $0x30] sm:$0xff] %v3933_v13 }
 0xb0d   : > { %v3924_v37 = vpop.f32.mrf.mxu0 }
 0xb19   : > { %v3883_v36 = vpop.f32.mrf.mxu3 }
 0xb1a   : > { %v3884_v32 = vadd.f32 %v4682_v61, %v3883_v36 }
 0xb1c   : > { %v3925_v30 = vadd.f32 %v3924_v37, %v3884_v32 }
 0xb1e   : > { %v3934_v19 = vadd.f32 %v3925_v30, %v7203_v23 }
 0xb20   : > { %3942 = vst [vmem:[%s5546_s0 + $0x38] sm:$0xff] %v3934_v19 }
 0xb21   : > { %5124 = shalt.err (!%p5121_p4)
}
 0xb22   : > { %s5250_s2 = smov 128   ;;  %s5251_s0 = smov 8  }
 0xb23   : > { %4340 = dma.vmem_to_hbm [thread:$0]  (%p5484_p7), %s3959_s21, 1024, %s3961_s24, %s3944_s25, %s5250_s2, %s5250_s2, %s5251_s0  }
 0xb24 PF: > { %p4382_p5 = scmp.ge.s32.totalorder %s5231_s28, 2  ;;  %s3975_s12 = sand.u32 1, %s5191_s18  }
 0xb25   : > { %s3976_s15 = scalar_lea.sflag [#allocation5], %s3975_s12 }
 0xb26   : > { %p4366_p10 = pnand %p4382_p5, %p5499_p11 }
 0xb28   : > { %p4367_p6 = pneg %p4366_p10 }
 0xb2a   : > { %5186 = dma.done.wait (%p4367_p6), %s3976_s15, 1024  }
 0xb2b   : > { %5188 = vsyncadd (%p4367_p6), %s3976_s15, 4294966272  ;;  %s34_s28 = sadd.s32 1, %s5231_s28   ;;  %s7543_s3 = sld [smem:[#allocation24_spill]] }
 0xb2c   : > { %p31_p1 = scmp.ge.s32.totalorder %s34_s28, 6   ;;  %s7544_s18 = smov %s5195_s19 }
 0xb2d   : > { %s7545_s19 = smov %s5199_s20  ;;  %s7546_s20 = smov %s5492_s16 }
 0xb2e   : > { %s7547_s21 = smov %s5207_s22  ;;  %s7548_s22 = smov %s5211_s23 }
 0xb2f   : > { %s7549_s23 = smov %s5489_s8  ;;  %s7550_s24 = smov %s5223_s26 }
 0xb30   : > { %s7551_s25 = smov %s5227_s27  ;;  %s7552_s26 = smov %s7555_s10 }
 0xb31   : > { %s7553_s27 = smov %s7543_s3  ;;  %33 = sbr.rel (!%p31_p1) target bundleno = 29 (0x1d), region = 154 }
 0xb36   :  { %3982 = vsyncpa [#allocation4], 1 }
 0xb37   :  { %3984 = vsyncpa [#allocation4 + $0x1], 1 }
 0xb38   :  { %3985 = vsyncpa [#allocation7], 1 }
 0xb39   :  { %3986 = vsyncpa [#allocation10], 1 }
 0xb3a   :  { %3987 = vsyncpa [#allocation13], 1 }
 0xb3b   :  { %3988 = vsyncpa [#allocation5], 1 }
 0xb3c   :  { %3990 = vsyncpa [#allocation5 + $0x1], 1 }

</bundles_post_ra>
